<compile_context>
chip_gen: v6e
topology: v6e:2x2x1
jax: 0.10.0
libtpu: 0.0.40
codegen_flags: <defaults>
</compile_context>

<pallas_src>
import functools

import jax
import jax.numpy as jnp
from jax import lax
from jax.experimental import pallas as pl
from jax.experimental.pallas import tpu as pltpu


_SUBLANE = 8
_LANE = 128
# Set to jnp.bfloat16 on v6e/v7x for faster MXU + half the weight DMA bytes.
_WEIGHT_DTYPE = jnp.float32


def _round_up(v, m):
    return (v + m - 1) // m * m


def _pick_t_chunk(t, cap=32):
    """Largest divisor of t not exceeding cap (chunked sequence streaming)."""
    best = 1
    for c in range(1, min(t, cap) + 1):
        if t % c == 0:
            best = c
    return best


# ----------------------------------------------------------------------------
# Kernel
# ----------------------------------------------------------------------------
def _recurrence(gx_ref, whh_ref, h_ref, c_ref, t_chunk, b_pad, h_pad, wdt,
                y_ref=None):
    """Serial LSTM recurrence over one chunk.

    gx_ref holds the pre-computed x@W_ih + bias for every timestep of the
    chunk, laid out as (t_chunk*b_pad, 4*h_pad) with gate order i, f, g, o and
    each gate occupying a whole multiple-of-128 lane block.
    """

    def step(t, carry):
        row = pl.multiple_of(t * b_pad, b_pad)   # sublane-aligned row offset
        gates = gx_ref[pl.ds(row, b_pad), :] + jnp.dot(
            h_ref[...].astype(wdt), whh_ref[...],
            preferred_element_type=jnp.float32)
        i_g = jax.nn.sigmoid(gates[:, 0 * h_pad:1 * h_pad])
        f_g = jax.nn.sigmoid(gates[:, 1 * h_pad:2 * h_pad])
        g_g = jnp.tanh(gates[:, 2 * h_pad:3 * h_pad])
        o_g = jax.nn.sigmoid(gates[:, 3 * h_pad:4 * h_pad])
        c_new = f_g * c_ref[...] + i_g * g_g
        h_new = o_g * jnp.tanh(c_new)
        c_ref[...] = c_new
        h_ref[...] = h_new
        if y_ref is not None:
            y_ref[pl.ds(row, b_pad), :] = h_new
        return carry

    unroll = t_chunk if t_chunk <= 4 else 2
    lax.fori_loop(0, t_chunk, step, 0, unroll=unroll)


def _fused_lstm_kernel(x_ref, wih1_ref, whh1_ref, b1_ref,
                       wih2_ref, whh2_ref, b2_ref,
                       h0_ref, c0_ref, wfc_ref, bfc_ref,
                       out_ref, hn_ref, cn_ref,
                       h1_ref, c1_ref, h2_ref, c2_ref, gx_ref, y1_ref):
    b_pad, h_pad = h1_ref.shape
    t_chunk = y1_ref.shape[0] // b_pad
    wdt = whh1_ref.dtype

    chunk = pl.program_id(0)

    @pl.when(chunk == 0)
    def _():
        h1_ref[...] = h0_ref[0]
        c1_ref[...] = c0_ref[0]
        h2_ref[...] = h0_ref[1]
        c2_ref[...] = c0_ref[1]

    # ---- Layer 1: hoisted input projection (one big matmul, bias folded) ----
    gx_ref[...] = (
        jnp.dot(x_ref[...].astype(wdt), wih1_ref[...],
                preferred_element_type=jnp.float32)
        + b1_ref[...]
    )
    _recurrence(gx_ref, whh1_ref, h1_ref, c1_ref, t_chunk, b_pad, h_pad, wdt,
                y_ref=y1_ref)

    # ---- Layer 2: projection on layer-1's chunk output (kept in VMEM) ------
    # TODO(synk): training-mode inter-layer dropout (p=0.2) not implemented.
    gx_ref[...] = (
        jnp.dot(y1_ref[...].astype(wdt), wih2_ref[...],
                preferred_element_type=jnp.float32)
        + b2_ref[...]
    )
    _recurrence(gx_ref, whh2_ref, h2_ref, c2_ref, t_chunk, b_pad, h_pad, wdt,
                y_ref=None)

    # ---- Finalize: states + FC head (out[:, -1] of top layer == h2_T) -------
    @pl.when(chunk == pl.num_programs(0) - 1)
    def _():
        hn_ref[0] = h1_ref[...]
        hn_ref[1] = h2_ref[...]
        cn_ref[0] = c1_ref[...]
        cn_ref[1] = c2_ref[...]
        out_ref[...] = (
            jnp.dot(h2_ref[...].astype(wdt), wfc_ref[...],
                    preferred_element_type=jnp.float32)
            + bfc_ref[...]
        )


# ----------------------------------------------------------------------------
# Parameter preparation (PyTorch layout -> padded, gate-lane-aligned layout)
# ----------------------------------------------------------------------------
def _prepare_kernel_params(params, h_pad, out_pad, weight_dtype):
    H = params["lstm"][0]["w_hh"].shape[1]
    layers = []
    for layer, p in enumerate(params["lstm"]):
        w_ih, w_hh = p["w_ih"], p["w_hh"]            # (4H, d_in), (4H, H)
        d_in = w_ih.shape[1]
        d_in_pad = d_in if layer == 0 else h_pad     # layer>=1 input is padded h
        wih = jnp.pad(w_ih.reshape(4, H, d_in),
                      ((0, 0), (0, h_pad - H), (0, d_in_pad - d_in)))
        wih = jnp.transpose(wih, (2, 0, 1)).reshape(d_in_pad, 4 * h_pad)
        whh = jnp.pad(w_hh.reshape(4, H, H),
                      ((0, 0), (0, h_pad - H), (0, h_pad - H)))
        whh = jnp.transpose(whh, (2, 0, 1)).reshape(h_pad, 4 * h_pad)
        bias = jnp.pad((p["b_ih"] + p["b_hh"]).reshape(4, H),
                       ((0, 0), (0, h_pad - H))).reshape(1, 4 * h_pad)
        layers.append((wih.astype(weight_dtype), whh.astype(weight_dtype),
                       bias.astype(jnp.float32)))

    out_size = params["fc"]["w"].shape[0]
    w_fc = jnp.pad(params["fc"]["w"].T,                      # (H, out)
                   ((0, h_pad - H), (0, out_pad - out_size)))
    b_fc = jnp.pad(params["fc"]["b"], (0, out_pad - out_size)).reshape(1, out_pad)
    return layers, w_fc.astype(weight_dtype), b_fc.astype(jnp.float32)


# ----------------------------------------------------------------------------
# Forward wrapper
# ----------------------------------------------------------------------------
@functools.partial(jax.jit, static_argnames=("t_chunk",))
def lstm_model_forward(params, x, h, *, t_chunk=None):
    """x: (B, T, in_size) batch-first; h: (h0, c0) each (n_layers, B, H)."""
    h0_all, c0_all = h
    b, t, d_in = x.shape
    H = params["lstm"][0]["w_hh"].shape[1]
    if len(params["lstm"]) != 2:
        raise ValueError("fused kernel is specialized to the 2-layer LSTM_model")
    out_size = params["fc"]["w"].shape[0]

    b_pad = _round_up(b, _SUBLANE)
    h_pad = _round_up(H, _LANE)
    out_pad = _round_up(out_size, _LANE)

    if t_chunk is None:
        t_chunk = _pick_t_chunk(t)
    if t % t_chunk != 0:
        raise ValueError("t_chunk must divide the sequence length")
    n_chunks = t // t_chunk

    layers, w_fc, b_fc = _prepare_kernel_params(params, h_pad, out_pad,
                                                _WEIGHT_DTYPE)
    (wih1, whh1, b1), (wih2, whh2, b2) = layers

    # Time-major, batch-padded, flattened to 2-D so each per-step slice is a
    # sublane-aligned row block and the hoisted projection is one 2-D matmul.
    x_tm = jnp.transpose(x.astype(jnp.float32), (1, 0, 2))       # (T, B, Din)
    x_tm = jnp.pad(x_tm, ((0, 0), (0, b_pad - b), (0, 0)))
    x_flat = x_tm.reshape(t * b_pad, d_in)

    h0 = jnp.pad(h0_all.astype(jnp.float32),
                 ((0, 0), (0, b_pad - b), (0, h_pad - H)))
    c0 = jnp.pad(c0_all.astype(jnp.float32),
                 ((0, 0), (0, b_pad - b), (0, h_pad - H)))

    g4 = 4 * h_pad
    rows = t_chunk * b_pad

    const2 = lambda shape: pl.BlockSpec(shape, lambda i: (0, 0))
    const3 = lambda shape: pl.BlockSpec(shape, lambda i: (0, 0, 0))

    grid_spec = pltpu.PrefetchScalarGridSpec(
        num_scalar_prefetch=0,
        grid=(n_chunks,),
        in_specs=[
            pl.BlockSpec((rows, d_in), lambda i: (i, 0)),   # streamed x chunk
            const2((d_in, g4)),                             # W_ih layer 1
            const2((h_pad, g4)),                            # W_hh layer 1
            const2((1, g4)),                                # bias layer 1
            const2((h_pad, g4)),                            # W_ih layer 2
            const2((h_pad, g4)),                            # W_hh layer 2
            const2((1, g4)),                                # bias layer 2
            const3((2, b_pad, h_pad)),                      # h0
            const3((2, b_pad, h_pad)),                      # c0
            const2((h_pad, out_pad)),                       # W_fc
            const2((1, out_pad)),                           # b_fc
        ],
        out_specs=(
            const2((b_pad, out_pad)),                       # fc output
            const3((2, b_pad, h_pad)),                      # h_n
            const3((2, b_pad, h_pad)),                      # c_n
        ),
        scratch_shapes=[
            pltpu.VMEM((b_pad, h_pad), jnp.float32),        # h layer 1
            pltpu.VMEM((b_pad, h_pad), jnp.float32),        # c layer 1
            pltpu.VMEM((b_pad, h_pad), jnp.float32),        # h layer 2
            pltpu.VMEM((b_pad, h_pad), jnp.float32),        # c layer 2
            pltpu.VMEM((rows, g4), jnp.float32),            # hoisted x@W_ih + b
            pltpu.VMEM((rows, h_pad), jnp.float32),         # layer-1 chunk out
        ],
    )

    out_p, hn_p, cn_p = pl.pallas_call(
        _fused_lstm_kernel,
        out_shape=(
            jax.ShapeDtypeStruct((b_pad, out_pad), jnp.float32),
            jax.ShapeDtypeStruct((2, b_pad, h_pad), jnp.float32),
            jax.ShapeDtypeStruct((2, b_pad, h_pad), jnp.float32),
        ),
        grid_spec=grid_spec,
        compiler_params=pltpu.CompilerParams(
            dimension_semantics=("arbitrary",)),
    )(x_flat, wih1, whh1, b1, wih2, whh2, b2, h0, c0, w_fc, b_fc)

    out = out_p[:b, :out_size]
    h_n = hn_p[:, :b, :H]
    c_n = cn_p[:, :b, :H]
    return out, (h_n, c_n)


# ----------------------------------------------------------------------------
# Parameter init (PyTorch nn.LSTM / nn.Linear layout) + pure-JAX reference
# ----------------------------------------------------------------------------
def init_params(key, n_layers, n_hidden, in_size, out_size):
    params = {"lstm": [], "fc": {}}
    bound = 1.0 / (n_hidden ** 0.5)
    for layer in range(n_layers):
        d_in = in_size if layer == 0 else n_hidden
        key, k1, k2, k3, k4 = jax.random.split(key, 5)
        params["lstm"].append({
            "w_ih": jax.random.uniform(k1, (4 * n_hidden, d_in), jnp.float32, -bound, bound),
            "w_hh": jax.random.uniform(k2, (4 * n_hidden, n_hidden), jnp.float32, -bound, bound),
            "b_ih": jax.random.uniform(k3, (4 * n_hidden,), jnp.float32, -bound, bound),
            "b_hh": jax.random.uniform(k4, (4 * n_hidden,), jnp.float32, -bound, bound),
        })
    key, k1, k2 = jax.random.split(key, 3)
    params["fc"]["w"] = jax.random.uniform(k1, (out_size, n_hidden), jnp.float32, -bound, bound)
    params["fc"]["b"] = jax.random.uniform(k2, (out_size,), jnp.float32, -bound, bound)
    return params


def lstm_model_reference(params, x, h):
    """Pure-JAX eval-mode reference matching nn.LSTM(batch_first) + Linear."""
    h0_all, c0_all = h
    H = params["lstm"][0]["w_hh"].shape[1]
    layer_in = jnp.transpose(x, (1, 0, 2))   # (T, B, Din)
    h_list, c_list = [], []
    for layer, p in enumerate(params["lstm"]):
        w_ih, w_hh = p["w_ih"], p["w_hh"]
        bias = p["b_ih"] + p["b_hh"]

        def step(carry, x_t, w_ih=w_ih, w_hh=w_hh, bias=bias):
            h_prev, c_prev = carry
            gates = x_t @ w_ih.T + h_prev @ w_hh.T + bias
            i_g = jax.nn.sigmoid(gates[:, 0 * H:1 * H])
            f_g = jax.nn.sigmoid(gates[:, 1 * H:2 * H])
            g_g = jnp.tanh(gates[:, 2 * H:3 * H])
            o_g = jax.nn.sigmoid(gates[:, 3 * H:4 * H])
            c_new = f_g * c_prev + i_g * g_g
            h_new = o_g * jnp.tanh(c_new)
            return (h_new, c_new), h_new

        (h_T, c_T), ys = lax.scan(step, (h0_all[layer], c0_all[layer]), layer_in)
        h_list.append(h_T)
        c_list.append(c_T)
        layer_in = ys
    out = layer_in[-1] @ params["fc"]["w"].T + params["fc"]["b"]
    return out, (jnp.stack(h_list), jnp.stack(c_list))


if __name__ == "__main__":
    n_layers = 2
    n_hidden = 16
    in_size = 4
    out_size = 1
    batch = 2
    seq = 8

    key = jax.random.PRNGKey(0)
    key, pkey, xkey, hkey, ckey = jax.random.split(key, 5)

    params = init_params(pkey, n_layers, n_hidden, in_size, out_size)
    x = jax.random.normal(xkey, (batch, seq, in_size), dtype=jnp.float32)
    h0 = 0.1 * jax.random.normal(hkey, (n_layers, batch, n_hidden), dtype=jnp.float32)
    c0 = 0.1 * jax.random.normal(ckey, (n_layers, batch, n_hidden), dtype=jnp.float32)

    # t_chunk=4 -> 2-chunk grid: exercises streamed sequence + state carry.
    out, (h_n, c_n) = lstm_model_forward(params, x, (h0, c0), t_chunk=4)
    jax.block_until_ready((out, h_n, c_n))

    assert out.shape == (batch, out_size)
    assert h_n.shape == (n_layers, batch, n_hidden)
    assert c_n.shape == (n_layers, batch, n_hidden)

    ref_out, (ref_h, ref_c) = lstm_model_reference(params, x, (h0, c0))
    assert jnp.allclose(out, ref_out, atol=1e-3, rtol=1e-3)
    assert jnp.allclose(h_n, ref_h, atol=1e-3, rtol=1e-3)
    assert jnp.allclose(c_n, ref_c, atol=1e-3, rtol=1e-3)

    print("KERNEL_OK")
</pallas_src>

<mosaic_0001>
module attributes {stable_mosaic.version = 11 : i64} {
  func.func @_fused_lstm_kernel(%arg0: i32, %arg1: memref<32x4xf32, #tpu.memory_space<vmem>>, %arg2: memref<4x512xf32, #tpu.memory_space<vmem>>, %arg3: memref<128x512xf32, #tpu.memory_space<vmem>>, %arg4: memref<1x512xf32, #tpu.memory_space<vmem>>, %arg5: memref<128x512xf32, #tpu.memory_space<vmem>>, %arg6: memref<128x512xf32, #tpu.memory_space<vmem>>, %arg7: memref<1x512xf32, #tpu.memory_space<vmem>>, %arg8: memref<2x8x128xf32, #tpu.memory_space<vmem>>, %arg9: memref<2x8x128xf32, #tpu.memory_space<vmem>>, %arg10: memref<128x128xf32, #tpu.memory_space<vmem>>, %arg11: memref<1x128xf32, #tpu.memory_space<vmem>>, %arg12: memref<8x128xf32, #tpu.memory_space<vmem>>, %arg13: memref<2x8x128xf32, #tpu.memory_space<vmem>>, %arg14: memref<2x8x128xf32, #tpu.memory_space<vmem>>, %arg15: memref<8x128xf32, #tpu.memory_space<vmem>>, %arg16: memref<8x128xf32, #tpu.memory_space<vmem>>, %arg17: memref<8x128xf32, #tpu.memory_space<vmem>>, %arg18: memref<8x128xf32, #tpu.memory_space<vmem>>, %arg19: memref<32x512xf32, #tpu.memory_space<vmem>>, %arg20: memref<32x128xf32, #tpu.memory_space<vmem>>) attributes {dimension_semantics = [#tpu.dimension_semantics<arbitrary>], iteration_bounds = array<i64: 2>, scalar_prefetch = 0 : i64, scratch_operands = 6 : i64, tpu.core_type = #tpu.core_type<tc>, window_params = [{transform_indices = @transform_0, window_bounds = array<i64: 32, 4>}, {pipeline_mode = #tpu.pipeline_mode<synchronous>, transform_indices = @transform_1, window_bounds = array<i64: 4, 512>}, {pipeline_mode = #tpu.pipeline_mode<synchronous>, transform_indices = @transform_2, window_bounds = array<i64: 128, 512>}, {pipeline_mode = #tpu.pipeline_mode<synchronous>, transform_indices = @transform_3, window_bounds = array<i64: 1, 512>}, {pipeline_mode = #tpu.pipeline_mode<synchronous>, transform_indices = @transform_4, window_bounds = array<i64: 128, 512>}, {pipeline_mode = #tpu.pipeline_mode<synchronous>, transform_indices = @transform_5, window_bounds = array<i64: 128, 512>}, {pipeline_mode = #tpu.pipeline_mode<synchronous>, transform_indices = @transform_6, window_bounds = array<i64: 1, 512>}, {pipeline_mode = #tpu.pipeline_mode<synchronous>, transform_indices = @transform_7, window_bounds = array<i64: 2, 8, 128>}, {pipeline_mode = #tpu.pipeline_mode<synchronous>, transform_indices = @transform_8, window_bounds = array<i64: 2, 8, 128>}, {pipeline_mode = #tpu.pipeline_mode<synchronous>, transform_indices = @transform_9, window_bounds = array<i64: 128, 128>}, {pipeline_mode = #tpu.pipeline_mode<synchronous>, transform_indices = @transform_10, window_bounds = array<i64: 1, 128>}, {pipeline_mode = #tpu.pipeline_mode<synchronous>, transform_indices = @transform_11, window_bounds = array<i64: 8, 128>}, {pipeline_mode = #tpu.pipeline_mode<synchronous>, transform_indices = @transform_12, window_bounds = array<i64: 2, 8, 128>}, {pipeline_mode = #tpu.pipeline_mode<synchronous>, transform_indices = @transform_13, window_bounds = array<i64: 2, 8, 128>}]} {
    %c0_i32 = arith.constant 0 : i32
    %0 = arith.cmpi eq, %arg0, %c0_i32 : i32
    %1 = arith.extui %0 : i1 to i32
    %c0_i32_0 = arith.constant 0 : i32
    %2 = arith.cmpi ne, %1, %c0_i32_0 : i32
    scf.if %2 {
      %c0_156 = arith.constant 0 : index
      %c0_157 = arith.constant 0 : index
      %c0_158 = arith.constant 0 : index
      %316 = vector.load %arg8[%c0_156, %c0_157, %c0_158] : memref<2x8x128xf32, #tpu.memory_space<vmem>>, vector<1x8x128xf32>
      %317 = vector.shape_cast %316 : vector<1x8x128xf32> to vector<8x128xf32>
      %c0_159 = arith.constant 0 : index
      %c0_160 = arith.constant 0 : index
      %318 = vector.load %arg15[%c0_159, %c0_160] : memref<8x128xf32, #tpu.memory_space<vmem>>, vector<8x128xf32>
      tpu.vector_store %arg15[%c0_159, %c0_160], %317 {strides = array<i32>} : memref<8x128xf32, #tpu.memory_space<vmem>>, vector<8x128xf32>,
      %c0_161 = arith.constant 0 : index
      %c0_162 = arith.constant 0 : index
      %c0_163 = arith.constant 0 : index
      %319 = vector.load %arg9[%c0_161, %c0_162, %c0_163] : memref<2x8x128xf32, #tpu.memory_space<vmem>>, vector<1x8x128xf32>
      %320 = vector.shape_cast %319 : vector<1x8x128xf32> to vector<8x128xf32>
      %c0_164 = arith.constant 0 : index
      %c0_165 = arith.constant 0 : index
      %321 = vector.load %arg16[%c0_164, %c0_165] : memref<8x128xf32, #tpu.memory_space<vmem>>, vector<8x128xf32>
      tpu.vector_store %arg16[%c0_164, %c0_165], %320 {strides = array<i32>} : memref<8x128xf32, #tpu.memory_space<vmem>>, vector<8x128xf32>,
      %c1 = arith.constant 1 : index
      %c0_166 = arith.constant 0 : index
      %c0_167 = arith.constant 0 : index
      %322 = vector.load %arg8[%c1, %c0_166, %c0_167] : memref<2x8x128xf32, #tpu.memory_space<vmem>>, vector<1x8x128xf32>
      %323 = vector.shape_cast %322 : vector<1x8x128xf32> to vector<8x128xf32>
      %c0_168 = arith.constant 0 : index
      %c0_169 = arith.constant 0 : index
      %324 = vector.load %arg17[%c0_168, %c0_169] : memref<8x128xf32, #tpu.memory_space<vmem>>, vector<8x128xf32>
      tpu.vector_store %arg17[%c0_168, %c0_169], %323 {strides = array<i32>} : memref<8x128xf32, #tpu.memory_space<vmem>>, vector<8x128xf32>,
      %c1_170 = arith.constant 1 : index
      %c0_171 = arith.constant 0 : index
      %c0_172 = arith.constant 0 : index
      %325 = vector.load %arg9[%c1_170, %c0_171, %c0_172] : memref<2x8x128xf32, #tpu.memory_space<vmem>>, vector<1x8x128xf32>
      %326 = vector.shape_cast %325 : vector<1x8x128xf32> to vector<8x128xf32>
      %c0_173 = arith.constant 0 : index
      %c0_174 = arith.constant 0 : index
      %327 = vector.load %arg18[%c0_173, %c0_174] : memref<8x128xf32, #tpu.memory_space<vmem>>, vector<8x128xf32>
      tpu.vector_store %arg18[%c0_173, %c0_174], %326 {strides = array<i32>} : memref<8x128xf32, #tpu.memory_space<vmem>>, vector<8x128xf32>,
    } else {
    }
    %c0 = arith.constant 0 : index
    %c0_1 = arith.constant 0 : index
    %3 = vector.load %arg1[%c0, %c0_1] : memref<32x4xf32, #tpu.memory_space<vmem>>, vector<32x4xf32>
    %c0_2 = arith.constant 0 : index
    %c0_3 = arith.constant 0 : index
    %4 = vector.load %arg2[%c0_2, %c0_3] : memref<4x512xf32, #tpu.memory_space<vmem>>, vector<4x512xf32>
    %cst = arith.constant dense<0.000000e+00> : vector<32x512xf32>
    %5 = tpu.matmul %3, %4, %cst {dimension_numbers = #tpu.dot_dimension_numbers<[1], [0], [0], [1], [0, 0, 1, 1], [], []>} : vector<32x4xf32>, vector<4x512xf32>, vector<32x512xf32> -> vector<32x512xf32>
    %c0_4 = arith.constant 0 : index
    %c0_5 = arith.constant 0 : index
    %6 = vector.load %arg4[%c0_4, %c0_5] : memref<1x512xf32, #tpu.memory_space<vmem>>, vector<1x512xf32>
    %7 = vector.broadcast %6 : vector<1x512xf32> to vector<32x512xf32>
    %8 = arith.addf %5, %7 : vector<32x512xf32>
    %c0_6 = arith.constant 0 : index
    %c0_7 = arith.constant 0 : index
    %9 = vector.load %arg19[%c0_6, %c0_7] : memref<32x512xf32, #tpu.memory_space<vmem>>, vector<32x512xf32>
    tpu.vector_store %arg19[%c0_6, %c0_7], %8 {strides = array<i32>} : memref<32x512xf32, #tpu.memory_space<vmem>>, vector<32x512xf32>,
    %c0_i32_8 = arith.constant 0 : i32
    %c8_i32 = arith.constant 8 : i32
    %10 = arith.muli %c0_i32_8, %c8_i32 : i32
    %11 = tpu.assume_multiple %10, 8 : i32
    %12 = arith.index_cast %11 : i32 to index
    %c0_9 = arith.constant 0 : index
    %13 = vector.load %arg19[%12, %c0_9] : memref<32x512xf32, #tpu.memory_space<vmem>>, vector<8x512xf32>
    %c0_10 = arith.constant 0 : index
    %c0_11 = arith.constant 0 : index
    %14 = vector.load %arg15[%c0_10, %c0_11] : memref<8x128xf32, #tpu.memory_space<vmem>>, vector<8x128xf32>
    %c0_12 = arith.constant 0 : index
    %c0_13 = arith.constant 0 : index
    %15 = vector.load %arg3[%c0_12, %c0_13] : memref<128x512xf32, #tpu.memory_space<vmem>>, vector<128x512xf32>
    %cst_14 = arith.constant dense<0.000000e+00> : vector<8x512xf32>
    %16 = tpu.matmul %14, %15, %cst_14 {dimension_numbers = #tpu.dot_dimension_numbers<[1], [0], [0], [1], [0, 0, 1, 1], [], []>} : vector<8x128xf32>, vector<128x512xf32>, vector<8x512xf32> -> vector<8x512xf32>
    %17 = arith.addf %13, %16 : vector<8x512xf32>
    %18 = vector.extract_strided_slice %17 {offsets = [0, 0], sizes = [8, 128], strides = [1, 1]} : vector<8x512xf32> to vector<8x128xf32>
    %19 = arith.negf %18 : vector<8x128xf32>
    %20 = math.exp %19 : vector<8x128xf32>
    %cst_15 = arith.constant 1.000000e+00 : f32
    %21 = vector.broadcast %cst_15 : f32 to vector<8x128xf32>
    %22 = arith.addf %21, %20 : vector<8x128xf32>
    %23 = arith.divf %21, %22 : vector<8x128xf32>
    %24 = vector.extract_strided_slice %17 {offsets = [0, 128], sizes = [8, 128], strides = [1, 1]} : vector<8x512xf32> to vector<8x128xf32>
    %25 = arith.negf %24 : vector<8x128xf32>
    %26 = math.exp %25 : vector<8x128xf32>
    %cst_16 = arith.constant 1.000000e+00 : f32
    %27 = vector.broadcast %cst_16 : f32 to vector<8x128xf32>
    %28 = arith.addf %27, %26 : vector<8x128xf32>
    %29 = arith.divf %27, %28 : vector<8x128xf32>
    %30 = vector.extract_strided_slice %17 {offsets = [0, 256], sizes = [8, 128], strides = [1, 1]} : vector<8x512xf32> to vector<8x128xf32>
    %31 = math.tanh %30 : vector<8x128xf32>
    %32 = vector.extract_strided_slice %17 {offsets = [0, 384], sizes = [8, 128], strides = [1, 1]} : vector<8x512xf32> to vector<8x128xf32>
    %33 = arith.negf %32 : vector<8x128xf32>
    %34 = math.exp %33 : vector<8x128xf32>
    %cst_17 = arith.constant 1.000000e+00 : f32
    %35 = vector.broadcast %cst_17 : f32 to vector<8x128xf32>
    %36 = arith.addf %35, %34 : vector<8x128xf32>
    %37 = arith.divf %35, %36 : vector<8x128xf32>
    %c0_18 = arith.constant 0 : index
    %c0_19 = arith.constant 0 : index
    %38 = vector.load %arg16[%c0_18, %c0_19] : memref<8x128xf32, #tpu.memory_space<vmem>>, vector<8x128xf32>
    %39 = arith.mulf %29, %38 : vector<8x128xf32>
    %40 = arith.mulf %23, %31 : vector<8x128xf32>
    %41 = arith.addf %39, %40 : vector<8x128xf32>
    %42 = math.tanh %41 : vector<8x128xf32>
    %43 = arith.mulf %37, %42 : vector<8x128xf32>
    %c0_20 = arith.constant 0 : index
    %c0_21 = arith.constant 0 : index
    %44 = vector.load %arg16[%c0_20, %c0_21] : memref<8x128xf32, #tpu.memory_space<vmem>>, vector<8x128xf32>
    tpu.vector_store %arg16[%c0_20, %c0_21], %41 {strides = array<i32>} : memref<8x128xf32, #tpu.memory_space<vmem>>, vector<8x128xf32>,
    %c0_22 = arith.constant 0 : index
    %c0_23 = arith.constant 0 : index
    %45 = vector.load %arg15[%c0_22, %c0_23] : memref<8x128xf32, #tpu.memory_space<vmem>>, vector<8x128xf32>
    tpu.vector_store %arg15[%c0_22, %c0_23], %43 {strides = array<i32>} : memref<8x128xf32, #tpu.memory_space<vmem>>, vector<8x128xf32>,
    %46 = arith.index_cast %11 : i32 to index
    %c0_24 = arith.constant 0 : index
    %47 = vector.load %arg20[%46, %c0_24] : memref<32x128xf32, #tpu.memory_space<vmem>>, vector<8x128xf32>
    tpu.vector_store %arg20[%46, %c0_24], %43 {strides = array<i32>} : memref<32x128xf32, #tpu.memory_space<vmem>>, vector<8x128xf32>,
    %c1_i32 = arith.constant 1 : i32
    %c8_i32_25 = arith.constant 8 : i32
    %48 = arith.muli %c1_i32, %c8_i32_25 : i32
    %49 = tpu.assume_multiple %48, 8 : i32
    %50 = arith.index_cast %49 : i32 to index
    %c0_26 = arith.constant 0 : index
    %51 = vector.load %arg19[%50, %c0_26] : memref<32x512xf32, #tpu.memory_space<vmem>>, vector<8x512xf32>
    %c0_27 = arith.constant 0 : index
    %c0_28 = arith.constant 0 : index
    %52 = vector.load %arg15[%c0_27, %c0_28] : memref<8x128xf32, #tpu.memory_space<vmem>>, vector<8x128xf32>
    %c0_29 = arith.constant 0 : index
    %c0_30 = arith.constant 0 : index
    %53 = vector.load %arg3[%c0_29, %c0_30] : memref<128x512xf32, #tpu.memory_space<vmem>>, vector<128x512xf32>
    %cst_31 = arith.constant dense<0.000000e+00> : vector<8x512xf32>
    %54 = tpu.matmul %52, %53, %cst_31 {dimension_numbers = #tpu.dot_dimension_numbers<[1], [0], [0], [1], [0, 0, 1, 1], [], []>} : vector<8x128xf32>, vector<128x512xf32>, vector<8x512xf32> -> vector<8x512xf32>
    %55 = arith.addf %51, %54 : vector<8x512xf32>
    %56 = vector.extract_strided_slice %55 {offsets = [0, 0], sizes = [8, 128], strides = [1, 1]} : vector<8x512xf32> to vector<8x128xf32>
    %57 = arith.negf %56 : vector<8x128xf32>
    %58 = math.exp %57 : vector<8x128xf32>
    %cst_32 = arith.constant 1.000000e+00 : f32
    %59 = vector.broadcast %cst_32 : f32 to vector<8x128xf32>
    %60 = arith.addf %59, %58 : vector<8x128xf32>
    %61 = arith.divf %59, %60 : vector<8x128xf32>
    %62 = vector.extract_strided_slice %55 {offsets = [0, 128], sizes = [8, 128], strides = [1, 1]} : vector<8x512xf32> to vector<8x128xf32>
    %63 = arith.negf %62 : vector<8x128xf32>
    %64 = math.exp %63 : vector<8x128xf32>
    %cst_33 = arith.constant 1.000000e+00 : f32
    %65 = vector.broadcast %cst_33 : f32 to vector<8x128xf32>
    %66 = arith.addf %65, %64 : vector<8x128xf32>
    %67 = arith.divf %65, %66 : vector<8x128xf32>
    %68 = vector.extract_strided_slice %55 {offsets = [0, 256], sizes = [8, 128], strides = [1, 1]} : vector<8x512xf32> to vector<8x128xf32>
    %69 = math.tanh %68 : vector<8x128xf32>
    %70 = vector.extract_strided_slice %55 {offsets = [0, 384], sizes = [8, 128], strides = [1, 1]} : vector<8x512xf32> to vector<8x128xf32>
    %71 = arith.negf %70 : vector<8x128xf32>
    %72 = math.exp %71 : vector<8x128xf32>
    %cst_34 = arith.constant 1.000000e+00 : f32
    %73 = vector.broadcast %cst_34 : f32 to vector<8x128xf32>
    %74 = arith.addf %73, %72 : vector<8x128xf32>
    %75 = arith.divf %73, %74 : vector<8x128xf32>
    %c0_35 = arith.constant 0 : index
    %c0_36 = arith.constant 0 : index
    %76 = vector.load %arg16[%c0_35, %c0_36] : memref<8x128xf32, #tpu.memory_space<vmem>>, vector<8x128xf32>
    %77 = arith.mulf %67, %76 : vector<8x128xf32>
    %78 = arith.mulf %61, %69 : vector<8x128xf32>
    %79 = arith.addf %77, %78 : vector<8x128xf32>
    %80 = math.tanh %79 : vector<8x128xf32>
    %81 = arith.mulf %75, %80 : vector<8x128xf32>
    %c0_37 = arith.constant 0 : index
    %c0_38 = arith.constant 0 : index
    %82 = vector.load %arg16[%c0_37, %c0_38] : memref<8x128xf32, #tpu.memory_space<vmem>>, vector<8x128xf32>
    tpu.vector_store %arg16[%c0_37, %c0_38], %79 {strides = array<i32>} : memref<8x128xf32, #tpu.memory_space<vmem>>, vector<8x128xf32>,
    %c0_39 = arith.constant 0 : index
    %c0_40 = arith.constant 0 : index
    %83 = vector.load %arg15[%c0_39, %c0_40] : memref<8x128xf32, #tpu.memory_space<vmem>>, vector<8x128xf32>
    tpu.vector_store %arg15[%c0_39, %c0_40], %81 {strides = array<i32>} : memref<8x128xf32, #tpu.memory_space<vmem>>, vector<8x128xf32>,
    %84 = arith.index_cast %49 : i32 to index
    %c0_41 = arith.constant 0 : index
    %85 = vector.load %arg20[%84, %c0_41] : memref<32x128xf32, #tpu.memory_space<vmem>>, vector<8x128xf32>
    tpu.vector_store %arg20[%84, %c0_41], %81 {strides = array<i32>} : memref<32x128xf32, #tpu.memory_space<vmem>>, vector<8x128xf32>,
    %c2_i32 = arith.constant 2 : i32
    %c8_i32_42 = arith.constant 8 : i32
    %86 = arith.muli %c2_i32, %c8_i32_42 : i32
    %87 = tpu.assume_multiple %86, 8 : i32
    %88 = arith.index_cast %87 : i32 to index
    %c0_43 = arith.constant 0 : index
    %89 = vector.load %arg19[%88, %c0_43] : memref<32x512xf32, #tpu.memory_space<vmem>>, vector<8x512xf32>
    %c0_44 = arith.constant 0 : index
    %c0_45 = arith.constant 0 : index
    %90 = vector.load %arg15[%c0_44, %c0_45] : memref<8x128xf32, #tpu.memory_space<vmem>>, vector<8x128xf32>
    %c0_46 = arith.constant 0 : index
    %c0_47 = arith.constant 0 : index
    %91 = vector.load %arg3[%c0_46, %c0_47] : memref<128x512xf32, #tpu.memory_space<vmem>>, vector<128x512xf32>
    %cst_48 = arith.constant dense<0.000000e+00> : vector<8x512xf32>
    %92 = tpu.matmul %90, %91, %cst_48 {dimension_numbers = #tpu.dot_dimension_numbers<[1], [0], [0], [1], [0, 0, 1, 1], [], []>} : vector<8x128xf32>, vector<128x512xf32>, vector<8x512xf32> -> vector<8x512xf32>
    %93 = arith.addf %89, %92 : vector<8x512xf32>
    %94 = vector.extract_strided_slice %93 {offsets = [0, 0], sizes = [8, 128], strides = [1, 1]} : vector<8x512xf32> to vector<8x128xf32>
    %95 = arith.negf %94 : vector<8x128xf32>
    %96 = math.exp %95 : vector<8x128xf32>
    %cst_49 = arith.constant 1.000000e+00 : f32
    %97 = vector.broadcast %cst_49 : f32 to vector<8x128xf32>
    %98 = arith.addf %97, %96 : vector<8x128xf32>
    %99 = arith.divf %97, %98 : vector<8x128xf32>
    %100 = vector.extract_strided_slice %93 {offsets = [0, 128], sizes = [8, 128], strides = [1, 1]} : vector<8x512xf32> to vector<8x128xf32>
    %101 = arith.negf %100 : vector<8x128xf32>
    %102 = math.exp %101 : vector<8x128xf32>
    %cst_50 = arith.constant 1.000000e+00 : f32
    %103 = vector.broadcast %cst_50 : f32 to vector<8x128xf32>
    %104 = arith.addf %103, %102 : vector<8x128xf32>
    %105 = arith.divf %103, %104 : vector<8x128xf32>
    %106 = vector.extract_strided_slice %93 {offsets = [0, 256], sizes = [8, 128], strides = [1, 1]} : vector<8x512xf32> to vector<8x128xf32>
    %107 = math.tanh %106 : vector<8x128xf32>
    %108 = vector.extract_strided_slice %93 {offsets = [0, 384], sizes = [8, 128], strides = [1, 1]} : vector<8x512xf32> to vector<8x128xf32>
    %109 = arith.negf %108 : vector<8x128xf32>
    %110 = math.exp %109 : vector<8x128xf32>
    %cst_51 = arith.constant 1.000000e+00 : f32
    %111 = vector.broadcast %cst_51 : f32 to vector<8x128xf32>
    %112 = arith.addf %111, %110 : vector<8x128xf32>
    %113 = arith.divf %111, %112 : vector<8x128xf32>
    %c0_52 = arith.constant 0 : index
    %c0_53 = arith.constant 0 : index
    %114 = vector.load %arg16[%c0_52, %c0_53] : memref<8x128xf32, #tpu.memory_space<vmem>>, vector<8x128xf32>
    %115 = arith.mulf %105, %114 : vector<8x128xf32>
    %116 = arith.mulf %99, %107 : vector<8x128xf32>
    %117 = arith.addf %115, %116 : vector<8x128xf32>
    %118 = math.tanh %117 : vector<8x128xf32>
    %119 = arith.mulf %113, %118 : vector<8x128xf32>
    %c0_54 = arith.constant 0 : index
    %c0_55 = arith.constant 0 : index
    %120 = vector.load %arg16[%c0_54, %c0_55] : memref<8x128xf32, #tpu.memory_space<vmem>>, vector<8x128xf32>
    tpu.vector_store %arg16[%c0_54, %c0_55], %117 {strides = array<i32>} : memref<8x128xf32, #tpu.memory_space<vmem>>, vector<8x128xf32>,
    %c0_56 = arith.constant 0 : index
    %c0_57 = arith.constant 0 : index
    %121 = vector.load %arg15[%c0_56, %c0_57] : memref<8x128xf32, #tpu.memory_space<vmem>>, vector<8x128xf32>
    tpu.vector_store %arg15[%c0_56, %c0_57], %119 {strides = array<i32>} : memref<8x128xf32, #tpu.memory_space<vmem>>, vector<8x128xf32>,
    %122 = arith.index_cast %87 : i32 to index
    %c0_58 = arith.constant 0 : index
    %123 = vector.load %arg20[%122, %c0_58] : memref<32x128xf32, #tpu.memory_space<vmem>>, vector<8x128xf32>
    tpu.vector_store %arg20[%122, %c0_58], %119 {strides = array<i32>} : memref<32x128xf32, #tpu.memory_space<vmem>>, vector<8x128xf32>,
    %c3_i32 = arith.constant 3 : i32
    %c8_i32_59 = arith.constant 8 : i32
    %124 = arith.muli %c3_i32, %c8_i32_59 : i32
    %125 = tpu.assume_multiple %124, 8 : i32
    %126 = arith.index_cast %125 : i32 to index
    %c0_60 = arith.constant 0 : index
    %127 = vector.load %arg19[%126, %c0_60] : memref<32x512xf32, #tpu.memory_space<vmem>>, vector<8x512xf32>
    %c0_61 = arith.constant 0 : index
    %c0_62 = arith.constant 0 : index
    %128 = vector.load %arg15[%c0_61, %c0_62] : memref<8x128xf32, #tpu.memory_space<vmem>>, vector<8x128xf32>
    %c0_63 = arith.constant 0 : index
    %c0_64 = arith.constant 0 : index
    %129 = vector.load %arg3[%c0_63, %c0_64] : memref<128x512xf32, #tpu.memory_space<vmem>>, vector<128x512xf32>
    %cst_65 = arith.constant dense<0.000000e+00> : vector<8x512xf32>
    %130 = tpu.matmul %128, %129, %cst_65 {dimension_numbers = #tpu.dot_dimension_numbers<[1], [0], [0], [1], [0, 0, 1, 1], [], []>} : vector<8x128xf32>, vector<128x512xf32>, vector<8x512xf32> -> vector<8x512xf32>
    %131 = arith.addf %127, %130 : vector<8x512xf32>
    %132 = vector.extract_strided_slice %131 {offsets = [0, 0], sizes = [8, 128], strides = [1, 1]} : vector<8x512xf32> to vector<8x128xf32>
    %133 = arith.negf %132 : vector<8x128xf32>
    %134 = math.exp %133 : vector<8x128xf32>
    %cst_66 = arith.constant 1.000000e+00 : f32
    %135 = vector.broadcast %cst_66 : f32 to vector<8x128xf32>
    %136 = arith.addf %135, %134 : vector<8x128xf32>
    %137 = arith.divf %135, %136 : vector<8x128xf32>
    %138 = vector.extract_strided_slice %131 {offsets = [0, 128], sizes = [8, 128], strides = [1, 1]} : vector<8x512xf32> to vector<8x128xf32>
    %139 = arith.negf %138 : vector<8x128xf32>
    %140 = math.exp %139 : vector<8x128xf32>
    %cst_67 = arith.constant 1.000000e+00 : f32
    %141 = vector.broadcast %cst_67 : f32 to vector<8x128xf32>
    %142 = arith.addf %141, %140 : vector<8x128xf32>
    %143 = arith.divf %141, %142 : vector<8x128xf32>
    %144 = vector.extract_strided_slice %131 {offsets = [0, 256], sizes = [8, 128], strides = [1, 1]} : vector<8x512xf32> to vector<8x128xf32>
    %145 = math.tanh %144 : vector<8x128xf32>
    %146 = vector.extract_strided_slice %131 {offsets = [0, 384], sizes = [8, 128], strides = [1, 1]} : vector<8x512xf32> to vector<8x128xf32>
    %147 = arith.negf %146 : vector<8x128xf32>
    %148 = math.exp %147 : vector<8x128xf32>
    %cst_68 = arith.constant 1.000000e+00 : f32
    %149 = vector.broadcast %cst_68 : f32 to vector<8x128xf32>
    %150 = arith.addf %149, %148 : vector<8x128xf32>
    %151 = arith.divf %149, %150 : vector<8x128xf32>
    %c0_69 = arith.constant 0 : index
    %c0_70 = arith.constant 0 : index
    %152 = vector.load %arg16[%c0_69, %c0_70] : memref<8x128xf32, #tpu.memory_space<vmem>>, vector<8x128xf32>
    %153 = arith.mulf %143, %152 : vector<8x128xf32>
    %154 = arith.mulf %137, %145 : vector<8x128xf32>
    %155 = arith.addf %153, %154 : vector<8x128xf32>
    %156 = math.tanh %155 : vector<8x128xf32>
    %157 = arith.mulf %151, %156 : vector<8x128xf32>
    %c0_71 = arith.constant 0 : index
    %c0_72 = arith.constant 0 : index
    %158 = vector.load %arg16[%c0_71, %c0_72] : memref<8x128xf32, #tpu.memory_space<vmem>>, vector<8x128xf32>
    tpu.vector_store %arg16[%c0_71, %c0_72], %155 {strides = array<i32>} : memref<8x128xf32, #tpu.memory_space<vmem>>, vector<8x128xf32>,
    %c0_73 = arith.constant 0 : index
    %c0_74 = arith.constant 0 : index
    %159 = vector.load %arg15[%c0_73, %c0_74] : memref<8x128xf32, #tpu.memory_space<vmem>>, vector<8x128xf32>
    tpu.vector_store %arg15[%c0_73, %c0_74], %157 {strides = array<i32>} : memref<8x128xf32, #tpu.memory_space<vmem>>, vector<8x128xf32>,
    %160 = arith.index_cast %125 : i32 to index
    %c0_75 = arith.constant 0 : index
    %161 = vector.load %arg20[%160, %c0_75] : memref<32x128xf32, #tpu.memory_space<vmem>>, vector<8x128xf32>
    tpu.vector_store %arg20[%160, %c0_75], %157 {strides = array<i32>} : memref<32x128xf32, #tpu.memory_space<vmem>>, vector<8x128xf32>,
    %c4_i32 = arith.constant 4 : i32
    %c0_76 = arith.constant 0 : index
    %c0_77 = arith.constant 0 : index
    %162 = vector.load %arg20[%c0_76, %c0_77] : memref<32x128xf32, #tpu.memory_space<vmem>>, vector<32x128xf32>
    %c0_78 = arith.constant 0 : index
    %c0_79 = arith.constant 0 : index
    %163 = vector.load %arg5[%c0_78, %c0_79] : memref<128x512xf32, #tpu.memory_space<vmem>>, vector<128x512xf32>
    %cst_80 = arith.constant dense<0.000000e+00> : vector<32x512xf32>
    %164 = tpu.matmul %162, %163, %cst_80 {dimension_numbers = #tpu.dot_dimension_numbers<[1], [0], [0], [1], [0, 0, 1, 1], [], []>} : vector<32x128xf32>, vector<128x512xf32>, vector<32x512xf32> -> vector<32x512xf32>
    %c0_81 = arith.constant 0 : index
    %c0_82 = arith.constant 0 : index
    %165 = vector.load %arg7[%c0_81, %c0_82] : memref<1x512xf32, #tpu.memory_space<vmem>>, vector<1x512xf32>
    %166 = vector.broadcast %165 : vector<1x512xf32> to vector<32x512xf32>
    %167 = arith.addf %164, %166 : vector<32x512xf32>
    %c0_83 = arith.constant 0 : index
    %c0_84 = arith.constant 0 : index
    %168 = vector.load %arg19[%c0_83, %c0_84] : memref<32x512xf32, #tpu.memory_space<vmem>>, vector<32x512xf32>
    tpu.vector_store %arg19[%c0_83, %c0_84], %167 {strides = array<i32>} : memref<32x512xf32, #tpu.memory_space<vmem>>, vector<32x512xf32>,
    %c0_i32_85 = arith.constant 0 : i32
    %c8_i32_86 = arith.constant 8 : i32
    %169 = arith.muli %c0_i32_85, %c8_i32_86 : i32
    %170 = tpu.assume_multiple %169, 8 : i32
    %171 = arith.index_cast %170 : i32 to index
    %c0_87 = arith.constant 0 : index
    %172 = vector.load %arg19[%171, %c0_87] : memref<32x512xf32, #tpu.memory_space<vmem>>, vector<8x512xf32>
    %c0_88 = arith.constant 0 : index
    %c0_89 = arith.constant 0 : index
    %173 = vector.load %arg17[%c0_88, %c0_89] : memref<8x128xf32, #tpu.memory_space<vmem>>, vector<8x128xf32>
    %c0_90 = arith.constant 0 : index
    %c0_91 = arith.constant 0 : index
    %174 = vector.load %arg6[%c0_90, %c0_91] : memref<128x512xf32, #tpu.memory_space<vmem>>, vector<128x512xf32>
    %cst_92 = arith.constant dense<0.000000e+00> : vector<8x512xf32>
    %175 = tpu.matmul %173, %174, %cst_92 {dimension_numbers = #tpu.dot_dimension_numbers<[1], [0], [0], [1], [0, 0, 1, 1], [], []>} : vector<8x128xf32>, vector<128x512xf32>, vector<8x512xf32> -> vector<8x512xf32>
    %176 = arith.addf %172, %175 : vector<8x512xf32>
    %177 = vector.extract_strided_slice %176 {offsets = [0, 0], sizes = [8, 128], strides = [1, 1]} : vector<8x512xf32> to vector<8x128xf32>
    %178 = arith.negf %177 : vector<8x128xf32>
    %179 = math.exp %178 : vector<8x128xf32>
    %cst_93 = arith.constant 1.000000e+00 : f32
    %180 = vector.broadcast %cst_93 : f32 to vector<8x128xf32>
    %181 = arith.addf %180, %179 : vector<8x128xf32>
    %182 = arith.divf %180, %181 : vector<8x128xf32>
    %183 = vector.extract_strided_slice %176 {offsets = [0, 128], sizes = [8, 128], strides = [1, 1]} : vector<8x512xf32> to vector<8x128xf32>
    %184 = arith.negf %183 : vector<8x128xf32>
    %185 = math.exp %184 : vector<8x128xf32>
    %cst_94 = arith.constant 1.000000e+00 : f32
    %186 = vector.broadcast %cst_94 : f32 to vector<8x128xf32>
    %187 = arith.addf %186, %185 : vector<8x128xf32>
    %188 = arith.divf %186, %187 : vector<8x128xf32>
    %189 = vector.extract_strided_slice %176 {offsets = [0, 256], sizes = [8, 128], strides = [1, 1]} : vector<8x512xf32> to vector<8x128xf32>
    %190 = math.tanh %189 : vector<8x128xf32>
    %191 = vector.extract_strided_slice %176 {offsets = [0, 384], sizes = [8, 128], strides = [1, 1]} : vector<8x512xf32> to vector<8x128xf32>
    %192 = arith.negf %191 : vector<8x128xf32>
    %193 = math.exp %192 : vector<8x128xf32>
    %cst_95 = arith.constant 1.000000e+00 : f32
    %194 = vector.broadcast %cst_95 : f32 to vector<8x128xf32>
    %195 = arith.addf %194, %193 : vector<8x128xf32>
    %196 = arith.divf %194, %195 : vector<8x128xf32>
    %c0_96 = arith.constant 0 : index
    %c0_97 = arith.constant 0 : index
    %197 = vector.load %arg18[%c0_96, %c0_97] : memref<8x128xf32, #tpu.memory_space<vmem>>, vector<8x128xf32>
    %198 = arith.mulf %188, %197 : vector<8x128xf32>
    %199 = arith.mulf %182, %190 : vector<8x128xf32>
    %200 = arith.addf %198, %199 : vector<8x128xf32>
    %201 = math.tanh %200 : vector<8x128xf32>
    %202 = arith.mulf %196, %201 : vector<8x128xf32>
    %c0_98 = arith.constant 0 : index
    %c0_99 = arith.constant 0 : index
    %203 = vector.load %arg18[%c0_98, %c0_99] : memref<8x128xf32, #tpu.memory_space<vmem>>, vector<8x128xf32>
    tpu.vector_store %arg18[%c0_98, %c0_99], %200 {strides = array<i32>} : memref<8x128xf32, #tpu.memory_space<vmem>>, vector<8x128xf32>,
    %c0_100 = arith.constant 0 : index
    %c0_101 = arith.constant 0 : index
    %204 = vector.load %arg17[%c0_100, %c0_101] : memref<8x128xf32, #tpu.memory_space<vmem>>, vector<8x128xf32>
    tpu.vector_store %arg17[%c0_100, %c0_101], %202 {strides = array<i32>} : memref<8x128xf32, #tpu.memory_space<vmem>>, vector<8x128xf32>,
    %c1_i32_102 = arith.constant 1 : i32
    %c8_i32_103 = arith.constant 8 : i32
    %205 = arith.muli %c1_i32_102, %c8_i32_103 : i32
    %206 = tpu.assume_multiple %205, 8 : i32
    %207 = arith.index_cast %206 : i32 to index
    %c0_104 = arith.constant 0 : index
    %208 = vector.load %arg19[%207, %c0_104] : memref<32x512xf32, #tpu.memory_space<vmem>>, vector<8x512xf32>
    %c0_105 = arith.constant 0 : index
    %c0_106 = arith.constant 0 : index
    %209 = vector.load %arg17[%c0_105, %c0_106] : memref<8x128xf32, #tpu.memory_space<vmem>>, vector<8x128xf32>
    %c0_107 = arith.constant 0 : index
    %c0_108 = arith.constant 0 : index
    %210 = vector.load %arg6[%c0_107, %c0_108] : memref<128x512xf32, #tpu.memory_space<vmem>>, vector<128x512xf32>
    %cst_109 = arith.constant dense<0.000000e+00> : vector<8x512xf32>
    %211 = tpu.matmul %209, %210, %cst_109 {dimension_numbers = #tpu.dot_dimension_numbers<[1], [0], [0], [1], [0, 0, 1, 1], [], []>} : vector<8x128xf32>, vector<128x512xf32>, vector<8x512xf32> -> vector<8x512xf32>
    %212 = arith.addf %208, %211 : vector<8x512xf32>
    %213 = vector.extract_strided_slice %212 {offsets = [0, 0], sizes = [8, 128], strides = [1, 1]} : vector<8x512xf32> to vector<8x128xf32>
    %214 = arith.negf %213 : vector<8x128xf32>
    %215 = math.exp %214 : vector<8x128xf32>
    %cst_110 = arith.constant 1.000000e+00 : f32
    %216 = vector.broadcast %cst_110 : f32 to vector<8x128xf32>
    %217 = arith.addf %216, %215 : vector<8x128xf32>
    %218 = arith.divf %216, %217 : vector<8x128xf32>
    %219 = vector.extract_strided_slice %212 {offsets = [0, 128], sizes = [8, 128], strides = [1, 1]} : vector<8x512xf32> to vector<8x128xf32>
    %220 = arith.negf %219 : vector<8x128xf32>
    %221 = math.exp %220 : vector<8x128xf32>
    %cst_111 = arith.constant 1.000000e+00 : f32
    %222 = vector.broadcast %cst_111 : f32 to vector<8x128xf32>
    %223 = arith.addf %222, %221 : vector<8x128xf32>
    %224 = arith.divf %222, %223 : vector<8x128xf32>
    %225 = vector.extract_strided_slice %212 {offsets = [0, 256], sizes = [8, 128], strides = [1, 1]} : vector<8x512xf32> to vector<8x128xf32>
    %226 = math.tanh %225 : vector<8x128xf32>
    %227 = vector.extract_strided_slice %212 {offsets = [0, 384], sizes = [8, 128], strides = [1, 1]} : vector<8x512xf32> to vector<8x128xf32>
    %228 = arith.negf %227 : vector<8x128xf32>
    %229 = math.exp %228 : vector<8x128xf32>
    %cst_112 = arith.constant 1.000000e+00 : f32
    %230 = vector.broadcast %cst_112 : f32 to vector<8x128xf32>
    %231 = arith.addf %230, %229 : vector<8x128xf32>
    %232 = arith.divf %230, %231 : vector<8x128xf32>
    %c0_113 = arith.constant 0 : index
    %c0_114 = arith.constant 0 : index
    %233 = vector.load %arg18[%c0_113, %c0_114] : memref<8x128xf32, #tpu.memory_space<vmem>>, vector<8x128xf32>
    %234 = arith.mulf %224, %233 : vector<8x128xf32>
    %235 = arith.mulf %218, %226 : vector<8x128xf32>
    %236 = arith.addf %234, %235 : vector<8x128xf32>
    %237 = math.tanh %236 : vector<8x128xf32>
    %238 = arith.mulf %232, %237 : vector<8x128xf32>
    %c0_115 = arith.constant 0 : index
    %c0_116 = arith.constant 0 : index
    %239 = vector.load %arg18[%c0_115, %c0_116] : memref<8x128xf32, #tpu.memory_space<vmem>>, vector<8x128xf32>
    tpu.vector_store %arg18[%c0_115, %c0_116], %236 {strides = array<i32>} : memref<8x128xf32, #tpu.memory_space<vmem>>, vector<8x128xf32>,
    %c0_117 = arith.constant 0 : index
    %c0_118 = arith.constant 0 : index
    %240 = vector.load %arg17[%c0_117, %c0_118] : memref<8x128xf32, #tpu.memory_space<vmem>>, vector<8x128xf32>
    tpu.vector_store %arg17[%c0_117, %c0_118], %238 {strides = array<i32>} : memref<8x128xf32, #tpu.memory_space<vmem>>, vector<8x128xf32>,
    %c2_i32_119 = arith.constant 2 : i32
    %c8_i32_120 = arith.constant 8 : i32
    %241 = arith.muli %c2_i32_119, %c8_i32_120 : i32
    %242 = tpu.assume_multiple %241, 8 : i32
    %243 = arith.index_cast %242 : i32 to index
    %c0_121 = arith.constant 0 : index
    %244 = vector.load %arg19[%243, %c0_121] : memref<32x512xf32, #tpu.memory_space<vmem>>, vector<8x512xf32>
    %c0_122 = arith.constant 0 : index
    %c0_123 = arith.constant 0 : index
    %245 = vector.load %arg17[%c0_122, %c0_123] : memref<8x128xf32, #tpu.memory_space<vmem>>, vector<8x128xf32>
    %c0_124 = arith.constant 0 : index
    %c0_125 = arith.constant 0 : index
    %246 = vector.load %arg6[%c0_124, %c0_125] : memref<128x512xf32, #tpu.memory_space<vmem>>, vector<128x512xf32>
    %cst_126 = arith.constant dense<0.000000e+00> : vector<8x512xf32>
    %247 = tpu.matmul %245, %246, %cst_126 {dimension_numbers = #tpu.dot_dimension_numbers<[1], [0], [0], [1], [0, 0, 1, 1], [], []>} : vector<8x128xf32>, vector<128x512xf32>, vector<8x512xf32> -> vector<8x512xf32>
    %248 = arith.addf %244, %247 : vector<8x512xf32>
    %249 = vector.extract_strided_slice %248 {offsets = [0, 0], sizes = [8, 128], strides = [1, 1]} : vector<8x512xf32> to vector<8x128xf32>
    %250 = arith.negf %249 : vector<8x128xf32>
    %251 = math.exp %250 : vector<8x128xf32>
    %cst_127 = arith.constant 1.000000e+00 : f32
    %252 = vector.broadcast %cst_127 : f32 to vector<8x128xf32>
    %253 = arith.addf %252, %251 : vector<8x128xf32>
    %254 = arith.divf %252, %253 : vector<8x128xf32>
    %255 = vector.extract_strided_slice %248 {offsets = [0, 128], sizes = [8, 128], strides = [1, 1]} : vector<8x512xf32> to vector<8x128xf32>
    %256 = arith.negf %255 : vector<8x128xf32>
    %257 = math.exp %256 : vector<8x128xf32>
    %cst_128 = arith.constant 1.000000e+00 : f32
    %258 = vector.broadcast %cst_128 : f32 to vector<8x128xf32>
    %259 = arith.addf %258, %257 : vector<8x128xf32>
    %260 = arith.divf %258, %259 : vector<8x128xf32>
    %261 = vector.extract_strided_slice %248 {offsets = [0, 256], sizes = [8, 128], strides = [1, 1]} : vector<8x512xf32> to vector<8x128xf32>
    %262 = math.tanh %261 : vector<8x128xf32>
    %263 = vector.extract_strided_slice %248 {offsets = [0, 384], sizes = [8, 128], strides = [1, 1]} : vector<8x512xf32> to vector<8x128xf32>
    %264 = arith.negf %263 : vector<8x128xf32>
    %265 = math.exp %264 : vector<8x128xf32>
    %cst_129 = arith.constant 1.000000e+00 : f32
    %266 = vector.broadcast %cst_129 : f32 to vector<8x128xf32>
    %267 = arith.addf %266, %265 : vector<8x128xf32>
    %268 = arith.divf %266, %267 : vector<8x128xf32>
    %c0_130 = arith.constant 0 : index
    %c0_131 = arith.constant 0 : index
    %269 = vector.load %arg18[%c0_130, %c0_131] : memref<8x128xf32, #tpu.memory_space<vmem>>, vector<8x128xf32>
    %270 = arith.mulf %260, %269 : vector<8x128xf32>
    %271 = arith.mulf %254, %262 : vector<8x128xf32>
    %272 = arith.addf %270, %271 : vector<8x128xf32>
    %273 = math.tanh %272 : vector<8x128xf32>
    %274 = arith.mulf %268, %273 : vector<8x128xf32>
    %c0_132 = arith.constant 0 : index
    %c0_133 = arith.constant 0 : index
    %275 = vector.load %arg18[%c0_132, %c0_133] : memref<8x128xf32, #tpu.memory_space<vmem>>, vector<8x128xf32>
    tpu.vector_store %arg18[%c0_132, %c0_133], %272 {strides = array<i32>} : memref<8x128xf32, #tpu.memory_space<vmem>>, vector<8x128xf32>,
    %c0_134 = arith.constant 0 : index
    %c0_135 = arith.constant 0 : index
    %276 = vector.load %arg17[%c0_134, %c0_135] : memref<8x128xf32, #tpu.memory_space<vmem>>, vector<8x128xf32>
    tpu.vector_store %arg17[%c0_134, %c0_135], %274 {strides = array<i32>} : memref<8x128xf32, #tpu.memory_space<vmem>>, vector<8x128xf32>,
    %c3_i32_136 = arith.constant 3 : i32
    %c8_i32_137 = arith.constant 8 : i32
    %277 = arith.muli %c3_i32_136, %c8_i32_137 : i32
    %278 = tpu.assume_multiple %277, 8 : i32
    %279 = arith.index_cast %278 : i32 to index
    %c0_138 = arith.constant 0 : index
    %280 = vector.load %arg19[%279, %c0_138] : memref<32x512xf32, #tpu.memory_space<vmem>>, vector<8x512xf32>
    %c0_139 = arith.constant 0 : index
    %c0_140 = arith.constant 0 : index
    %281 = vector.load %arg17[%c0_139, %c0_140] : memref<8x128xf32, #tpu.memory_space<vmem>>, vector<8x128xf32>
    %c0_141 = arith.constant 0 : index
    %c0_142 = arith.constant 0 : index
    %282 = vector.load %arg6[%c0_141, %c0_142] : memref<128x512xf32, #tpu.memory_space<vmem>>, vector<128x512xf32>
    %cst_143 = arith.constant dense<0.000000e+00> : vector<8x512xf32>
    %283 = tpu.matmul %281, %282, %cst_143 {dimension_numbers = #tpu.dot_dimension_numbers<[1], [0], [0], [1], [0, 0, 1, 1], [], []>} : vector<8x128xf32>, vector<128x512xf32>, vector<8x512xf32> -> vector<8x512xf32>
    %284 = arith.addf %280, %283 : vector<8x512xf32>
    %285 = vector.extract_strided_slice %284 {offsets = [0, 0], sizes = [8, 128], strides = [1, 1]} : vector<8x512xf32> to vector<8x128xf32>
    %286 = arith.negf %285 : vector<8x128xf32>
    %287 = math.exp %286 : vector<8x128xf32>
    %cst_144 = arith.constant 1.000000e+00 : f32
    %288 = vector.broadcast %cst_144 : f32 to vector<8x128xf32>
    %289 = arith.addf %288, %287 : vector<8x128xf32>
    %290 = arith.divf %288, %289 : vector<8x128xf32>
    %291 = vector.extract_strided_slice %284 {offsets = [0, 128], sizes = [8, 128], strides = [1, 1]} : vector<8x512xf32> to vector<8x128xf32>
    %292 = arith.negf %291 : vector<8x128xf32>
    %293 = math.exp %292 : vector<8x128xf32>
    %cst_145 = arith.constant 1.000000e+00 : f32
    %294 = vector.broadcast %cst_145 : f32 to vector<8x128xf32>
    %295 = arith.addf %294, %293 : vector<8x128xf32>
    %296 = arith.divf %294, %295 : vector<8x128xf32>
    %297 = vector.extract_strided_slice %284 {offsets = [0, 256], sizes = [8, 128], strides = [1, 1]} : vector<8x512xf32> to vector<8x128xf32>
    %298 = math.tanh %297 : vector<8x128xf32>
    %299 = vector.extract_strided_slice %284 {offsets = [0, 384], sizes = [8, 128], strides = [1, 1]} : vector<8x512xf32> to vector<8x128xf32>
    %300 = arith.negf %299 : vector<8x128xf32>
    %301 = math.exp %300 : vector<8x128xf32>
    %cst_146 = arith.constant 1.000000e+00 : f32
    %302 = vector.broadcast %cst_146 : f32 to vector<8x128xf32>
    %303 = arith.addf %302, %301 : vector<8x128xf32>
    %304 = arith.divf %302, %303 : vector<8x128xf32>
    %c0_147 = arith.constant 0 : index
    %c0_148 = arith.constant 0 : index
    %305 = vector.load %arg18[%c0_147, %c0_148] : memref<8x128xf32, #tpu.memory_space<vmem>>, vector<8x128xf32>
    %306 = arith.mulf %296, %305 : vector<8x128xf32>
    %307 = arith.mulf %290, %298 : vector<8x128xf32>
    %308 = arith.addf %306, %307 : vector<8x128xf32>
    %309 = math.tanh %308 : vector<8x128xf32>
    %310 = arith.mulf %304, %309 : vector<8x128xf32>
    %c0_149 = arith.constant 0 : index
    %c0_150 = arith.constant 0 : index
    %311 = vector.load %arg18[%c0_149, %c0_150] : memref<8x128xf32, #tpu.memory_space<vmem>>, vector<8x128xf32>
    tpu.vector_store %arg18[%c0_149, %c0_150], %308 {strides = array<i32>} : memref<8x128xf32, #tpu.memory_space<vmem>>, vector<8x128xf32>,
    %c0_151 = arith.constant 0 : index
    %c0_152 = arith.constant 0 : index
    %312 = vector.load %arg17[%c0_151, %c0_152] : memref<8x128xf32, #tpu.memory_space<vmem>>, vector<8x128xf32>
    tpu.vector_store %arg17[%c0_151, %c0_152], %310 {strides = array<i32>} : memref<8x128xf32, #tpu.memory_space<vmem>>, vector<8x128xf32>,
    %c4_i32_153 = arith.constant 4 : i32
    %c1_i32_154 = arith.constant 1 : i32
    %313 = arith.cmpi eq, %arg0, %c1_i32_154 : i32
    %314 = arith.extui %313 : i1 to i32
    %c0_i32_155 = arith.constant 0 : i32
    %315 = arith.cmpi ne, %314, %c0_i32_155 : i32
    scf.if %315 {
      %c0_156 = arith.constant 0 : index
      %c0_157 = arith.constant 0 : index
      %316 = vector.load %arg15[%c0_156, %c0_157] : memref<8x128xf32, #tpu.memory_space<vmem>>, vector<8x128xf32>
      %c0_158 = arith.constant 0 : index
      %c0_159 = arith.constant 0 : index
      %c0_160 = arith.constant 0 : index
      %317 = vector.load %arg13[%c0_158, %c0_159, %c0_160] : memref<2x8x128xf32, #tpu.memory_space<vmem>>, vector<1x8x128xf32>
      %318 = vector.shape_cast %317 : vector<1x8x128xf32> to vector<8x128xf32>
      %319 = vector.shape_cast %316 : vector<8x128xf32> to vector<1x8x128xf32>
      tpu.vector_store %arg13[%c0_158, %c0_159, %c0_160], %319 {strides = array<i32>} : memref<2x8x128xf32, #tpu.memory_space<vmem>>, vector<1x8x128xf32>,
      %c0_161 = arith.constant 0 : index
      %c0_162 = arith.constant 0 : index
      %320 = vector.load %arg17[%c0_161, %c0_162] : memref<8x128xf32, #tpu.memory_space<vmem>>, vector<8x128xf32>
      %c1 = arith.constant 1 : index
      %c0_163 = arith.constant 0 : index
      %c0_164 = arith.constant 0 : index
      %321 = vector.load %arg13[%c1, %c0_163, %c0_164] : memref<2x8x128xf32, #tpu.memory_space<vmem>>, vector<1x8x128xf32>
      %322 = vector.shape_cast %321 : vector<1x8x128xf32> to vector<8x128xf32>
      %323 = vector.shape_cast %320 : vector<8x128xf32> to vector<1x8x128xf32>
      tpu.vector_store %arg13[%c1, %c0_163, %c0_164], %323 {strides = array<i32>} : memref<2x8x128xf32, #tpu.memory_space<vmem>>, vector<1x8x128xf32>,
      %c0_165 = arith.constant 0 : index
      %c0_166 = arith.constant 0 : index
      %324 = vector.load %arg16[%c0_165, %c0_166] : memref<8x128xf32, #tpu.memory_space<vmem>>, vector<8x128xf32>
      %c0_167 = arith.constant 0 : index
      %c0_168 = arith.constant 0 : index
      %c0_169 = arith.constant 0 : index
      %325 = vector.load %arg14[%c0_167, %c0_168, %c0_169] : memref<2x8x128xf32, #tpu.memory_space<vmem>>, vector<1x8x128xf32>
      %326 = vector.shape_cast %325 : vector<1x8x128xf32> to vector<8x128xf32>
      %327 = vector.shape_cast %324 : vector<8x128xf32> to vector<1x8x128xf32>
      tpu.vector_store %arg14[%c0_167, %c0_168, %c0_169], %327 {strides = array<i32>} : memref<2x8x128xf32, #tpu.memory_space<vmem>>, vector<1x8x128xf32>,
      %c0_170 = arith.constant 0 : index
      %c0_171 = arith.constant 0 : index
      %328 = vector.load %arg18[%c0_170, %c0_171] : memref<8x128xf32, #tpu.memory_space<vmem>>, vector<8x128xf32>
      %c1_172 = arith.constant 1 : index
      %c0_173 = arith.constant 0 : index
      %c0_174 = arith.constant 0 : index
      %329 = vector.load %arg14[%c1_172, %c0_173, %c0_174] : memref<2x8x128xf32, #tpu.memory_space<vmem>>, vector<1x8x128xf32>
      %330 = vector.shape_cast %329 : vector<1x8x128xf32> to vector<8x128xf32>
      %331 = vector.shape_cast %328 : vector<8x128xf32> to vector<1x8x128xf32>
      tpu.vector_store %arg14[%c1_172, %c0_173, %c0_174], %331 {strides = array<i32>} : memref<2x8x128xf32, #tpu.memory_space<vmem>>, vector<1x8x128xf32>,
      %c0_175 = arith.constant 0 : index
      %c0_176 = arith.constant 0 : index
      %332 = vector.load %arg17[%c0_175, %c0_176] : memref<8x128xf32, #tpu.memory_space<vmem>>, vector<8x128xf32>
      %c0_177 = arith.constant 0 : index
      %c0_178 = arith.constant 0 : index
      %333 = vector.load %arg10[%c0_177, %c0_178] : memref<128x128xf32, #tpu.memory_space<vmem>>, vector<128x128xf32>
      %cst_179 = arith.constant dense<0.000000e+00> : vector<8x128xf32>
      %334 = tpu.matmul %332, %333, %cst_179 {dimension_numbers = #tpu.dot_dimension_numbers<[1], [0], [0], [1], [0, 0, 1, 1], [], []>} : vector<8x128xf32>, vector<128x128xf32>, vector<8x128xf32> -> vector<8x128xf32>
      %c0_180 = arith.constant 0 : index
      %c0_181 = arith.constant 0 : index
      %335 = vector.load %arg11[%c0_180, %c0_181] : memref<1x128xf32, #tpu.memory_space<vmem>>, vector<1x128xf32>
      %336 = vector.broadcast %335 : vector<1x128xf32> to vector<8x128xf32>
      %337 = arith.addf %334, %336 : vector<8x128xf32>
      %c0_182 = arith.constant 0 : index
      %c0_183 = arith.constant 0 : index
      %338 = vector.load %arg12[%c0_182, %c0_183] : memref<8x128xf32, #tpu.memory_space<vmem>>, vector<8x128xf32>
      tpu.vector_store %arg12[%c0_182, %c0_183], %337 {strides = array<i32>} : memref<8x128xf32, #tpu.memory_space<vmem>>, vector<8x128xf32>,
    } else {
    }
    return
  }
  func.func @transform_0(%arg0: i32) -> (i32, i32) {
    %c0_i32 = arith.constant 0 : i32
    %c0_i32_0 = arith.constant 0 : i32
    return %arg0, %c0_i32 : i32, i32
  }
  func.func @transform_1(%arg0: i32) -> (i32, i32) {
    %c0_i32 = arith.constant 0 : i32
    %c0_i32_0 = arith.constant 0 : i32
    %c0_i32_1 = arith.constant 0 : i32
    return %c0_i32, %c0_i32_0 : i32, i32
  }
  func.func @transform_2(%arg0: i32) -> (i32, i32) {
    %c0_i32 = arith.constant 0 : i32
    %c0_i32_0 = arith.constant 0 : i32
    %c0_i32_1 = arith.constant 0 : i32
    return %c0_i32, %c0_i32_0 : i32, i32
  }
  func.func @transform_3(%arg0: i32) -> (i32, i32) {
    %c0_i32 = arith.constant 0 : i32
    %c0_i32_0 = arith.constant 0 : i32
    %c0_i32_1 = arith.constant 0 : i32
    return %c0_i32, %c0_i32_0 : i32, i32
  }
  func.func @transform_4(%arg0: i32) -> (i32, i32) {
    %c0_i32 = arith.constant 0 : i32
    %c0_i32_0 = arith.constant 0 : i32
    %c0_i32_1 = arith.constant 0 : i32
    return %c0_i32, %c0_i32_0 : i32, i32
  }
  func.func @transform_5(%arg0: i32) -> (i32, i32) {
    %c0_i32 = arith.constant 0 : i32
    %c0_i32_0 = arith.constant 0 : i32
    %c0_i32_1 = arith.constant 0 : i32
    return %c0_i32, %c0_i32_0 : i32, i32
  }
  func.func @transform_6(%arg0: i32) -> (i32, i32) {
    %c0_i32 = arith.constant 0 : i32
    %c0_i32_0 = arith.constant 0 : i32
    %c0_i32_1 = arith.constant 0 : i32
    return %c0_i32, %c0_i32_0 : i32, i32
  }
  func.func @transform_7(%arg0: i32) -> (i32, i32, i32) {
    %c0_i32 = arith.constant 0 : i32
    %c0_i32_0 = arith.constant 0 : i32
    %c0_i32_1 = arith.constant 0 : i32
    %c0_i32_2 = arith.constant 0 : i32
    return %c0_i32, %c0_i32_0, %c0_i32_1 : i32, i32, i32
  }
  func.func @transform_8(%arg0: i32) -> (i32, i32, i32) {
    %c0_i32 = arith.constant 0 : i32
    %c0_i32_0 = arith.constant 0 : i32
    %c0_i32_1 = arith.constant 0 : i32
    %c0_i32_2 = arith.constant 0 : i32
    return %c0_i32, %c0_i32_0, %c0_i32_1 : i32, i32, i32
  }
  func.func @transform_9(%arg0: i32) -> (i32, i32) {
    %c0_i32 = arith.constant 0 : i32
    %c0_i32_0 = arith.constant 0 : i32
    %c0_i32_1 = arith.constant 0 : i32
    return %c0_i32, %c0_i32_0 : i32, i32
  }
  func.func @transform_10(%arg0: i32) -> (i32, i32) {
    %c0_i32 = arith.constant 0 : i32
    %c0_i32_0 = arith.constant 0 : i32
    %c0_i32_1 = arith.constant 0 : i32
    return %c0_i32, %c0_i32_0 : i32, i32
  }
  func.func @transform_11(%arg0: i32) -> (i32, i32) {
    %c0_i32 = arith.constant 0 : i32
    %c0_i32_0 = arith.constant 0 : i32
    %c0_i32_1 = arith.constant 0 : i32
    return %c0_i32, %c0_i32_0 : i32, i32
  }
  func.func @transform_12(%arg0: i32) -> (i32, i32, i32) {
    %c0_i32 = arith.constant 0 : i32
    %c0_i32_0 = arith.constant 0 : i32
    %c0_i32_1 = arith.constant 0 : i32
    %c0_i32_2 = arith.constant 0 : i32
    return %c0_i32, %c0_i32_0, %c0_i32_1 : i32, i32, i32
  }
  func.func @transform_13(%arg0: i32) -> (i32, i32, i32) {
    %c0_i32 = arith.constant 0 : i32
    %c0_i32_0 = arith.constant 0 : i32
    %c0_i32_1 = arith.constant 0 : i32
    %c0_i32_2 = arith.constant 0 : i32
    return %c0_i32, %c0_i32_0, %c0_i32_1 : i32, i32, i32
  }
}

</mosaic_0001>

<bundles_post_ra>
// kernel: lstm_model_forward.1
= control target key start
LH: loop header
LB: loop body
LE: loop exit
PB: predicated region body
PF: predicated region fallthrough
CT: control target
= control target key end

     0   :  { %s3401_s25 = smov 0   ;;  %s5216_s0 = inlined_call_operand.vmem [shape: f32[64,4], index: 0, kind: input, shape index: {}]   ;;  %s5217_s1 = inlined_call_operand.vmem [shape: f32[4,512], index: 1, kind: input, shape index: {}]   ;;  %s5218_s2 = inlined_call_operand.vmem [shape: f32[128,512], index: 2, kind: input, shape index: {}]   ;;  %s5219_s3 = inlined_call_operand.vmem [shape: f32[1,512], index: 3, kind: input, shape index: {}]   ;;  %s5220_s4 = inlined_call_operand.vmem [shape: f32[128,512], index: 4, kind: input, shape index: {}]   ;;  %s5221_s5 = inlined_call_operand.vmem [shape: f32[128,512], index: 5, kind: input, shape index: {}]   ;;  %s5222_s6 = inlined_call_operand.vmem [shape: f32[1,512], index: 6, kind: input, shape index: {}]   ;;  %s5223_s7 = inlined_call_operand.vmem [shape: f32[2,8,128], index: 7, kind: input, shape index: {}]   ;;  %s5224_s8 = inlined_call_operand.vmem [shape: f32[2,8,128], index: 8, kind: input, shape index: {}]   ;;  %s5225_s9 = inlined_call_operand.vmem [shape: f32[128,128], index: 9, kind: input, shape index: {}]   ;;  %s5226_s10 = inlined_call_operand.vmem [shape: f32[1,128], index: 10, kind: input, shape index: {}]   ;;  %s5227_s11 = inlined_call_operand.vmem [shape: f32[8,128], index: 11, kind: output, shape index: {0}]   ;;  %s5228_s12 = inlined_call_operand.vmem [shape: f32[2,8,128], index: 12, kind: output, shape index: {1}]   ;;  %s5229_s13 = inlined_call_operand.vmem [shape: f32[2,8,128], index: 13, kind: output, shape index: {2}]  }
   0x1 LB: > { %s3407_s26 = sadd.s32 4294967295, %s3326_s25   ;;  %p3079_p0 = scmp.ge.s32.totalorder %s3326_s25, 1  ;;  %s3326_s25 = sphi %s3401_s25, %s24_s25  }
   0x2   : > { %p378_p1 = scmp.lt.s32.totalorder %s3326_s25, 3 }
   0x4   : > { %p379_p2 = pnand %p3079_p0, %p378_p1 }
   0x6   : > { %382 = sbr.rel (%p379_p2) target bundleno = 2292 (0x8f4), region = 64 }
   0xb   : > { %s3080_s27 = sshll.u32 %s3407_s26, 2  ;;  %p3082_p4 = scmp.ne.s32.totalorder %s3407_s26, 0 }
   0xc   : > { %p418_p3 = scmp.lt.s32.totalorder %s3080_s27, 7 }
   0xd   : > { %426 = sbr.rel (%p3082_p4) target bundleno = 21 (0x15), region = 68 }
   0xe   : > { %s5494_s27 = smov (!%p418_p3, %s3080_s27), 7 }
   0xf   : > { %s3081_s28 = sshll.u32 %s5494_s27, 3 }
  0x10   : > { %s3415_s14 = scalar_lea.vmem %s5216_s0, %s3081_s28 }
  0x12   : > { %v427_v0 = vld [vmem:[%s5223_s7] sm:$0xff]  ;;  %v3083_v2 = vld [vmem:[%s5223_s7 + $0x8] sm:$0xff] }
  0x13   : > { %v429_v1 = vld [vmem:[%s5224_s8] sm:$0xff]  ;;  %428 = vst [vmem:[#allocation2] sm:$0xff] %v427_v0  ;;  %433 = vst [vmem:[#allocation4] sm:$0xff] %v3083_v2  ;;  %v3084_v3 = vld [vmem:[%s5224_s8 + $0x8] sm:$0xff] }
  0x14   : > { %430 = vst [vmem:[#allocation3] sm:$0xff] %v429_v1  ;;  %436 = vst [vmem:[#allocation5] sm:$0xff] %v3084_v3 }
  0x15 PF: > { %v441_v4 = vld [vmem:[%s5217_s1] sm:$0xff]  ;;  %vm482_vm0 = vcmask 1043456   ;;  %v442_v5 = vld [vmem:[%s5217_s1 + $0x8] sm:$0xff]  ;;  %v5230_v8 = vmov 0.0   ;;  %vm469_vm1 = vcmask 31744   ;;  %v3447_v11 = vld [vmem:[%s5218_s2 + $0x1f8] sm:$0xff] }
  0x16   : > { %v467_v6 = vcombine.high %v441_v4, %v441_v4  ;;  %v468_v7 = vcombine.high %v442_v5, %v442_v5  ;;  %555 = vmatprep.mubr.f32.mxu0 %v5230_v8  ;;  %644 = vmatprep.mubr.f32.mxu1 %v5230_v8  ;;  %v437_v9 = vld [vmem:[%s3415_s14] sm:$0xff]  ;;  %v3442_v10 = vld [vmem:[%s5218_s2 + $0x1e8] sm:$0xff]  ;;  %v3457_v13 = vld [vmem:[%s5218_s2 + $0x1f0] sm:$0xff]  ;;  %p3121_p5 = scmp.ne.s32.totalorder %s3407_s26, 1 }
  0x17   : > { %v3452_v12 = vld [vmem:[%s5218_s2 + $0x1e0] sm:$0xff]  ;;  %v3464_v14 = vld [vmem:[%s5218_s2 + $0x1c8] sm:$0xff]  ;;  %v3469_v15 = vld [vmem:[%s5218_s2 + $0x1d8] sm:$0xff] }
  0x18   : > { %3085 = vmatprep.subr.msk.mxu0 %vm482_vm0, %v467_v6  ;;  %3091 = vmatprep.subr.msk.mxu1 %vm482_vm0, %v468_v7  ;;  %v3476_v16 = vld [vmem:[%s5218_s2 + $0x1c0] sm:$0xff]  ;;  %v3481_v17 = vld [vmem:[%s5218_s2 + $0x1d0] sm:$0xff]  ;;  %v3488_v18 = vld [vmem:[%s5218_s2 + $0x1a8] sm:$0xff] }
  0x19   : > { %3086 = vmatpush1.msk.msra.mxu0 %vm482_vm0, %v441_v4  ;;  %3092 = vmatpush1.msk.msra.mxu1 %vm482_vm0, %v442_v5  ;;  %v3493_v19 = vld [vmem:[%s5218_s2 + $0x1b8] sm:$0xff]  ;;  %v3500_v20 = vld [vmem:[%s5218_s2 + $0x1a0] sm:$0xff]  ;;  %v3505_v21 = vld [vmem:[%s5218_s2 + $0x1b0] sm:$0xff] }
  0x1a   : > { %3087 = vmatmul.mubr.msk.f32.vlgmr.msra.gmra.mxu0 %vm469_vm1, %v437_v9  ;;  %757 = vmatprep.subr.mxu0 %v3442_v10  ;;  %v3512_v22 = vld [vmem:[%s5218_s2 + $0x188] sm:$0xff]  ;;  %v3517_v23 = vld [vmem:[%s5218_s2 + $0x198] sm:$0xff]  ;;  %v3524_v24 = vld [vmem:[%s5218_s2 + $0x180] sm:$0xff] }
  0x1b   : > { %828 = vmatprep.subr.mxu1 %v3447_v11  ;;  %3093 = vmatmul.mubr.msk.f32.vlgmr.msra.gmra.mxu1 %vm469_vm1, %v437_v9  ;;  %v3529_v25 = vld [vmem:[%s5218_s2 + $0x190] sm:$0xff]  ;;  %v3536_v26 = vld [vmem:[%s5218_s2 + $0x168] sm:$0xff]  ;;  %v3541_v27 = vld [vmem:[%s5218_s2 + $0x178] sm:$0xff] }
  0x1c   : > { %758 = vmatpush1.msra.mxu0 %v3452_v12  ;;  %829 = vmatpush1.msra.mxu1 %v3457_v13  ;;  %v3548_v28 = vld [vmem:[%s5218_s2 + $0x160] sm:$0xff]  ;;  %v3553_v29 = vld [vmem:[%s5218_s2 + $0x170] sm:$0xff]  ;;  %v3560_v30 = vld [vmem:[%s5218_s2 + $0x148] sm:$0xff] }
  0x1d   : > { %759 = vmatprep.subr.mxu0 %v3464_v14  ;;  %830 = vmatprep.subr.mxu1 %v3469_v15  ;;  %v3565_v31 = vld [vmem:[%s5218_s2 + $0x158] sm:$0xff]  ;;  %v3572_v32 = vld [vmem:[%s5218_s2 + $0x140] sm:$0xff]  ;;  %v3577_v33 = vld [vmem:[%s5218_s2 + $0x150] sm:$0xff] }
  0x1e   : > { %760 = vmatpush1.msra.mxu0 %v3476_v16  ;;  %831 = vmatpush1.msra.mxu1 %v3481_v17  ;;  %v3584_v34 = vld [vmem:[%s5218_s2 + $0x128] sm:$0xff]  ;;  %v3589_v35 = vld [vmem:[%s5218_s2 + $0x138] sm:$0xff]  ;;  %v3596_v36 = vld [vmem:[%s5218_s2 + $0x120] sm:$0xff] }
  0x1f   : > { %761 = vmatprep.subr.mxu0 %v3488_v18  ;;  %832 = vmatprep.subr.mxu1 %v3493_v19  ;;  %v3601_v37 = vld [vmem:[%s5218_s2 + $0x130] sm:$0xff]  ;;  %v3608_v38 = vld [vmem:[%s5218_s2 + $0x108] sm:$0xff]  ;;  %v3613_v39 = vld [vmem:[%s5218_s2 + $0x118] sm:$0xff] }
  0x20   : > { %762 = vmatpush1.msra.mxu0 %v3500_v20  ;;  %833 = vmatpush1.msra.mxu1 %v3505_v21  ;;  %v3620_v40 = vld [vmem:[%s5218_s2 + $0x100] sm:$0xff]  ;;  %v3625_v41 = vld [vmem:[%s5218_s2 + $0x110] sm:$0xff]  ;;  %v3632_v42 = vld [vmem:[%s5218_s2 + $0xe8] sm:$0xff] }
  0x21   : > { %763 = vmatprep.subr.mxu0 %v3512_v22  ;;  %834 = vmatprep.subr.mxu1 %v3517_v23  ;;  %v3637_v43 = vld [vmem:[%s5218_s2 + $0xf8] sm:$0xff]  ;;  %v3644_v44 = vld [vmem:[%s5218_s2 + $0xe0] sm:$0xff]  ;;  %v3651_v45 = vld [vmem:[%s5218_s2 + $0xf0] sm:$0xff] }
  0x22   : > { %764 = vmatpush1.msra.mxu0 %v3524_v24  ;;  %835 = vmatpush1.msra.mxu1 %v3529_v25  ;;  %v438_v46 = vld [vmem:[%s3415_s14 + $0x8] sm:$0xff]  ;;  %v3664_v48 = vld [vmem:[%s5218_s2 + $0xd8] sm:$0xff]  ;;  %v3671_v49 = vld [vmem:[%s5218_s2 + $0xc0] sm:$0xff] }
  0x23   : > { %765 = vmatprep.subr.mxu0 %v3536_v26  ;;  %836 = vmatprep.subr.mxu1 %v3541_v27  ;;  %v3659_v47 = vld [vmem:[%s5218_s2 + $0xc8] sm:$0xff]  ;;  %v3678_v50 = vld [vmem:[%s5218_s2 + $0xd0] sm:$0xff]  ;;  %v3690_v52 = vld [vmem:[%s5218_s2 + $0xb8] sm:$0xff] }
  0x24   : > { %766 = vmatpush1.msra.mxu0 %v3548_v28  ;;  %837 = vmatpush1.msra.mxu1 %v3553_v29  ;;  %v3683_v51 = vld [vmem:[%s5218_s2 + $0xa8] sm:$0xff]  ;;  %5313 = vst [vmem:[#allocation9_spill] sm:$0xff] %v3690_v52  ;;  %v3697_v53 = vld [vmem:[%s5218_s2 + $0xa0] sm:$0xff]  ;;  %v3704_v54 = vld [vmem:[%s5218_s2 + $0xb0] sm:$0xff] }
  0x25   : > { %767 = vmatprep.subr.mxu0 %v3560_v30  ;;  %838 = vmatprep.subr.mxu1 %v3565_v31  ;;  %5312 = vst [vmem:[#allocation8_spill] sm:$0xff] %v3683_v51  ;;  %5314 = vst [vmem:[#allocation10_spill] sm:$0xff] %v3697_v53  ;;  %v439_v55 = vld [vmem:[%s3415_s14 + $0x10] sm:$0xff]  ;;  %v3712_v56 = vld [vmem:[%s5218_s2 + $0x88] sm:$0xff] }
  0x26   : > { %768 = vmatpush1.msra.mxu0 %v3572_v32  ;;  %839 = vmatpush1.msra.mxu1 %v3577_v33  ;;  %5315 = vst [vmem:[#allocation11_spill] sm:$0xff] %v3704_v54  ;;  %5316 = vst [vmem:[#allocation12_spill] sm:$0xff] %v3712_v56  ;;  %v3717_v57 = vld [vmem:[%s5218_s2 + $0x98] sm:$0xff]  ;;  %v3724_v58 = vld [vmem:[%s5218_s2 + $0x80] sm:$0xff] }
  0x27   : > { %769 = vmatprep.subr.mxu0 %v3584_v34  ;;  %840 = vmatprep.subr.mxu1 %v3589_v35  ;;  %5317 = vst [vmem:[#allocation13_spill] sm:$0xff] %v3717_v57  ;;  %5318 = vst [vmem:[#allocation14_spill] sm:$0xff] %v3724_v58  ;;  %v3731_v59 = vld [vmem:[%s5218_s2 + $0x90] sm:$0xff]  ;;  %v3736_v60 = vld [vmem:[%s5218_s2 + $0x68] sm:$0xff] }
  0x28   : > { %770 = vmatpush1.msra.mxu0 %v3596_v36  ;;  %841 = vmatpush1.msra.mxu1 %v3601_v37  ;;  %5319 = vst [vmem:[#allocation15_spill] sm:$0xff] %v3731_v59  ;;  %5320 = vst [vmem:[#allocation16_spill] sm:$0xff] %v3736_v60  ;;  %v3743_v61 = vld [vmem:[%s5218_s2 + $0x78] sm:$0xff]  ;;  %v3750_v62 = vld [vmem:[%s5218_s2 + $0x60] sm:$0xff] }
  0x29   : > { %771 = vmatprep.subr.mxu0 %v3608_v38  ;;  %842 = vmatprep.subr.mxu1 %v3613_v39  ;;  %5321 = vst [vmem:[#allocation17_spill] sm:$0xff] %v3743_v61  ;;  %5322 = vst [vmem:[#allocation18_spill] sm:$0xff] %v3750_v62  ;;  %v3757_v63 = vld [vmem:[%s5218_s2 + $0x70] sm:$0xff]  ;;  %v440_v0 = vld [vmem:[%s3415_s14 + $0x18] sm:$0xff] }
  0x2a   : > { %772 = vmatpush1.msra.mxu0 %v3620_v40  ;;  %843 = vmatpush1.msra.mxu1 %v3625_v41  ;;  %5323 = vst [vmem:[#allocation19_spill] sm:$0xff] %v3757_v63  ;;  %v3765_v1 = vld [vmem:[%s5218_s2 + $0x48] sm:$0xff]  ;;  %v3770_v2 = vld [vmem:[%s5218_s2 + $0x58] sm:$0xff]  ;;  %v3777_v3 = vld [vmem:[%s5218_s2 + $0x40] sm:$0xff] }
  0x2b   : > { %773 = vmatprep.subr.mxu0 %v3632_v42  ;;  %844 = vmatprep.subr.mxu1 %v3637_v43  ;;  %5324 = vst [vmem:[#allocation20_spill] sm:$0xff] %v3765_v1  ;;  %5325 = vst [vmem:[#allocation21_spill] sm:$0xff] %v3770_v2  ;;  %v3784_v4 = vld [vmem:[%s5218_s2 + $0x50] sm:$0xff]  ;;  %v3789_v5 = vld [vmem:[%s5218_s2 + $0x28] sm:$0xff] }
  0x2c   : > { %561 = vmatprep.mubr.f32.mxu0 %v5230_v8  ;;  %774 = vmatpush1.msra.mxu0 %v3644_v44  ;;  %5326 = vst [vmem:[#allocation22_spill] sm:$0xff] %v3777_v3  ;;  %5327 = vst [vmem:[#allocation23_spill] sm:$0xff] %v3784_v4  ;;  %v3796_v6 = vld [vmem:[%s5218_s2 + $0x38] sm:$0xff]  ;;  %v3803_v7 = vld [vmem:[%s5218_s2 + $0x20] sm:$0xff] }
  0x2d   : > { %845 = vmatpush1.msra.mxu1 %v3651_v45  ;;  %3088 = vmatmul.mubr.msk.f32.gmra.mxu0 %vm469_vm1, %v438_v46  ;;  %5328 = vst [vmem:[#allocation24_spill] sm:$0xff] %v3789_v5  ;;  %5329 = vst [vmem:[#allocation25_spill] sm:$0xff] %v3796_v6  ;;  %v3808_v9 = vld [vmem:[%s5218_s2 + $0x30] sm:$0xff] }
  0x2e   : > { %775 = vmatprep.subr.mxu0 %v3659_v47  ;;  %846 = vmatprep.subr.mxu1 %v3664_v48  ;;  %5330 = vst [vmem:[#allocation26_spill] sm:$0xff] %v3803_v7  ;;  %5331 = vst [vmem:[#allocation27_spill] sm:$0xff] %v3808_v9 }
  0x2f   : > { %650 = vmatprep.mubr.f32.mxu1 %v5230_v8  ;;  %776 = vmatpush1.msra.mxu0 %v3671_v49 }
  0x30   : > { %847 = vmatpush1.msra.mxu1 %v3678_v50  ;;  %777 = vmatprep.subr.mxu0 %v3683_v51 }
  0x31   : > { %3094 = vmatmul.mubr.msk.f32.gmra.mxu1 %vm469_vm1, %v438_v46  ;;  %848 = vmatprep.subr.mxu1 %v3690_v52  ;;  %v3815_v46 = vld [vmem:[%s5218_s2 + $0x8] sm:$0xff] }
  0x32   : > { %567 = vmatprep.mubr.f32.mxu0 %v5230_v8  ;;  %778 = vmatpush1.msra.mxu0 %v3697_v53  ;;  %5332 = vst [vmem:[#allocation28_spill] sm:$0xff] %v3815_v46 }
  0x33   : > { %849 = vmatpush1.msra.mxu1 %v3704_v54  ;;  %3089 = vmatmul.mubr.msk.f32.gmra.mxu0 %vm469_vm1, %v439_v55 }
  0x34   : > { %779 = vmatprep.subr.mxu0 %v3712_v56  ;;  %850 = vmatprep.subr.mxu1 %v3717_v57 }
  0x35   : > { %656 = vmatprep.mubr.f32.mxu1 %v5230_v8  ;;  %780 = vmatpush1.msra.mxu0 %v3724_v58 }
  0x36   : > { %851 = vmatpush1.msra.mxu1 %v3731_v59  ;;  %781 = vmatprep.subr.mxu0 %v3736_v60 }
  0x37   : > { %3095 = vmatmul.mubr.msk.f32.gmra.mxu1 %vm469_vm1, %v439_v55  ;;  %852 = vmatprep.subr.mxu1 %v3743_v61  ;;  %v3820_v55 = vld [vmem:[%s5218_s2 + $0x18] sm:$0xff] }
  0x38   : > { %573 = vmatprep.mubr.f32.mxu0 %v5230_v8  ;;  %782 = vmatpush1.msra.mxu0 %v3750_v62  ;;  %5333 = vst [vmem:[#allocation29_spill] sm:$0xff] %v3820_v55 }
  0x39   : > { %853 = vmatpush1.msra.mxu1 %v3757_v63  ;;  %3090 = vmatmul.mubr.msk.f32.gmra.mxu0 %vm469_vm1, %v440_v0 }
  0x3a   : > { %783 = vmatprep.subr.mxu0 %v3765_v1  ;;  %854 = vmatprep.subr.mxu1 %v3770_v2 }
  0x3b   : > { %662 = vmatprep.mubr.f32.mxu1 %v5230_v8  ;;  %784 = vmatpush1.msra.mxu0 %v3777_v3  ;;  %v3827_v8 = vld [vmem:[%s5218_s2] sm:$0xff] }
  0x3c   : > { %855 = vmatpush1.msra.mxu1 %v3784_v4  ;;  %785 = vmatprep.subr.mxu0 %v3789_v5  ;;  %5334 = vst [vmem:[#allocation30_spill] sm:$0xff] %v3827_v8  ;;  %v3834_v5 = vld [vmem:[%s5218_s2 + $0x10] sm:$0xff] }
  0x3d   : > { %3096 = vmatmul.mubr.msk.f32.gmra.mxu1 %vm469_vm1, %v440_v0  ;;  %856 = vmatprep.subr.mxu1 %v3796_v6  ;;  %5335 = vst [vmem:[#allocation31_spill] sm:$0xff] %v3834_v5  ;;  %v692_v0 = vld [vmem:[#allocation2] sm:$0xff]  ;;  %v5336_v6 = vmov 0.0  }
  0x3e   : > { %786 = vmatpush1.msra.mxu0 %v3803_v7  ;;  %857 = vmatpush1.msra.mxu1 %v3808_v9 }
  0x3f   : > { %787 = vmatprep.subr.mxu0 %v3815_v46  ;;  %858 = vmatprep.subr.mxu1 %v3820_v55 }
  0x40   : > { %788 = vmatpush1.msra.mxu0 %v3827_v8  ;;  %821 = vmatprep.mubr.f32.mxu0 %v5336_v6 }
  0x41   : > { %859 = vmatpush1.msra.mxu1 %v3834_v5  ;;  %892 = vmatprep.mubr.f32.mxu1 %v5336_v6 }
  0x42   : > { %822 = vmatmul.mubr.f32.vlgmr.msra.gmra.mxu0 %v692_v0  ;;  %893 = vmatmul.mubr.f32.vlgmr.msra.gmra.mxu1 %v692_v0  ;;  %v5337_v0 = vld [vmem:[#allocation24_spill] sm:$0xff] }
  0x43   : > { %1003 = vmatprep.subr.mxu0 %v3442_v10  ;;  %1074 = vmatprep.subr.mxu1 %v3447_v11 }
  0x44   : > { %1004 = vmatpush1.msra.mxu0 %v3452_v12  ;;  %1075 = vmatpush1.msra.mxu1 %v3457_v13 }
  0x45   : > { %1005 = vmatprep.subr.mxu0 %v3464_v14  ;;  %1076 = vmatprep.subr.mxu1 %v3469_v15 }
  0x46   : > { %1006 = vmatpush1.msra.mxu0 %v3476_v16  ;;  %1077 = vmatpush1.msra.mxu1 %v3481_v17 }
  0x47   : > { %1007 = vmatprep.subr.mxu0 %v3488_v18  ;;  %1078 = vmatprep.subr.mxu1 %v3493_v19 }
  0x48   : > { %1008 = vmatpush1.msra.mxu0 %v3500_v20  ;;  %1079 = vmatpush1.msra.mxu1 %v3505_v21 }
  0x49   : > { %1009 = vmatprep.subr.mxu0 %v3512_v22  ;;  %1080 = vmatprep.subr.mxu1 %v3517_v23 }
  0x4a   : > { %1010 = vmatpush1.msra.mxu0 %v3524_v24  ;;  %1081 = vmatpush1.msra.mxu1 %v3529_v25 }
  0x4b   : > { %1011 = vmatprep.subr.mxu0 %v3536_v26  ;;  %1082 = vmatprep.subr.mxu1 %v3541_v27 }
  0x4c   : > { %1012 = vmatpush1.msra.mxu0 %v3548_v28  ;;  %1083 = vmatpush1.msra.mxu1 %v3553_v29 }
  0x4d   : > { %1013 = vmatprep.subr.mxu0 %v3560_v30  ;;  %1084 = vmatprep.subr.mxu1 %v3565_v31 }
  0x4e   : > { %1014 = vmatpush1.msra.mxu0 %v3572_v32  ;;  %1085 = vmatpush1.msra.mxu1 %v3577_v33 }
  0x4f   : > { %1015 = vmatprep.subr.mxu0 %v3584_v34  ;;  %1086 = vmatprep.subr.mxu1 %v3589_v35 }
  0x50   : > { %1016 = vmatpush1.msra.mxu0 %v3596_v36  ;;  %1087 = vmatpush1.msra.mxu1 %v3601_v37 }
  0x51   : > { %1017 = vmatprep.subr.mxu0 %v3608_v38  ;;  %1088 = vmatprep.subr.mxu1 %v3613_v39 }
  0x52   : > { %1018 = vmatpush1.msra.mxu0 %v3620_v40  ;;  %1089 = vmatpush1.msra.mxu1 %v3625_v41 }
  0x53   : > { %1019 = vmatprep.subr.mxu0 %v3632_v42  ;;  %1090 = vmatprep.subr.mxu1 %v3637_v43 }
  0x54   : > { %1020 = vmatpush1.msra.mxu0 %v3644_v44  ;;  %1091 = vmatpush1.msra.mxu1 %v3651_v45 }
  0x55   : > { %1021 = vmatprep.subr.mxu0 %v3659_v47  ;;  %1092 = vmatprep.subr.mxu1 %v3664_v48 }
  0x56   : > { %1022 = vmatpush1.msra.mxu0 %v3671_v49  ;;  %1093 = vmatpush1.msra.mxu1 %v3678_v50 }
  0x57   : > { %1023 = vmatprep.subr.mxu0 %v3683_v51  ;;  %1094 = vmatprep.subr.mxu1 %v3690_v52 }
  0x58   : > { %1024 = vmatpush1.msra.mxu0 %v3697_v53  ;;  %1095 = vmatpush1.msra.mxu1 %v3704_v54 }
  0x59   : > { %1025 = vmatprep.subr.mxu0 %v3712_v56  ;;  %1096 = vmatprep.subr.mxu1 %v3717_v57 }
  0x5a   : > { %1026 = vmatpush1.msra.mxu0 %v3724_v58  ;;  %1097 = vmatpush1.msra.mxu1 %v3731_v59  ;;  %v5338_v58 = vld [vmem:[#allocation25_spill] sm:$0xff] }
  0x5b   : > { %1027 = vmatprep.subr.mxu0 %v3736_v60  ;;  %1098 = vmatprep.subr.mxu1 %v3743_v61 }
  0x5c   : > { %1028 = vmatpush1.msra.mxu0 %v3750_v62  ;;  %1099 = vmatpush1.msra.mxu1 %v3757_v63 }
  0x5d   : > { %1029 = vmatprep.subr.mxu0 %v3765_v1  ;;  %1100 = vmatprep.subr.mxu1 %v3770_v2 }
  0x5e   : > { %1030 = vmatpush1.msra.mxu0 %v3777_v3  ;;  %1101 = vmatpush1.msra.mxu1 %v3784_v4 }
  0x5f   : > { %1031 = vmatprep.subr.mxu0 %v5337_v0  ;;  %1102 = vmatprep.subr.mxu1 %v5338_v58  ;;  %v445_v58 = vlaneseq }
  0x60   : > { %1032 = vmatpush1.msra.mxu0 %v3803_v7  ;;  %1103 = vmatpush1.msra.mxu1 %v3808_v9 }
  0x61   : > { %1033 = vmatprep.subr.mxu0 %v3815_v46  ;;  %1104 = vmatprep.subr.mxu1 %v3820_v55  ;;  %v3910_v7 = vshrl.u32 %v445_v58, 7 }
  0x62   : > { %1034 = vmatpush1.msra.mxu0 %v3827_v8  ;;  %1067 = vmatprep.mubr.f32.mxu0 %v5336_v6  ;;  %v443_v8 = vld [vmem:[%s5219_s3] sm:$0xf] }
  0x63   : > { %1105 = vmatpush1.msra.mxu1 %v3834_v5  ;;  %1138 = vmatprep.mubr.f32.mxu1 %v5336_v6  ;;  %5339 = vst [vmem:[#allocation32_spill] sm:$0xff] %v3910_v7  ;;  %v5251_v46 = vsub.s32 0, %v3910_v7  ;;  %v5256_v0 = vsub.s32 1, %v3910_v7  ;;  %v5262_v2 = vsub.s32 3, %v3910_v7 }
  0x64   : > { %1250 = vmatprep.subr.mxu0 %v3442_v10  ;;  %1321 = vmatprep.subr.mxu1 %v3447_v11  ;;  %v5259_v10 = vsub.s32 2, %v3910_v7 }
  0x65   : > { %v448_v6 = vrot.slane %v443_v8, %v5251_v46  ;;  %v452_v58 = vrot.slane %v443_v8, %v5256_v0  ;;  %v460_v46 = vrot.slane %v443_v8, %v5262_v2 }
  0x66   : > { %v456_v63 = vrot.slane %v443_v8, %v5259_v10 }
  0xda   : > { %v557_v9 = vpop.f32.mrf.mxu0 }
  0xdb   : > { %v646_v55 = vpop.f32.mrf.mxu1 }
  0xdc   : > { %v559_v5 = vpop.f32.mrf.mxu0 }
  0xdd   : > { %v648_v4 = vpop.f32.mrf.mxu1 }
  0xed   : > { %v563_v11 = vpop.f32.mrf.mxu0 }
  0xee   : > { %v3922_v3 = vadd.f32 %v563_v11, %v448_v6 }
  0xef   : > { %v565_v1 = vpop.f32.mrf.mxu0 }
  0xf0   : > { %5340 = vst [vmem:[#allocation33_spill] sm:$0xff] %v3922_v3  ;;  %v3927_v62 = vadd.f32 %v565_v1, %v452_v58 }
  0xf1   : > { %v652_v61 = vpop.f32.mrf.mxu1 }
  0xf2   : > { %5341 = vst [vmem:[#allocation34_spill] sm:$0xff] %v3927_v62  ;;  %v3931_v60 = vadd.f32 %v652_v61, %v456_v63 }
  0xf3   : > { %v569_v59 = vpop.f32.mrf.mxu0  ;;  %v654_v57 = vpop.f32.mrf.mxu1 }
  0xf4   : > { %5342 = vst [vmem:[#allocation35_spill] sm:$0xff] %v3931_v60  ;;  %v3933_v56 = vadd.f32 %v569_v59, %v448_v6  ;;  %v3935_v11 = vadd.f32 %v654_v57, %v460_v46  ;;  %v560_v60 = vadd.f32 %v559_v5, %v452_v58 }
  0xf5   : > { %v571_v0 = vpop.f32.mrf.mxu0 }
  0xf6   : > { %5343 = vst [vmem:[#allocation36_spill] sm:$0xff] %v3933_v56  ;;  %5344 = vst [vmem:[#allocation37_spill] sm:$0xff] %v3935_v11  ;;  %v3937_v3 = vadd.f32 %v571_v0, %v452_v58  ;;  %v558_v0 = vadd.f32 %v557_v9, %v448_v6 }
  0xf7   : > { %v658_v54 = vpop.f32.mrf.mxu1 }
  0xf8   : > { %5345 = vst [vmem:[#allocation38_spill] sm:$0xff] %v3937_v3  ;;  %v3939_v53 = vadd.f32 %v658_v54, %v456_v63 }
  0xf9   : > { %v575_v1 = vpop.f32.mrf.mxu0  ;;  %v660_v10 = vpop.f32.mrf.mxu1 }
  0xfa   : > { %5346 = vst [vmem:[#allocation39_spill] sm:$0xff] %v3939_v53  ;;  %v3941_v62 = vadd.f32 %v575_v1, %v448_v6  ;;  %v3943_v7 = vadd.f32 %v660_v10, %v460_v46 }
  0xfb   : > { %v577_v8 = vpop.f32.mrf.mxu0 }
  0xfc   : > { %5347 = vst [vmem:[#allocation40_spill] sm:$0xff] %v3941_v62  ;;  %5348 = vst [vmem:[#allocation41_spill] sm:$0xff] %v3943_v7  ;;  %v3945_v61 = vadd.f32 %v577_v8, %v452_v58  ;;  %v649_v8 = vadd.f32 %v648_v4, %v460_v46  ;;  %v647_v7 = vadd.f32 %v646_v55, %v456_v63 }
  0xfd   : > { %v664_v2 = vpop.f32.mrf.mxu1 }
  0xfe   : > { %5349 = vst [vmem:[#allocation42_spill] sm:$0xff] %v3945_v61  ;;  %v3947_v59 = vadd.f32 %v664_v2, %v456_v63 }
  0xff   : > { %v666_v57 = vpop.f32.mrf.mxu1 }
 0x100   : > { %5350 = vst [vmem:[#allocation43_spill] sm:$0xff] %v3947_v59  ;;  %v3949_v56 = vadd.f32 %v666_v57, %v460_v46 }
 0x102   : > { %5351 = vst [vmem:[#allocation44_spill] sm:$0xff] %v3949_v56  ;;  %v823_v3 = vpop.f32.mrf.mxu0  ;;  %v894_v1 = vpop.f32.mrf.mxu1 }
 0x103   : > { %v899_v54 = vadd.f32 %v823_v3, %v558_v0  ;;  %v901_v51 = vadd.f32 %v894_v1, %v647_v7 }
 0x104   : > { %v825_v53 = vpop.f32.mrf.mxu0  ;;  %v896_v62 = vpop.f32.mrf.mxu1 }
 0x105   : > { %v3097_v11 = vmul.f32 -1.442695, %v899_v54  ;;  %v900_v52 = vadd.f32 %v825_v53, %v560_v60  ;;  %v902_v61 = vadd.f32 %v896_v62, %v649_v8  ;;  %v922_v60 = vld [vmem:[#allocation3] sm:$0xff] }
 0x107   : > { %3192 = vpow2.f32 %v3097_v11  ;;  %v3098_v10 = vmul.f32 -1.442695, %v900_v52  ;;  %v3099_v2 = vmul.f32 -1.442695, %v902_v61 }
 0x109   : > { %3194 = vpow2.f32 %v3098_v10 }
 0x10a   : > { %3196 = vpow2.f32 %v3099_v2 }
 0x114   : > { %v3193_v59 = vpop.eup %3192 }
 0x115   : > { %v906_v57 = vadd.f32 1.0, %v3193_v59 }
 0x116   : > { %v3195_v56 = vpop.eup %3194 }
 0x117   : > { %3198 = vrcp.f32 %v906_v57  ;;  %v912_v5 = vadd.f32 1.0, %v3195_v56  ;;  %v3197_v3 = vpop.eup %3196 }
 0x118   : > { %3200 = vtanh.f32 %v901_v51  ;;  %v919_v9 = vadd.f32 1.0, %v3197_v3 }
 0x119   : > { %3202 = vrcp.f32 %v912_v5 }
 0x11a   : > { %3204 = vrcp.f32 %v919_v9  ;;  %v1493_v9 = vld [vmem:[%s5218_s2 + $0x1e0] sm:$0xff] }
 0x124   : > { %v3199_v53 = vpop.eup %3198 }
 0x125   : > { %v3201_v6 = vpop.eup %3200 }
 0x126   : > { %v3203_v52 = vpop.eup %3202  ;;  %v924_v58 = vmul.f32 %v3201_v6, %v3199_v53  ;;  %v1494_v6 = vld [vmem:[%s5218_s2 + $0x1e8] sm:$0xff] }
 0x127   : > { %v923_v4 = vmul.f32 %v3203_v52, %v922_v60  ;;  %v3205_v63 = vpop.eup %3204  ;;  %v1496_v52 = vld [vmem:[%s5218_s2 + $0x1f8] sm:$0xff] }
 0x129   : > { %v3951_v62 = vadd.f32 %v924_v58, %v923_v4  ;;  %v1495_v58 = vld [vmem:[%s5218_s2 + $0x1f0] sm:$0xff]  ;;  %v1490_v4 = vld [vmem:[%s5218_s2 + $0x1c8] sm:$0xff] }
 0x12b   : > { %3206 = vtanh.f32 %v3951_v62 }
 0x138   : > { %v3207_v7 = vpop.eup %3206 }
 0x139   : > { %v3954_v46 = vmul.f32 %v3207_v7, %v3205_v63  ;;  %v1489_v63 = vld [vmem:[%s5218_s2 + $0x1c0] sm:$0xff]  ;;  %v1491_v7 = vld [vmem:[%s5218_s2 + $0x1d0] sm:$0xff] }
 0x13b   : > { %1068 = vmatmul.mubr.f32.vlgmr.msra.gmra.mxu0 %v3954_v46  ;;  %1139 = vmatmul.mubr.f32.vlgmr.msra.gmra.mxu1 %v3954_v46 }
 0x13c   : > { %1251 = vmatpush1.msra.mxu0 %v3452_v12  ;;  %1322 = vmatpush1.msra.mxu1 %v3457_v13  ;;  %v5352_v12 = vld [vmem:[#allocation8_spill] sm:$0xff]  ;;  %v5353_v13 = vld [vmem:[#allocation9_spill] sm:$0xff] }
 0x13d   : > { %1252 = vmatprep.subr.mxu0 %v3464_v14  ;;  %1323 = vmatprep.subr.mxu1 %v3469_v15  ;;  %v5354_v14 = vld [vmem:[#allocation10_spill] sm:$0xff]  ;;  %v5355_v15 = vld [vmem:[#allocation11_spill] sm:$0xff] }
 0x13e   : > { %1253 = vmatpush1.msra.mxu0 %v3476_v16  ;;  %1324 = vmatpush1.msra.mxu1 %v3481_v17  ;;  %v5356_v16 = vld [vmem:[#allocation12_spill] sm:$0xff]  ;;  %v5357_v17 = vld [vmem:[#allocation13_spill] sm:$0xff] }
 0x13f   : > { %1254 = vmatprep.subr.mxu0 %v3488_v18  ;;  %1325 = vmatprep.subr.mxu1 %v3493_v19  ;;  %v5358_v18 = vld [vmem:[#allocation14_spill] sm:$0xff]  ;;  %v5359_v19 = vld [vmem:[#allocation15_spill] sm:$0xff] }
 0x140   : > { %1255 = vmatpush1.msra.mxu0 %v3500_v20  ;;  %1326 = vmatpush1.msra.mxu1 %v3505_v21  ;;  %v5360_v20 = vld [vmem:[#allocation16_spill] sm:$0xff]  ;;  %v5361_v21 = vld [vmem:[#allocation17_spill] sm:$0xff] }
 0x141   : > { %1256 = vmatprep.subr.mxu0 %v3512_v22  ;;  %1327 = vmatprep.subr.mxu1 %v3517_v23  ;;  %v5362_v22 = vld [vmem:[#allocation18_spill] sm:$0xff]  ;;  %v5363_v23 = vld [vmem:[#allocation19_spill] sm:$0xff] }
 0x142   : > { %1257 = vmatpush1.msra.mxu0 %v3524_v24  ;;  %1328 = vmatpush1.msra.mxu1 %v3529_v25  ;;  %v5364_v24 = vld [vmem:[#allocation20_spill] sm:$0xff]  ;;  %v5365_v25 = vld [vmem:[#allocation21_spill] sm:$0xff] }
 0x143   : > { %1258 = vmatprep.subr.mxu0 %v3536_v26  ;;  %1329 = vmatprep.subr.mxu1 %v3541_v27  ;;  %v5366_v26 = vld [vmem:[#allocation22_spill] sm:$0xff]  ;;  %v5367_v27 = vld [vmem:[#allocation23_spill] sm:$0xff] }
 0x144   : > { %1259 = vmatpush1.msra.mxu0 %v3548_v28  ;;  %1330 = vmatpush1.msra.mxu1 %v3553_v29  ;;  %v5368_v28 = vld [vmem:[#allocation24_spill] sm:$0xff]  ;;  %v5369_v29 = vld [vmem:[#allocation25_spill] sm:$0xff] }
 0x145   : > { %1260 = vmatprep.subr.mxu0 %v3560_v30  ;;  %1331 = vmatprep.subr.mxu1 %v3565_v31  ;;  %v5370_v30 = vld [vmem:[#allocation26_spill] sm:$0xff]  ;;  %v5371_v31 = vld [vmem:[#allocation27_spill] sm:$0xff] }
 0x146   : > { %1261 = vmatpush1.msra.mxu0 %v3572_v32  ;;  %1332 = vmatpush1.msra.mxu1 %v3577_v33  ;;  %v5372_v32 = vld [vmem:[#allocation28_spill] sm:$0xff]  ;;  %v5373_v33 = vld [vmem:[#allocation29_spill] sm:$0xff] }
 0x147   : > { %1262 = vmatprep.subr.mxu0 %v3584_v34  ;;  %1333 = vmatprep.subr.mxu1 %v3589_v35  ;;  %v5374_v34 = vld [vmem:[#allocation30_spill] sm:$0xff]  ;;  %v5375_v35 = vmov 0.0  }
 0x148   : > { %1263 = vmatpush1.msra.mxu0 %v3596_v36  ;;  %1334 = vmatpush1.msra.mxu1 %v3601_v37  ;;  %v5376_v36 = vld [vmem:[#allocation31_spill] sm:$0xff] }
 0x149   : > { %1264 = vmatprep.subr.mxu0 %v3608_v38  ;;  %1335 = vmatprep.subr.mxu1 %v3613_v39  ;;  %v5377_v38 = vld [vmem:[#allocation33_spill] sm:$0xff] }
 0x14a   : > { %1265 = vmatpush1.msra.mxu0 %v3620_v40  ;;  %1336 = vmatpush1.msra.mxu1 %v3625_v41 }
 0x14b   : > { %1266 = vmatprep.subr.mxu0 %v3632_v42  ;;  %1337 = vmatprep.subr.mxu1 %v3637_v43  ;;  %v5378_v42 = vld [vmem:[#allocation34_spill] sm:$0xff] }
 0x14c   : > { %1267 = vmatpush1.msra.mxu0 %v3644_v44  ;;  %1338 = vmatpush1.msra.mxu1 %v3651_v45 }
 0x14d   : > { %1268 = vmatprep.subr.mxu0 %v3659_v47  ;;  %1339 = vmatprep.subr.mxu1 %v3664_v48  ;;  %v5379_v48 = vld [vmem:[#allocation37_spill] sm:$0xff] }
 0x14e   : > { %1269 = vmatpush1.msra.mxu0 %v3671_v49  ;;  %1340 = vmatpush1.msra.mxu1 %v3678_v50  ;;  %v5380_v50 = vld [vmem:[#allocation35_spill] sm:$0xff] }
 0x14f   : > { %1270 = vmatprep.subr.mxu0 %v5352_v12  ;;  %1341 = vmatprep.subr.mxu1 %v5353_v13  ;;  %v1486_v12 = vld [vmem:[%s5218_s2 + $0x1a8] sm:$0xff]  ;;  %v1488_v13 = vld [vmem:[%s5218_s2 + $0x1b8] sm:$0xff] }
 0x150   : > { %1271 = vmatpush1.msra.mxu0 %v5354_v14  ;;  %1342 = vmatpush1.msra.mxu1 %v5355_v15  ;;  %v1485_v14 = vld [vmem:[%s5218_s2 + $0x1a0] sm:$0xff]  ;;  %v1487_v15 = vld [vmem:[%s5218_s2 + $0x1b0] sm:$0xff] }
 0x151   : > { %1272 = vmatprep.subr.mxu0 %v5356_v16  ;;  %1343 = vmatprep.subr.mxu1 %v5357_v17  ;;  %v1482_v16 = vld [vmem:[%s5218_s2 + $0x188] sm:$0xff]  ;;  %v1484_v17 = vld [vmem:[%s5218_s2 + $0x198] sm:$0xff] }
 0x152   : > { %1273 = vmatpush1.msra.mxu0 %v5358_v18  ;;  %1344 = vmatpush1.msra.mxu1 %v5359_v19  ;;  %v1481_v18 = vld [vmem:[%s5218_s2 + $0x180] sm:$0xff]  ;;  %v1483_v19 = vld [vmem:[%s5218_s2 + $0x190] sm:$0xff] }
 0x153   : > { %1274 = vmatprep.subr.mxu0 %v5360_v20  ;;  %1345 = vmatprep.subr.mxu1 %v5361_v21  ;;  %v1478_v20 = vld [vmem:[%s5218_s2 + $0x168] sm:$0xff]  ;;  %v1480_v21 = vld [vmem:[%s5218_s2 + $0x178] sm:$0xff] }
 0x154   : > { %1275 = vmatpush1.msra.mxu0 %v5362_v22  ;;  %1346 = vmatpush1.msra.mxu1 %v5363_v23  ;;  %v1477_v22 = vld [vmem:[%s5218_s2 + $0x160] sm:$0xff]  ;;  %v1479_v23 = vld [vmem:[%s5218_s2 + $0x170] sm:$0xff] }
 0x155   : > { %1276 = vmatprep.subr.mxu0 %v5364_v24  ;;  %1347 = vmatprep.subr.mxu1 %v5365_v25  ;;  %v1474_v24 = vld [vmem:[%s5218_s2 + $0x148] sm:$0xff]  ;;  %v1476_v25 = vld [vmem:[%s5218_s2 + $0x158] sm:$0xff] }
 0x156   : > { %1277 = vmatpush1.msra.mxu0 %v5366_v26  ;;  %1348 = vmatpush1.msra.mxu1 %v5367_v27  ;;  %v1473_v26 = vld [vmem:[%s5218_s2 + $0x140] sm:$0xff]  ;;  %v1475_v27 = vld [vmem:[%s5218_s2 + $0x150] sm:$0xff] }
 0x157   : > { %1278 = vmatprep.subr.mxu0 %v5368_v28  ;;  %1349 = vmatprep.subr.mxu1 %v5369_v29  ;;  %v1470_v28 = vld [vmem:[%s5218_s2 + $0x128] sm:$0xff]  ;;  %v1472_v29 = vld [vmem:[%s5218_s2 + $0x138] sm:$0xff] }
 0x158   : > { %1279 = vmatpush1.msra.mxu0 %v5370_v30  ;;  %1350 = vmatpush1.msra.mxu1 %v5371_v31  ;;  %v1469_v30 = vld [vmem:[%s5218_s2 + $0x120] sm:$0xff]  ;;  %v1471_v31 = vld [vmem:[%s5218_s2 + $0x130] sm:$0xff] }
 0x159   : > { %1280 = vmatprep.subr.mxu0 %v5372_v32  ;;  %1351 = vmatprep.subr.mxu1 %v5373_v33  ;;  %v1466_v32 = vld [vmem:[%s5218_s2 + $0x108] sm:$0xff]  ;;  %v1468_v33 = vld [vmem:[%s5218_s2 + $0x118] sm:$0xff] }
 0x15a   : > { %1281 = vmatpush1.msra.mxu0 %v5374_v34  ;;  %1314 = vmatprep.mubr.f32.mxu0 %v5375_v35  ;;  %v1465_v34 = vld [vmem:[%s5218_s2 + $0x100] sm:$0xff] }
 0x15b   : > { %1352 = vmatpush1.msra.mxu1 %v5376_v36  ;;  %1385 = vmatprep.mubr.f32.mxu1 %v5375_v35  ;;  %v1467_v36 = vld [vmem:[%s5218_s2 + $0x110] sm:$0xff] }
 0x15c   : > { %1497 = vmatprep.subr.mxu0 %v1494_v6  ;;  %1568 = vmatprep.subr.mxu1 %v1496_v52  ;;  %v1434_v6 = vld [vmem:[%s5218_s2 + $0x8] sm:$0xff]  ;;  %v1436_v52 = vld [vmem:[%s5218_s2 + $0x18] sm:$0xff] }
 0x1fb   : > { %v1069_v37 = vpop.f32.mrf.mxu0  ;;  %v1140_v44 = vpop.f32.mrf.mxu1 }
 0x1fc   : > { %v1145_v39 = vadd.f32 %v1069_v37, %v5377_v38  ;;  %v1147_v51 = vadd.f32 %v1140_v44, %v5380_v50  ;;  %v1462_v37 = vld [vmem:[%s5218_s2 + $0xe8] sm:$0xff]  ;;  %v1464_v38 = vld [vmem:[%s5218_s2 + $0xf8] sm:$0xff]  ;;  %v1459_v44 = vld [vmem:[%s5218_s2 + $0xd0] sm:$0xff] }
 0x1fd   : > { %v1071_v40 = vpop.f32.mrf.mxu0  ;;  %v1142_v47 = vpop.f32.mrf.mxu1  ;;  %v1450_v50 = vld [vmem:[%s5218_s2 + $0x88] sm:$0xff] }
 0x1fe   : > { %v3100_v41 = vmul.f32 -1.442695, %v1145_v39  ;;  %v1146_v43 = vadd.f32 %v1071_v40, %v5378_v42  ;;  %v1148_v49 = vadd.f32 %v1142_v47, %v5379_v48  ;;  %v1461_v39 = vld [vmem:[%s5218_s2 + $0xe0] sm:$0xff]  ;;  %v1463_v40 = vld [vmem:[%s5218_s2 + $0xf0] sm:$0xff]  ;;  %v1460_v42 = vld [vmem:[%s5218_s2 + $0xd8] sm:$0xff] }
 0x1ff   : > { %v1456_v47 = vld [vmem:[%s5218_s2 + $0xb8] sm:$0xff]  ;;  %v1453_v48 = vld [vmem:[%s5218_s2 + $0xa0] sm:$0xff] }
 0x200   : > { %3208 = vpow2.f32 %v3100_v41  ;;  %v3101_v45 = vmul.f32 -1.442695, %v1146_v43  ;;  %v3102_v56 = vmul.f32 -1.442695, %v1148_v49  ;;  %v1458_v41 = vld [vmem:[%s5218_s2 + $0xc8] sm:$0xff]  ;;  %v1457_v43 = vld [vmem:[%s5218_s2 + $0xc0] sm:$0xff] }
 0x201   : > { %v1455_v49 = vld [vmem:[%s5218_s2 + $0xb0] sm:$0xff] }
 0x202   : > { %3210 = vpow2.f32 %v3101_v45  ;;  %v1454_v45 = vld [vmem:[%s5218_s2 + $0xa8] sm:$0xff] }
 0x203   : > { %3212 = vtanh.f32 %v1147_v51  ;;  %v1452_v51 = vld [vmem:[%s5218_s2 + $0x98] sm:$0xff] }
 0x204   : > { %3214 = vpow2.f32 %v3102_v56  ;;  %v1449_v56 = vld [vmem:[%s5218_s2 + $0x80] sm:$0xff] }
 0x20d   : > { %v3209_v55 = vpop.eup %3208 }
 0x20e   : > { %v1152_v11 = vadd.f32 1.0, %v3209_v55  ;;  %v1451_v55 = vld [vmem:[%s5218_s2 + $0x90] sm:$0xff] }
 0x20f   : > { %v3211_v61 = vpop.eup %3210 }
 0x210   : > { %3216 = vrcp.f32 %v1152_v11  ;;  %v1158_v59 = vadd.f32 1.0, %v3211_v61  ;;  %v3213_v0 = vpop.eup %3212  ;;  %v1446_v11 = vld [vmem:[%s5218_s2 + $0x68] sm:$0xff]  ;;  %v1448_v61 = vld [vmem:[%s5218_s2 + $0x78] sm:$0xff] }
 0x211   : > { %v3215_v54 = vpop.eup %3214 }
 0x212   : > { %3218 = vrcp.f32 %v1158_v59  ;;  %v1165_v2 = vadd.f32 1.0, %v3215_v54  ;;  %v1445_v59 = vld [vmem:[%s5218_s2 + $0x60] sm:$0xff]  ;;  %v1442_v54 = vld [vmem:[%s5218_s2 + $0x48] sm:$0xff] }
 0x214   : > { %3220 = vrcp.f32 %v1165_v2  ;;  %v1438_v2 = vld [vmem:[%s5218_s2 + $0x28] sm:$0xff] }
 0x21d   : > { %v3217_v1 = vpop.eup %3216 }
 0x21e   : > { %v1170_v10 = vmul.f32 %v3217_v1, %v3213_v0  ;;  %v1447_v0 = vld [vmem:[%s5218_s2 + $0x70] sm:$0xff]  ;;  %v1444_v1 = vld [vmem:[%s5218_s2 + $0x58] sm:$0xff] }
 0x21f   : > { %v3219_v8 = vpop.eup %3218 }
 0x220   : > { %v1169_v57 = vmul.f32 %v3219_v8, %v3951_v62  ;;  %v1492_v62 = vld [vmem:[%s5218_s2 + $0x1d8] sm:$0xff]  ;;  %v1443_v8 = vld [vmem:[%s5218_s2 + $0x50] sm:$0xff] }
 0x221   : > { %v3221_v3 = vpop.eup %3220 }
 0x222   : > { %v4027_v5 = vadd.f32 %v1170_v10, %v1169_v57  ;;  %v1441_v10 = vld [vmem:[%s5218_s2 + $0x40] sm:$0xff]  ;;  %v1440_v57 = vld [vmem:[%s5218_s2 + $0x38] sm:$0xff] }
 0x224   : > { %3222 = vtanh.f32 %v4027_v5 }
 0x231   : > { %v3223_v53 = vpop.eup %3222 }
 0x232   : > { %v4030_v60 = vmul.f32 %v3223_v53, %v3221_v3  ;;  %v1437_v3 = vld [vmem:[%s5218_s2 + $0x20] sm:$0xff]  ;;  %v1439_v53 = vld [vmem:[%s5218_s2 + $0x30] sm:$0xff] }
 0x234   : > { %1315 = vmatmul.mubr.f32.vlgmr.msra.gmra.mxu0 %v4030_v60  ;;  %1386 = vmatmul.mubr.f32.vlgmr.msra.gmra.mxu1 %v4030_v60 }
 0x235   : > { %1561 = vmatprep.mubr.f32.mxu0 %v5375_v35  ;;  %1632 = vmatprep.mubr.f32.mxu1 %v5375_v35 }
 0x236   : > { %1498 = vmatpush1.msra.mxu0 %v1493_v9  ;;  %1569 = vmatpush1.msra.mxu1 %v1495_v58  ;;  %v1433_v9 = vld [vmem:[%s5218_s2] sm:$0xff]  ;;  %v1435_v58 = vld [vmem:[%s5218_s2 + $0x10] sm:$0xff] }
 0x237   : > { %1499 = vmatprep.subr.mxu0 %v1490_v4  ;;  %1570 = vmatprep.subr.mxu1 %v1492_v62  ;;  %v1737_v4 = vld [vmem:[%s5220_s4 + $0x1e8] sm:$0xff]  ;;  %v1739_v62 = vld [vmem:[%s5220_s4 + $0x1f8] sm:$0xff] }
 0x238   : > { %1500 = vmatpush1.msra.mxu0 %v1489_v63  ;;  %1571 = vmatpush1.msra.mxu1 %v1491_v7  ;;  %v5381_v7 = vld [vmem:[#allocation36_spill] sm:$0xff] }
 0x239   : > { %1501 = vmatprep.subr.mxu0 %v1486_v12  ;;  %1572 = vmatprep.subr.mxu1 %v1488_v13 }
 0x23a   : > { %1502 = vmatpush1.msra.mxu0 %v1485_v14  ;;  %1573 = vmatpush1.msra.mxu1 %v1487_v15  ;;  %v5382_v15 = vld [vmem:[#allocation38_spill] sm:$0xff] }
 0x23b   : > { %1503 = vmatprep.subr.mxu0 %v1482_v16  ;;  %1574 = vmatprep.subr.mxu1 %v1484_v17 }
 0x23c   : > { %1504 = vmatpush1.msra.mxu0 %v1481_v18  ;;  %1575 = vmatpush1.msra.mxu1 %v1483_v19 }
 0x23d   : > { %1505 = vmatprep.subr.mxu0 %v1478_v20  ;;  %1576 = vmatprep.subr.mxu1 %v1480_v21  ;;  %v5383_v20 = vld [vmem:[#allocation41_spill] sm:$0xff] }
 0x23e   : > { %1506 = vmatpush1.msra.mxu0 %v1477_v22  ;;  %1577 = vmatpush1.msra.mxu1 %v1479_v23  ;;  %v5384_v22 = vld [vmem:[#allocation39_spill] sm:$0xff] }
 0x23f   : > { %1507 = vmatprep.subr.mxu0 %v1474_v24  ;;  %1578 = vmatprep.subr.mxu1 %v1476_v25 }
 0x240   : > { %1508 = vmatpush1.msra.mxu0 %v1473_v26  ;;  %1579 = vmatpush1.msra.mxu1 %v1475_v27 }
 0x241   : > { %1509 = vmatprep.subr.mxu0 %v1470_v28  ;;  %1580 = vmatprep.subr.mxu1 %v1472_v29 }
 0x242   : > { %1510 = vmatpush1.msra.mxu0 %v1469_v30  ;;  %1581 = vmatpush1.msra.mxu1 %v1471_v31 }
 0x243   : > { %1511 = vmatprep.subr.mxu0 %v1466_v32  ;;  %1582 = vmatprep.subr.mxu1 %v1468_v33 }
 0x244   : > { %1512 = vmatpush1.msra.mxu0 %v1465_v34  ;;  %1583 = vmatpush1.msra.mxu1 %v1467_v36 }
 0x245   : > { %1513 = vmatprep.subr.mxu0 %v1462_v37  ;;  %1584 = vmatprep.subr.mxu1 %v1464_v38 }
 0x246   : > { %1514 = vmatpush1.msra.mxu0 %v1461_v39  ;;  %1585 = vmatpush1.msra.mxu1 %v1463_v40 }
 0x247   : > { %1515 = vmatprep.subr.mxu0 %v1458_v41  ;;  %1586 = vmatprep.subr.mxu1 %v1460_v42  ;;  %v1736_v41 = vld [vmem:[%s5220_s4 + $0x1e0] sm:$0xff]  ;;  %v1738_v42 = vld [vmem:[%s5220_s4 + $0x1f0] sm:$0xff] }
 0x248   : > { %1516 = vmatpush1.msra.mxu0 %v1457_v43  ;;  %1587 = vmatpush1.msra.mxu1 %v1459_v44  ;;  %v1735_v43 = vld [vmem:[%s5220_s4 + $0x1d8] sm:$0xff]  ;;  %v1732_v44 = vld [vmem:[%s5220_s4 + $0x1c0] sm:$0xff] }
 0x249   : > { %1517 = vmatprep.subr.mxu0 %v1454_v45  ;;  %1588 = vmatprep.subr.mxu1 %v1456_v47  ;;  %v1734_v45 = vld [vmem:[%s5220_s4 + $0x1d0] sm:$0xff]  ;;  %v1729_v47 = vld [vmem:[%s5220_s4 + $0x1a8] sm:$0xff] }
 0x24a   : > { %1518 = vmatpush1.msra.mxu0 %v1453_v48  ;;  %1589 = vmatpush1.msra.mxu1 %v1455_v49  ;;  %v1731_v48 = vld [vmem:[%s5220_s4 + $0x1b8] sm:$0xff]  ;;  %v1728_v49 = vld [vmem:[%s5220_s4 + $0x1a0] sm:$0xff] }
 0x24b   : > { %1519 = vmatprep.subr.mxu0 %v1450_v50  ;;  %1590 = vmatprep.subr.mxu1 %v1452_v51  ;;  %v1730_v50 = vld [vmem:[%s5220_s4 + $0x1b0] sm:$0xff]  ;;  %v1725_v51 = vld [vmem:[%s5220_s4 + $0x188] sm:$0xff] }
 0x24c   : > { %1520 = vmatpush1.msra.mxu0 %v1449_v56  ;;  %1591 = vmatpush1.msra.mxu1 %v1451_v55  ;;  %v1727_v56 = vld [vmem:[%s5220_s4 + $0x198] sm:$0xff]  ;;  %v1724_v55 = vld [vmem:[%s5220_s4 + $0x180] sm:$0xff] }
 0x24d   : > { %1521 = vmatprep.subr.mxu0 %v1446_v11  ;;  %1592 = vmatprep.subr.mxu1 %v1448_v61  ;;  %v1726_v11 = vld [vmem:[%s5220_s4 + $0x190] sm:$0xff]  ;;  %v1721_v61 = vld [vmem:[%s5220_s4 + $0x168] sm:$0xff] }
 0x24e   : > { %1522 = vmatpush1.msra.mxu0 %v1445_v59  ;;  %1593 = vmatpush1.msra.mxu1 %v1447_v0  ;;  %v1723_v59 = vld [vmem:[%s5220_s4 + $0x178] sm:$0xff]  ;;  %v1720_v0 = vld [vmem:[%s5220_s4 + $0x160] sm:$0xff] }
 0x24f   : > { %1523 = vmatprep.subr.mxu0 %v1442_v54  ;;  %1594 = vmatprep.subr.mxu1 %v1444_v1  ;;  %v1722_v54 = vld [vmem:[%s5220_s4 + $0x170] sm:$0xff]  ;;  %v1717_v1 = vld [vmem:[%s5220_s4 + $0x148] sm:$0xff] }
 0x250   : > { %1524 = vmatpush1.msra.mxu0 %v1441_v10  ;;  %1595 = vmatpush1.msra.mxu1 %v1443_v8  ;;  %v1719_v10 = vld [vmem:[%s5220_s4 + $0x158] sm:$0xff]  ;;  %v1716_v8 = vld [vmem:[%s5220_s4 + $0x140] sm:$0xff] }
 0x251   : > { %1525 = vmatprep.subr.mxu0 %v1438_v2  ;;  %1596 = vmatprep.subr.mxu1 %v1440_v57  ;;  %v1718_v2 = vld [vmem:[%s5220_s4 + $0x150] sm:$0xff]  ;;  %v1713_v57 = vld [vmem:[%s5220_s4 + $0x128] sm:$0xff] }
 0x252   : > { %1526 = vmatpush1.msra.mxu0 %v1437_v3  ;;  %1597 = vmatpush1.msra.mxu1 %v1439_v53  ;;  %v1715_v3 = vld [vmem:[%s5220_s4 + $0x138] sm:$0xff]  ;;  %v1712_v53 = vld [vmem:[%s5220_s4 + $0x120] sm:$0xff] }
 0x253   : > { %1527 = vmatprep.subr.mxu0 %v1434_v6  ;;  %1598 = vmatprep.subr.mxu1 %v1436_v52  ;;  %v1714_v6 = vld [vmem:[%s5220_s4 + $0x130] sm:$0xff]  ;;  %v1709_v52 = vld [vmem:[%s5220_s4 + $0x108] sm:$0xff] }
 0x254   : > { %1528 = vmatpush1.msra.mxu0 %v1433_v9  ;;  %1599 = vmatpush1.msra.mxu1 %v1435_v58  ;;  %v1711_v9 = vld [vmem:[%s5220_s4 + $0x118] sm:$0xff]  ;;  %v1708_v58 = vld [vmem:[%s5220_s4 + $0x100] sm:$0xff] }
 0x255   : > { %1762 = vmatprep.subr.mxu0 %v1737_v4  ;;  %1851 = vmatprep.subr.mxu1 %v1739_v62  ;;  %v1710_v4 = vld [vmem:[%s5220_s4 + $0x110] sm:$0xff]  ;;  %v1705_v62 = vld [vmem:[%s5220_s4 + $0xe8] sm:$0xff] }
 0x2f4   : > { %v1316_v63 = vpop.f32.mrf.mxu0  ;;  %v1387_v17 = vpop.f32.mrf.mxu1 }
 0x2f5   : > { %v1392_v12 = vadd.f32 %v1316_v63, %v5381_v7  ;;  %v1394_v23 = vadd.f32 %v1387_v17, %v5384_v22  ;;  %v1707_v63 = vld [vmem:[%s5220_s4 + $0xf8] sm:$0xff]  ;;  %v1704_v7 = vld [vmem:[%s5220_s4 + $0xe0] sm:$0xff]  ;;  %v1697_v17 = vld [vmem:[%s5220_s4 + $0xa8] sm:$0xff] }
 0x2f6   : > { %v1318_v13 = vpop.f32.mrf.mxu0  ;;  %v1389_v19 = vpop.f32.mrf.mxu1  ;;  %v1695_v22 = vld [vmem:[%s5220_s4 + $0x98] sm:$0xff] }
 0x2f7   : > { %v3103_v14 = vmul.f32 -1.442695, %v1392_v12  ;;  %v1393_v16 = vadd.f32 %v1318_v13, %v5382_v15  ;;  %v1395_v21 = vadd.f32 %v1389_v19, %v5383_v20  ;;  %v1706_v12 = vld [vmem:[%s5220_s4 + $0xf0] sm:$0xff]  ;;  %v1701_v13 = vld [vmem:[%s5220_s4 + $0xc8] sm:$0xff]  ;;  %v1700_v15 = vld [vmem:[%s5220_s4 + $0xc0] sm:$0xff] }
 0x2f8   : > { %v1696_v19 = vld [vmem:[%s5220_s4 + $0xa0] sm:$0xff]  ;;  %v1698_v20 = vld [vmem:[%s5220_s4 + $0xb0] sm:$0xff] }
 0x2f9   : > { %3224 = vpow2.f32 %v3103_v14  ;;  %v3104_v18 = vmul.f32 -1.442695, %v1393_v16  ;;  %v3105_v24 = vmul.f32 -1.442695, %v1395_v21  ;;  %v1703_v14 = vld [vmem:[%s5220_s4 + $0xd8] sm:$0xff]  ;;  %v1702_v16 = vld [vmem:[%s5220_s4 + $0xd0] sm:$0xff] }
 0x2fa   : > { %v1693_v21 = vld [vmem:[%s5220_s4 + $0x88] sm:$0xff] }
 0x2fb   : > { %3226 = vpow2.f32 %v3104_v18  ;;  %v1699_v18 = vld [vmem:[%s5220_s4 + $0xb8] sm:$0xff] }
 0x2fc   : > { %3228 = vtanh.f32 %v1394_v23  ;;  %v1692_v23 = vld [vmem:[%s5220_s4 + $0x80] sm:$0xff] }
 0x2fd   : > { %3230 = vpow2.f32 %v3105_v24  ;;  %v1694_v24 = vld [vmem:[%s5220_s4 + $0x90] sm:$0xff] }
 0x306   : > { %v3225_v25 = vpop.eup %3224 }
 0x307   : > { %v1399_v26 = vadd.f32 1.0, %v3225_v25  ;;  %v1689_v25 = vld [vmem:[%s5220_s4 + $0x68] sm:$0xff] }
 0x308   : > { %v3227_v27 = vpop.eup %3226 }
 0x309   : > { %3232 = vrcp.f32 %v1399_v26  ;;  %v1405_v28 = vadd.f32 1.0, %v3227_v27  ;;  %v3229_v29 = vpop.eup %3228  ;;  %v1691_v26 = vld [vmem:[%s5220_s4 + $0x78] sm:$0xff]  ;;  %v1688_v27 = vld [vmem:[%s5220_s4 + $0x60] sm:$0xff] }
 0x30a   : > { %v3231_v30 = vpop.eup %3230 }
 0x30b   : > { %3234 = vrcp.f32 %v1405_v28  ;;  %v1412_v34 = vadd.f32 1.0, %v3231_v30  ;;  %v1690_v28 = vld [vmem:[%s5220_s4 + $0x70] sm:$0xff]  ;;  %v1687_v30 = vld [vmem:[%s5220_s4 + $0x58] sm:$0xff] }
 0x30d   : > { %3236 = vrcp.f32 %v1412_v34  ;;  %v1683_v34 = vld [vmem:[%s5220_s4 + $0x38] sm:$0xff] }
 0x316   : > { %v3233_v31 = vpop.eup %3232 }
 0x317   : > { %v1417_v32 = vmul.f32 %v3233_v31, %v3229_v29  ;;  %v1685_v29 = vld [vmem:[%s5220_s4 + $0x48] sm:$0xff]  ;;  %v1684_v31 = vld [vmem:[%s5220_s4 + $0x40] sm:$0xff] }
 0x318   : > { %v3235_v33 = vpop.eup %3234 }
 0x319   : > { %v1416_v36 = vmul.f32 %v3235_v33, %v4027_v5  ;;  %v1733_v5 = vld [vmem:[%s5220_s4 + $0x1c8] sm:$0xff] }
 0x31a   : > { %v3237_v38 = vpop.eup %3236  ;;  %v1681_v33 = vld [vmem:[%s5220_s4 + $0x28] sm:$0xff] }
 0x31b   : > { %v4239_v37 = vadd.f32 %v1417_v32, %v1416_v36  ;;  %v1686_v32 = vld [vmem:[%s5220_s4 + $0x50] sm:$0xff]  ;;  %v1680_v36 = vld [vmem:[%s5220_s4 + $0x20] sm:$0xff] }
 0x31d   : > { %3238 = vtanh.f32 %v4239_v37 }
 0x32a   : > { %v3239_v39 = vpop.eup %3238 }
 0x32b   : > { %v4242_v40 = vmul.f32 %v3239_v39, %v3237_v38  ;;  %v1682_v38 = vld [vmem:[%s5220_s4 + $0x30] sm:$0xff]  ;;  %v1677_v39 = vld [vmem:[%s5220_s4 + $0x8] sm:$0xff] }
 0x32d   : > { %1562 = vmatmul.mubr.f32.vlgmr.msra.gmra.mxu0 %v4242_v40  ;;  %1633 = vmatmul.mubr.f32.vlgmr.msra.gmra.mxu1 %v4242_v40 }
 0x32e   : > { %1763 = vmatpush1.msra.mxu0 %v1736_v41  ;;  %1852 = vmatpush1.msra.mxu1 %v1738_v42  ;;  %v1679_v41 = vld [vmem:[%s5220_s4 + $0x18] sm:$0xff]  ;;  %v1676_v42 = vld [vmem:[%s5220_s4] sm:$0xff] }
 0x32f   : > { %1764 = vmatprep.subr.mxu0 %v1733_v5  ;;  %1853 = vmatprep.subr.mxu1 %v1735_v43  ;;  %v1678_v5 = vld [vmem:[%s5220_s4 + $0x10] sm:$0xff] }
 0x330   : > { %1765 = vmatpush1.msra.mxu0 %v1732_v44  ;;  %1854 = vmatpush1.msra.mxu1 %v1734_v45  ;;  %v4466_v43 = vld [vmem:[%s5221_s5 + $0x1f0] sm:$0xff]  ;;  %v4473_v44 = vld [vmem:[%s5221_s5 + $0x1c8] sm:$0xff]  ;;  %v4478_v45 = vld [vmem:[%s5221_s5 + $0x1d8] sm:$0xff] }
 0x331   : > { %1766 = vmatprep.subr.mxu0 %v1729_v47  ;;  %1855 = vmatprep.subr.mxu1 %v1731_v48  ;;  %v4485_v47 = vld [vmem:[%s5221_s5 + $0x1c0] sm:$0xff]  ;;  %v4490_v48 = vld [vmem:[%s5221_s5 + $0x1d0] sm:$0xff] }
 0x332   : > { %1767 = vmatpush1.msra.mxu0 %v1728_v49  ;;  %1856 = vmatpush1.msra.mxu1 %v1730_v50  ;;  %v4497_v49 = vld [vmem:[%s5221_s5 + $0x1a8] sm:$0xff]  ;;  %v4502_v50 = vld [vmem:[%s5221_s5 + $0x1b8] sm:$0xff] }
 0x333   : > { %1768 = vmatprep.subr.mxu0 %v1725_v51  ;;  %1857 = vmatprep.subr.mxu1 %v1727_v56  ;;  %v4509_v51 = vld [vmem:[%s5221_s5 + $0x1a0] sm:$0xff]  ;;  %v4514_v56 = vld [vmem:[%s5221_s5 + $0x1b0] sm:$0xff] }
 0x334   : > { %1769 = vmatpush1.msra.mxu0 %v1724_v55  ;;  %1858 = vmatpush1.msra.mxu1 %v1726_v11  ;;  %v4521_v55 = vld [vmem:[%s5221_s5 + $0x188] sm:$0xff]  ;;  %v4526_v11 = vld [vmem:[%s5221_s5 + $0x198] sm:$0xff] }
 0x335   : > { %1770 = vmatprep.subr.mxu0 %v1721_v61  ;;  %1859 = vmatprep.subr.mxu1 %v1723_v59  ;;  %v4533_v61 = vld [vmem:[%s5221_s5 + $0x180] sm:$0xff]  ;;  %v4538_v59 = vld [vmem:[%s5221_s5 + $0x190] sm:$0xff] }
 0x336   : > { %1771 = vmatpush1.msra.mxu0 %v1720_v0  ;;  %1860 = vmatpush1.msra.mxu1 %v1722_v54  ;;  %v4545_v0 = vld [vmem:[%s5221_s5 + $0x168] sm:$0xff]  ;;  %v4550_v54 = vld [vmem:[%s5221_s5 + $0x178] sm:$0xff] }
 0x337   : > { %1772 = vmatprep.subr.mxu0 %v1717_v1  ;;  %1861 = vmatprep.subr.mxu1 %v1719_v10  ;;  %v4557_v1 = vld [vmem:[%s5221_s5 + $0x160] sm:$0xff]  ;;  %v4562_v10 = vld [vmem:[%s5221_s5 + $0x170] sm:$0xff] }
 0x338   : > { %1773 = vmatpush1.msra.mxu0 %v1716_v8  ;;  %1862 = vmatpush1.msra.mxu1 %v1718_v2  ;;  %v4569_v8 = vld [vmem:[%s5221_s5 + $0x148] sm:$0xff]  ;;  %v4574_v2 = vld [vmem:[%s5221_s5 + $0x158] sm:$0xff] }
 0x339   : > { %1774 = vmatprep.subr.mxu0 %v1713_v57  ;;  %1863 = vmatprep.subr.mxu1 %v1715_v3  ;;  %v4581_v57 = vld [vmem:[%s5221_s5 + $0x140] sm:$0xff]  ;;  %v4586_v3 = vld [vmem:[%s5221_s5 + $0x150] sm:$0xff] }
 0x33a   : > { %1775 = vmatpush1.msra.mxu0 %v1712_v53  ;;  %1864 = vmatpush1.msra.mxu1 %v1714_v6  ;;  %v4593_v53 = vld [vmem:[%s5221_s5 + $0x128] sm:$0xff]  ;;  %v4598_v6 = vld [vmem:[%s5221_s5 + $0x138] sm:$0xff] }
 0x33b   : > { %1776 = vmatprep.subr.mxu0 %v1709_v52  ;;  %1865 = vmatprep.subr.mxu1 %v1711_v9  ;;  %v4605_v52 = vld [vmem:[%s5221_s5 + $0x120] sm:$0xff]  ;;  %v4610_v9 = vld [vmem:[%s5221_s5 + $0x130] sm:$0xff] }
 0x33c   : > { %1777 = vmatpush1.msra.mxu0 %v1708_v58  ;;  %1866 = vmatpush1.msra.mxu1 %v1710_v4  ;;  %v4617_v58 = vld [vmem:[%s5221_s5 + $0x108] sm:$0xff]  ;;  %v4622_v4 = vld [vmem:[%s5221_s5 + $0x118] sm:$0xff] }
 0x33d   : > { %1778 = vmatprep.subr.mxu0 %v1705_v62  ;;  %1867 = vmatprep.subr.mxu1 %v1707_v63  ;;  %v4627_v62 = vld [vmem:[%s5221_s5 + $0x100] sm:$0xff]  ;;  %v4634_v63 = vld [vmem:[%s5221_s5 + $0x110] sm:$0xff] }
 0x33e   : > { %1779 = vmatpush1.msra.mxu0 %v1704_v7  ;;  %1868 = vmatpush1.msra.mxu1 %v1706_v12  ;;  %v4639_v7 = vld [vmem:[%s5221_s5 + $0xe8] sm:$0xff]  ;;  %v4644_v12 = vld [vmem:[%s5221_s5 + $0xf8] sm:$0xff] }
 0x33f   : > { %1780 = vmatprep.subr.mxu0 %v1701_v13  ;;  %1869 = vmatprep.subr.mxu1 %v1703_v14  ;;  %v4651_v13 = vld [vmem:[%s5221_s5 + $0xe0] sm:$0xff]  ;;  %v4656_v14 = vld [vmem:[%s5221_s5 + $0xf0] sm:$0xff] }
 0x340   : > { %1781 = vmatpush1.msra.mxu0 %v1700_v15  ;;  %1870 = vmatpush1.msra.mxu1 %v1702_v16  ;;  %v4661_v15 = vld [vmem:[%s5221_s5 + $0xc8] sm:$0xff]  ;;  %v4668_v16 = vld [vmem:[%s5221_s5 + $0xd8] sm:$0xff] }
 0x341   : > { %1782 = vmatprep.subr.mxu0 %v1697_v17  ;;  %1871 = vmatprep.subr.mxu1 %v1699_v18  ;;  %v4673_v17 = vld [vmem:[%s5221_s5 + $0xc0] sm:$0xff]  ;;  %v4678_v18 = vld [vmem:[%s5221_s5 + $0xd0] sm:$0xff] }
 0x342   : > { %1783 = vmatpush1.msra.mxu0 %v1696_v19  ;;  %1872 = vmatpush1.msra.mxu1 %v1698_v20  ;;  %v4685_v19 = vld [vmem:[%s5221_s5 + $0xa8] sm:$0xff]  ;;  %v4690_v20 = vld [vmem:[%s5221_s5 + $0xb8] sm:$0xff] }
 0x343   : > { %1784 = vmatprep.subr.mxu0 %v1693_v21  ;;  %1873 = vmatprep.subr.mxu1 %v1695_v22  ;;  %v4697_v21 = vld [vmem:[%s5221_s5 + $0xa0] sm:$0xff]  ;;  %v4702_v22 = vld [vmem:[%s5221_s5 + $0xb0] sm:$0xff] }
 0x344   : > { %1785 = vmatpush1.msra.mxu0 %v1692_v23  ;;  %1874 = vmatpush1.msra.mxu1 %v1694_v24  ;;  %v4709_v23 = vld [vmem:[%s5221_s5 + $0x88] sm:$0xff]  ;;  %v4714_v24 = vld [vmem:[%s5221_s5 + $0x98] sm:$0xff] }
 0x345   : > { %1786 = vmatprep.subr.mxu0 %v1689_v25  ;;  %1875 = vmatprep.subr.mxu1 %v1691_v26  ;;  %5387 = vst [vmem:[#allocation10_spill] sm:$0xff] %v4709_v23  ;;  %5388 = vst [vmem:[#allocation11_spill] sm:$0xff] %v4714_v24  ;;  %v4721_v25 = vld [vmem:[%s5221_s5 + $0x80] sm:$0xff]  ;;  %v4726_v26 = vld [vmem:[%s5221_s5 + $0x90] sm:$0xff] }
 0x346   : > { %1787 = vmatpush1.msra.mxu0 %v1688_v27  ;;  %1876 = vmatpush1.msra.mxu1 %v1690_v28  ;;  %5389 = vst [vmem:[#allocation12_spill] sm:$0xff] %v4721_v25  ;;  %5390 = vst [vmem:[#allocation13_spill] sm:$0xff] %v4726_v26  ;;  %v4733_v27 = vld [vmem:[%s5221_s5 + $0x68] sm:$0xff]  ;;  %v4738_v28 = vld [vmem:[%s5221_s5 + $0x78] sm:$0xff] }
 0x347   : > { %1788 = vmatprep.subr.mxu0 %v1685_v29  ;;  %1877 = vmatprep.subr.mxu1 %v1687_v30  ;;  %5391 = vst [vmem:[#allocation14_spill] sm:$0xff] %v4733_v27  ;;  %5392 = vst [vmem:[#allocation15_spill] sm:$0xff] %v4738_v28  ;;  %v4745_v29 = vld [vmem:[%s5221_s5 + $0x60] sm:$0xff]  ;;  %v4750_v30 = vld [vmem:[%s5221_s5 + $0x70] sm:$0xff] }
 0x348   : > { %1789 = vmatpush1.msra.mxu0 %v1684_v31  ;;  %1878 = vmatpush1.msra.mxu1 %v1686_v32  ;;  %5393 = vst [vmem:[#allocation16_spill] sm:$0xff] %v4745_v29  ;;  %5394 = vst [vmem:[#allocation17_spill] sm:$0xff] %v4750_v30  ;;  %v4757_v31 = vld [vmem:[%s5221_s5 + $0x48] sm:$0xff]  ;;  %v4762_v32 = vld [vmem:[%s5221_s5 + $0x58] sm:$0xff] }
 0x349   : > { %1790 = vmatprep.subr.mxu0 %v1681_v33  ;;  %1879 = vmatprep.subr.mxu1 %v1683_v34  ;;  %5395 = vst [vmem:[#allocation18_spill] sm:$0xff] %v4757_v31  ;;  %5396 = vst [vmem:[#allocation19_spill] sm:$0xff] %v4762_v32  ;;  %v4769_v33 = vld [vmem:[%s5221_s5 + $0x40] sm:$0xff]  ;;  %v4774_v34 = vld [vmem:[%s5221_s5 + $0x50] sm:$0xff] }
 0x34a   : > { %1791 = vmatpush1.msra.mxu0 %v1680_v36  ;;  %1880 = vmatpush1.msra.mxu1 %v1682_v38  ;;  %5397 = vst [vmem:[#allocation20_spill] sm:$0xff] %v4769_v33  ;;  %5398 = vst [vmem:[#allocation21_spill] sm:$0xff] %v4774_v34  ;;  %v4783_v36 = vld [vmem:[%s5221_s5 + $0x28] sm:$0xff]  ;;  %v4788_v38 = vld [vmem:[%s5221_s5 + $0x38] sm:$0xff] }
 0x34b   : > { %1792 = vmatprep.subr.mxu0 %v1677_v39  ;;  %1881 = vmatprep.subr.mxu1 %v1679_v41  ;;  %5399 = vst [vmem:[#allocation22_spill] sm:$0xff] %v4783_v36  ;;  %5400 = vst [vmem:[#allocation23_spill] sm:$0xff] %v4788_v38  ;;  %v4793_v39 = vld [vmem:[%s5221_s5 + $0x20] sm:$0xff]  ;;  %v4800_v41 = vld [vmem:[%s5221_s5 + $0x30] sm:$0xff] }
 0x34c   : > { %1793 = vmatpush1.msra.mxu0 %v1676_v42  ;;  %1826 = vmatprep.mubr.f32.mxu0 %v5375_v35  ;;  %5401 = vst [vmem:[#allocation24_spill] sm:$0xff] %v4793_v39  ;;  %5402 = vst [vmem:[#allocation25_spill] sm:$0xff] %v4800_v41  ;;  %v4805_v42 = vld [vmem:[%s5221_s5 + $0x8] sm:$0xff] }
 0x34d   : > { %1882 = vmatpush1.msra.mxu1 %v1678_v5  ;;  %1915 = vmatprep.mubr.f32.mxu1 %v5375_v35  ;;  %5403 = vst [vmem:[#allocation26_spill] sm:$0xff] %v4805_v42  ;;  %v4810_v5 = vld [vmem:[%s5221_s5 + $0x18] sm:$0xff] }
 0x34e   : > { %1827 = vmatmul.mubr.f32.vlgmr.msra.gmra.mxu0 %v3954_v46  ;;  %1916 = vmatmul.mubr.f32.vlgmr.msra.gmra.mxu1 %v3954_v46  ;;  %v4449_v46 = vld [vmem:[%s5221_s5 + $0x1e8] sm:$0xff]  ;;  %5404 = vst [vmem:[#allocation27_spill] sm:$0xff] %v4810_v5 }
 0x34f   : > { %1832 = vmatprep.mubr.f32.mxu0 %v5375_v35  ;;  %1921 = vmatprep.mubr.f32.mxu1 %v5375_v35  ;;  %5385 = vst [vmem:[#allocation8_spill] sm:$0xff] %v4449_v46 }
 0x350   : > { %2025 = vmatprep.subr.mxu0 %v4449_v46 }
 0x352   : > { %1833 = vmatmul.mubr.f32.gmra.mxu0 %v4030_v60  ;;  %1922 = vmatmul.mubr.f32.gmra.mxu1 %v4030_v60  ;;  %v4454_v60 = vld [vmem:[%s5221_s5 + $0x1f8] sm:$0xff] }
 0x353   : > { %1838 = vmatprep.mubr.f32.mxu0 %v5375_v35  ;;  %1927 = vmatprep.mubr.f32.mxu1 %v5375_v35  ;;  %5386 = vst [vmem:[#allocation9_spill] sm:$0xff] %v4454_v60 }
 0x354   : > { %2096 = vmatprep.subr.mxu1 %v4454_v60 }
 0x355   : > { %2097 = vmatpush1.msra.mxu1 %v4466_v43 }
 0x356   : > { %1839 = vmatmul.mubr.f32.gmra.mxu0 %v4242_v40  ;;  %1928 = vmatmul.mubr.f32.gmra.mxu1 %v4242_v40  ;;  %v4461_v40 = vld [vmem:[%s5221_s5 + $0x1e0] sm:$0xff] }
 0x357   : > { %1844 = vmatprep.mubr.f32.mxu0 %v5375_v35  ;;  %1933 = vmatprep.mubr.f32.mxu1 %v5375_v35 }
 0x358   : > { %2026 = vmatpush1.msra.mxu0 %v4461_v40  ;;  %2098 = vmatprep.subr.mxu1 %v4478_v45 }
 0x359   : > { %2027 = vmatprep.subr.mxu0 %v4473_v44  ;;  %2099 = vmatpush1.msra.mxu1 %v4490_v48 }
 0x35a   : > { %2028 = vmatpush1.msra.mxu0 %v4485_v47  ;;  %2100 = vmatprep.subr.mxu1 %v4502_v50 }
 0x35b   : > { %2029 = vmatprep.subr.mxu0 %v4497_v49  ;;  %2101 = vmatpush1.msra.mxu1 %v4514_v56 }
 0x35c   : > { %2030 = vmatpush1.msra.mxu0 %v4509_v51  ;;  %2102 = vmatprep.subr.mxu1 %v4526_v11 }
 0x35d   : > { %2031 = vmatprep.subr.mxu0 %v4521_v55  ;;  %2103 = vmatpush1.msra.mxu1 %v4538_v59 }
 0x35e   : > { %2032 = vmatpush1.msra.mxu0 %v4533_v61  ;;  %2104 = vmatprep.subr.mxu1 %v4550_v54 }
 0x35f   : > { %2033 = vmatprep.subr.mxu0 %v4545_v0  ;;  %2105 = vmatpush1.msra.mxu1 %v4562_v10 }
 0x360   : > { %2034 = vmatpush1.msra.mxu0 %v4557_v1  ;;  %2106 = vmatprep.subr.mxu1 %v4574_v2 }
 0x361   : > { %2035 = vmatprep.subr.mxu0 %v4569_v8  ;;  %2107 = vmatpush1.msra.mxu1 %v4586_v3 }
 0x362   : > { %2036 = vmatpush1.msra.mxu0 %v4581_v57  ;;  %2108 = vmatprep.subr.mxu1 %v4598_v6 }
 0x363   : > { %2037 = vmatprep.subr.mxu0 %v4593_v53  ;;  %2109 = vmatpush1.msra.mxu1 %v4610_v9 }
 0x364   : > { %2038 = vmatpush1.msra.mxu0 %v4605_v52  ;;  %2110 = vmatprep.subr.mxu1 %v4622_v4 }
 0x365   : > { %2039 = vmatprep.subr.mxu0 %v4617_v58  ;;  %2111 = vmatpush1.msra.mxu1 %v4634_v63 }
 0x366   : > { %2040 = vmatpush1.msra.mxu0 %v4627_v62  ;;  %2112 = vmatprep.subr.mxu1 %v4644_v12 }
 0x367   : > { %2041 = vmatprep.subr.mxu0 %v4639_v7  ;;  %2113 = vmatpush1.msra.mxu1 %v4656_v14 }
 0x368   : > { %2042 = vmatpush1.msra.mxu0 %v4651_v13  ;;  %2114 = vmatprep.subr.mxu1 %v4668_v16 }
 0x369   : > { %2043 = vmatprep.subr.mxu0 %v4661_v15  ;;  %2115 = vmatpush1.msra.mxu1 %v4678_v18 }
 0x36a   : > { %2044 = vmatpush1.msra.mxu0 %v4673_v17  ;;  %2116 = vmatprep.subr.mxu1 %v4690_v20 }
 0x36b   : > { %2045 = vmatprep.subr.mxu0 %v4685_v19  ;;  %2117 = vmatpush1.msra.mxu1 %v4702_v22 }
 0x36c   : > { %2046 = vmatpush1.msra.mxu0 %v4697_v21  ;;  %2118 = vmatprep.subr.mxu1 %v4714_v24 }
 0x36d   : > { %2047 = vmatprep.subr.mxu0 %v4709_v23  ;;  %2119 = vmatpush1.msra.mxu1 %v4726_v26 }
 0x36e   : > { %2048 = vmatpush1.msra.mxu0 %v4721_v25  ;;  %2120 = vmatprep.subr.mxu1 %v4738_v28  ;;  %v5409_v28 = vld [vmem:[#allocation44_spill] sm:$0xff] }
 0x36f   : > { %2049 = vmatprep.subr.mxu0 %v4733_v27  ;;  %2121 = vmatpush1.msra.mxu1 %v4750_v30  ;;  %v5410_v27 = vld [vmem:[#allocation43_spill] sm:$0xff] }
 0x370   : > { %2050 = vmatpush1.msra.mxu0 %v4745_v29  ;;  %2122 = vmatprep.subr.mxu1 %v4762_v32 }
 0x371   : > { %2051 = vmatprep.subr.mxu0 %v4757_v31  ;;  %2123 = vmatpush1.msra.mxu1 %v4774_v34  ;;  %v4817_v34 = vld [vmem:[%s5221_s5] sm:$0xff] }
 0x372   : > { %2052 = vmatpush1.msra.mxu0 %v4769_v33  ;;  %2124 = vmatprep.subr.mxu1 %v4788_v38  ;;  %5405 = vst [vmem:[#allocation28_spill] sm:$0xff] %v4817_v34  ;;  %v4822_v33 = vld [vmem:[%s5221_s5 + $0x10] sm:$0xff] }
 0x373   : > { %2053 = vmatprep.subr.mxu0 %v4783_v36  ;;  %5406 = vst [vmem:[#allocation29_spill] sm:$0xff] %v4822_v33  ;;  %2125 = vmatpush1.msra.mxu1 %v4800_v41  ;;  %v5407_v36 = vld [vmem:[#allocation40_spill] sm:$0xff] }
 0x374   : > { %2054 = vmatpush1.msra.mxu0 %v4793_v39  ;;  %2126 = vmatprep.subr.mxu1 %v4810_v5  ;;  %v5408_v39 = vld [vmem:[#allocation42_spill] sm:$0xff] }
 0x375   : > { %2055 = vmatprep.subr.mxu0 %v4805_v42  ;;  %2127 = vmatpush1.msra.mxu1 %v4822_v33 }
 0x376   : > { %2056 = vmatpush1.msra.mxu0 %v4817_v34  ;;  %2338 = vmatprep.subr.mxu1 %v4454_v60 }
 0x377   : > { %2267 = vmatprep.subr.mxu0 %v4449_v46 }
 0x3ed   : > { %v1563_v38 = vpop.f32.mrf.mxu0  ;;  %v1634_v41 = vpop.f32.mrf.mxu1 }
 0x3ee   : > { %v1639_v32 = vadd.f32 %v1563_v38, %v5407_v36  ;;  %v1641_v33 = vadd.f32 %v1634_v41, %v5410_v27  ;;  %v5415_v41 = vld [vmem:[#allocation16_spill] sm:$0xff] }
 0x3ef   : > { %v1565_v31 = vpop.f32.mrf.mxu0  ;;  %v1636_v5 = vpop.f32.mrf.mxu1 }
 0x3f0   : > { %v3106_v30 = vmul.f32 -1.442695, %v1639_v32  ;;  %v1640_v29 = vadd.f32 %v1565_v31, %v5408_v39  ;;  %v1642_v34 = vadd.f32 %v1636_v5, %v5409_v28  ;;  %v5416_v5 = vld [vmem:[#allocation17_spill] sm:$0xff] }
 0x3f2   : > { %3240 = vpow2.f32 %v3106_v30  ;;  %v3107_v42 = vmul.f32 -1.442695, %v1640_v29  ;;  %v3108_v26 = vmul.f32 -1.442695, %v1642_v34  ;;  %v5414_v34 = vld [vmem:[#allocation15_spill] sm:$0xff] }
 0x3f4   : > { %3242 = vpow2.f32 %v3107_v42 }
 0x3f5   : > { %3244 = vtanh.f32 %v1641_v33 }
 0x3f6   : > { %3246 = vpow2.f32 %v3108_v26  ;;  %v5413_v26 = vld [vmem:[#allocation14_spill] sm:$0xff] }
 0x3ff   : > { %v3241_v46 = vpop.eup %3240 }
 0x400   : > { %v1646_v25 = vadd.f32 1.0, %v3241_v46 }
 0x401   : > { %v3243_v60 = vpop.eup %3242 }
 0x402   : > { %3248 = vrcp.f32 %v1646_v25  ;;  %v1652_v36 = vadd.f32 1.0, %v3243_v60  ;;  %v3245_v32 = vpop.eup %3244  ;;  %v1960_v60 = vld [vmem:[#allocation4] sm:$0xff]  ;;  %v5412_v25 = vld [vmem:[#allocation13_spill] sm:$0xff] }
 0x403   : > { %v3247_v31 = vpop.eup %3246 }
 0x404   : > { %3250 = vrcp.f32 %v1652_v36  ;;  %v1659_v39 = vadd.f32 1.0, %v3247_v31  ;;  %v5417_v36 = vld [vmem:[#allocation18_spill] sm:$0xff]  ;;  %v5419_v31 = vld [vmem:[#allocation20_spill] sm:$0xff] }
 0x406   : > { %3252 = vrcp.f32 %v1659_v39  ;;  %v5423_v39 = vld [vmem:[#allocation24_spill] sm:$0xff] }
 0x40f   : > { %v3249_v30 = vpop.eup %3248 }
 0x410   : > { %v1664_v38 = vmul.f32 %v3249_v30, %v3245_v32  ;;  %v5418_v32 = vld [vmem:[#allocation19_spill] sm:$0xff]  ;;  %v5420_v30 = vld [vmem:[#allocation21_spill] sm:$0xff] }
 0x411   : > { %v3251_v29 = vpop.eup %3250 }
 0x412   : > { %v1663_v42 = vmul.f32 %v3251_v29, %v4239_v37  ;;  %v5411_v37 = vld [vmem:[#allocation12_spill] sm:$0xff]  ;;  %v5422_v29 = vld [vmem:[#allocation23_spill] sm:$0xff] }
 0x413   : > { %v3253_v27 = vpop.eup %3252 }
 0x414   : > { %v1665_v28 = vadd.f32 %v1664_v38, %v1663_v42  ;;  %v5421_v38 = vld [vmem:[#allocation22_spill] sm:$0xff]  ;;  %v5424_v42 = vld [vmem:[#allocation25_spill] sm:$0xff] }
 0x416   : > { %3254 = vtanh.f32 %v1665_v28  ;;  %1668 = vst [vmem:[#allocation3] sm:$0xff] %v1665_v28  ;;  %v5425_v28 = vld [vmem:[#allocation26_spill] sm:$0xff] }
 0x423   : > { %v3255_v46 = vpop.eup %3254 }
 0x424   : > { %v1667_v33 = vmul.f32 %v3255_v46, %v3253_v27  ;;  %v5426_v27 = vld [vmem:[#allocation27_spill] sm:$0xff]  ;;  %v5427_v46 = vld [vmem:[#allocation28_spill] sm:$0xff] }
 0x426   : > { %1669 = vst [vmem:[#allocation2] sm:$0xff] %v1667_v33  ;;  %1845 = vmatmul.mubr.f32.gmra.mxu0 %v1667_v33  ;;  %1934 = vmatmul.mubr.f32.gmra.mxu1 %v1667_v33  ;;  %v5428_v33 = vld [vmem:[#allocation29_spill] sm:$0xff] }
 0x427   : > { %2089 = vmatprep.mubr.f32.mxu0 %v5375_v35  ;;  %2160 = vmatprep.mubr.f32.mxu1 %v5375_v35 }
 0x42a   : > { %2090 = vmatmul.mubr.f32.vlgmr.msra.gmra.mxu0 %v1960_v60  ;;  %2161 = vmatmul.mubr.f32.vlgmr.msra.gmra.mxu1 %v1960_v60  ;;  %v5429_v60 = vld [vmem:[#allocation8_spill] sm:$0xff] }
 0x42b   : > { %2268 = vmatpush1.msra.mxu0 %v4461_v40  ;;  %2339 = vmatpush1.msra.mxu1 %v4466_v43 }
 0x42c   : > { %2269 = vmatprep.subr.mxu0 %v4473_v44  ;;  %2340 = vmatprep.subr.mxu1 %v4478_v45 }
 0x42d   : > { %2270 = vmatpush1.msra.mxu0 %v4485_v47  ;;  %2341 = vmatpush1.msra.mxu1 %v4490_v48 }
 0x42e   : > { %2271 = vmatprep.subr.mxu0 %v4497_v49  ;;  %2342 = vmatprep.subr.mxu1 %v4502_v50 }
 0x42f   : > { %2272 = vmatpush1.msra.mxu0 %v4509_v51  ;;  %2343 = vmatpush1.msra.mxu1 %v4514_v56 }
 0x430   : > { %2273 = vmatprep.subr.mxu0 %v4521_v55  ;;  %2344 = vmatprep.subr.mxu1 %v4526_v11 }
 0x431   : > { %2274 = vmatpush1.msra.mxu0 %v4533_v61  ;;  %2345 = vmatpush1.msra.mxu1 %v4538_v59 }
 0x432   : > { %2275 = vmatprep.subr.mxu0 %v4545_v0  ;;  %2346 = vmatprep.subr.mxu1 %v4550_v54 }
 0x433   : > { %2276 = vmatpush1.msra.mxu0 %v4557_v1  ;;  %2347 = vmatpush1.msra.mxu1 %v4562_v10 }
 0x434   : > { %2277 = vmatprep.subr.mxu0 %v4569_v8  ;;  %2348 = vmatprep.subr.mxu1 %v4574_v2 }
 0x435   : > { %2278 = vmatpush1.msra.mxu0 %v4581_v57  ;;  %2349 = vmatpush1.msra.mxu1 %v4586_v3 }
 0x436   : > { %2279 = vmatprep.subr.mxu0 %v4593_v53  ;;  %2350 = vmatprep.subr.mxu1 %v4598_v6 }
 0x437   : > { %2280 = vmatpush1.msra.mxu0 %v4605_v52  ;;  %2351 = vmatpush1.msra.mxu1 %v4610_v9 }
 0x438   : > { %2281 = vmatprep.subr.mxu0 %v4617_v58  ;;  %2352 = vmatprep.subr.mxu1 %v4622_v4 }
 0x439   : > { %2282 = vmatpush1.msra.mxu0 %v4627_v62  ;;  %2353 = vmatpush1.msra.mxu1 %v4634_v63 }
 0x43a   : > { %2283 = vmatprep.subr.mxu0 %v4639_v7  ;;  %2354 = vmatprep.subr.mxu1 %v4644_v12 }
 0x43b   : > { %2284 = vmatpush1.msra.mxu0 %v4651_v13  ;;  %2355 = vmatpush1.msra.mxu1 %v4656_v14 }
 0x43c   : > { %2285 = vmatprep.subr.mxu0 %v4661_v15  ;;  %2356 = vmatprep.subr.mxu1 %v4668_v16 }
 0x43d   : > { %2286 = vmatpush1.msra.mxu0 %v4673_v17  ;;  %2357 = vmatpush1.msra.mxu1 %v4678_v18 }
 0x43e   : > { %2287 = vmatprep.subr.mxu0 %v4685_v19  ;;  %2358 = vmatprep.subr.mxu1 %v4690_v20 }
 0x43f   : > { %2288 = vmatpush1.msra.mxu0 %v4697_v21  ;;  %2359 = vmatpush1.msra.mxu1 %v4702_v22 }
 0x440   : > { %2289 = vmatprep.subr.mxu0 %v4709_v23  ;;  %2360 = vmatprep.subr.mxu1 %v4714_v24 }
 0x441   : > { %2290 = vmatpush1.msra.mxu0 %v5411_v37  ;;  %2361 = vmatpush1.msra.mxu1 %v5412_v25 }
 0x442   : > { %2291 = vmatprep.subr.mxu0 %v5413_v26  ;;  %2362 = vmatprep.subr.mxu1 %v5414_v34 }
 0x443   : > { %2292 = vmatpush1.msra.mxu0 %v5415_v41  ;;  %2363 = vmatpush1.msra.mxu1 %v5416_v5 }
 0x444   : > { %2293 = vmatprep.subr.mxu0 %v5417_v36  ;;  %2364 = vmatprep.subr.mxu1 %v5418_v32 }
 0x445   : > { %2294 = vmatpush1.msra.mxu0 %v5419_v31  ;;  %2365 = vmatpush1.msra.mxu1 %v5420_v30 }
 0x446   : > { %2295 = vmatprep.subr.mxu0 %v5421_v38  ;;  %2366 = vmatprep.subr.mxu1 %v5422_v29  ;;  %v5430_v38 = vld [vmem:[#allocation9_spill] sm:$0xff]  ;;  %v1828_v29 = vpop.f32.mrf.mxu0 }
 0x447   : > { %2296 = vmatpush1.msra.mxu0 %v5423_v39  ;;  %2367 = vmatpush1.msra.mxu1 %v5424_v42  ;;  %v1917_v39 = vpop.f32.mrf.mxu1 }
 0x448   : > { %2297 = vmatprep.subr.mxu0 %v5425_v28  ;;  %2368 = vmatprep.subr.mxu1 %v5426_v27  ;;  %v1830_v30 = vpop.f32.mrf.mxu0 }
 0x449   : > { %2298 = vmatpush1.msra.mxu0 %v5427_v46  ;;  %2331 = vmatprep.mubr.f32.mxu0 %v5375_v35  ;;  %v1919_v42 = vpop.f32.mrf.mxu1 }
 0x44a   : > { %2369 = vmatpush1.msra.mxu1 %v5428_v33  ;;  %2402 = vmatprep.mubr.f32.mxu1 %v5375_v35  ;;  %v4905_v31 = vpop.f32.mrf.mxu0  ;;  %v5438_v35 = vld [vmem:[#allocation32_spill] sm:$0xff] }
 0x44b   : > { %2509 = vmatprep.subr.mxu0 %v5429_v60  ;;  %2580 = vmatprep.subr.mxu1 %v5430_v38  ;;  %5431 = vst [vmem:[#allocation30_spill] sm:$0xff] %v4905_v31  ;;  %v4907_v28 = vpop.f32.mrf.mxu1  ;;  %v1740_v38 = vld [vmem:[%s5222_s6] sm:$0xf]  ;;  %v5439_v36 = vsub.s32 0, %v5438_v35 }
 0x44c   : > { %5432 = vst [vmem:[#allocation31_spill] sm:$0xff] %v4907_v28  ;;  %v4909_v27 = vpop.f32.mrf.mxu0 }
 0x44d   : > { %5433 = vst [vmem:[#allocation33_spill] sm:$0xff] %v4909_v27  ;;  %v4911_v46 = vpop.f32.mrf.mxu1  ;;  %v4924_v5 = vrot.slane %v1740_v38, %v5439_v36 }
 0x44e   : > { %5434 = vst [vmem:[#allocation34_spill] sm:$0xff] %v4911_v46  ;;  %v4913_v32 = vpop.f32.mrf.mxu0  ;;  %v5443_v46 = vsub.s32 1, %v5438_v35 }
 0x44f   : > { %5435 = vst [vmem:[#allocation37_spill] sm:$0xff] %v4913_v32  ;;  %v4915_v33 = vpop.f32.mrf.mxu1  ;;  %5440 = vst [vmem:[#allocation38_spill] sm:$0xff] %v4924_v5  ;;  %v1829_v41 = vadd.f32 %v1828_v29, %v4924_v5 }
 0x450   : > { %5436 = vst [vmem:[#allocation35_spill] sm:$0xff] %v4915_v33  ;;  %v4920_v60 = vpop.f32.mrf.mxu0  ;;  %v4932_v27 = vrot.slane %v1740_v38, %v5443_v46  ;;  %v5447_v46 = vsub.s32 3, %v5438_v35 }
 0x451   : > { %5437 = vst [vmem:[#allocation36_spill] sm:$0xff] %v4920_v60  ;;  %v4926_v31 = vpop.f32.mrf.mxu1 }
 0x452   : > { %5441 = vst [vmem:[#allocation41_spill] sm:$0xff] %v4926_v31  ;;  %v1831_v60 = vadd.f32 %v1830_v30, %v4932_v27  ;;  %v4944_v23 = vrot.slane %v1740_v38, %v5447_v46 }
 0x454   : > { %5448 = vst [vmem:[#allocation43_spill] sm:$0xff] %v4944_v23  ;;  %v1920_v29 = vadd.f32 %v1919_v42, %v4944_v23  ;;  %v2190_v42 = vld [vmem:[#allocation5] sm:$0xff] }
 0x4e6   : > { %v4928_v28 = vpop.f32.mrf.mxu0  ;;  %v4934_v32 = vpop.f32.mrf.mxu1 }
 0x4e7   : > { %5442 = vst [vmem:[#allocation39_spill] sm:$0xff] %v4928_v28  ;;  %5444 = vst [vmem:[#allocation40_spill] sm:$0xff] %v4934_v32 }
 0x4e8   : > { %v4936_v33 = vpop.f32.mrf.mxu0  ;;  %v4940_v26 = vpop.f32.mrf.mxu1 }
 0x4e9   : > { %5445 = vst [vmem:[#allocation42_spill] sm:$0xff] %v4936_v33  ;;  %5446 = vst [vmem:[#allocation44_spill] sm:$0xff] %v4940_v26  ;;  %v5449_v33 = vsub.s32 2, %v5438_v35 }
 0x4ea   : > { %v2091_v34 = vpop.f32.mrf.mxu0  ;;  %v2162_v28 = vpop.f32.mrf.mxu1 }
 0x4eb   : > { %v2167_v36 = vadd.f32 %v2091_v34, %v1829_v41  ;;  %v4949_v30 = vrot.slane %v1740_v38, %v5449_v33 }
 0x4ec   : > { %v2093_v25 = vpop.f32.mrf.mxu0  ;;  %v2164_v32 = vpop.f32.mrf.mxu1 }
 0x4ed   : > { %v3109_v31 = vmul.f32 -1.442695, %v2167_v36  ;;  %v2168_v37 = vadd.f32 %v2093_v25, %v1831_v60  ;;  %v2170_v26 = vadd.f32 %v2164_v32, %v1920_v29  ;;  %v1918_v34 = vadd.f32 %v1917_v39, %v4949_v30 }
 0x4ef   : > { %3256 = vpow2.f32 %v3109_v31  ;;  %v3110_v24 = vmul.f32 -1.442695, %v2168_v37  ;;  %v3111_v41 = vmul.f32 -1.442695, %v2170_v26  ;;  %v2169_v31 = vadd.f32 %v2162_v28, %v1918_v34  ;;  %v5465_v34 = vld [vmem:[#allocation25_spill] sm:$0xff] }
 0x4f1   : > { %3258 = vpow2.f32 %v3110_v24 }
 0x4f2   : > { %3260 = vpow2.f32 %v3111_v41  ;;  %v5466_v41 = vld [vmem:[#allocation26_spill] sm:$0xff] }
 0x4fc   : > { %v3257_v25 = vpop.eup %3256 }
 0x4fd   : > { %v2174_v60 = vadd.f32 1.0, %v3257_v25  ;;  %v5467_v25 = vld [vmem:[#allocation27_spill] sm:$0xff] }
 0x4fe   : > { %v3259_v37 = vpop.eup %3258 }
 0x4ff   : > { %3262 = vrcp.f32 %v2174_v60  ;;  %v2180_v36 = vadd.f32 1.0, %v3259_v37  ;;  %v3261_v24 = vpop.eup %3260  ;;  %v5469_v60 = vmov 0.0   ;;  %v5470_v37 = vld [vmem:[#allocation29_spill] sm:$0xff] }
 0x500   : > { %3264 = vtanh.f32 %v2169_v31  ;;  %v2187_v33 = vadd.f32 1.0, %v3261_v24  ;;  %v5468_v31 = vld [vmem:[#allocation28_spill] sm:$0xff] }
 0x501   : > { %3266 = vrcp.f32 %v2180_v36  ;;  %v5471_v36 = vld [vmem:[#allocation30_spill] sm:$0xff] }
 0x502   : > { %3268 = vrcp.f32 %v2187_v33  ;;  %v1835_v24 = vadd.f32 %v5471_v36, %v4924_v5 }
 0x50c   : > { %v3263_v46 = vpop.eup %3262 }
 0x50d   : > { %v3265_v23 = vpop.eup %3264 }
 0x50e   : > { %v3267_v35 = vpop.eup %3266  ;;  %v2192_v38 = vmul.f32 %v3265_v23, %v3263_v46  ;;  %v5464_v23 = vld [vmem:[#allocation24_spill] sm:$0xff] }
 0x50f   : > { %v2191_v32 = vmul.f32 %v3267_v35, %v2190_v42  ;;  %v3269_v26 = vpop.eup %3268  ;;  %v5472_v42 = vld [vmem:[#allocation33_spill] sm:$0xff] }
 0x510   : > { %v1837_v35 = vadd.f32 %v5472_v42, %v4932_v27 }
 0x511   : > { %v4952_v29 = vadd.f32 %v2192_v38, %v2191_v32 }
 0x513   : > { %3270 = vtanh.f32 %v4952_v29 }
 0x520   : > { %v3271_v39 = vpop.eup %3270 }
 0x521   : > { %v2195_v28 = vmul.f32 %v3271_v39, %v3269_v26 }
 0x523   : > { %2332 = vmatmul.mubr.f32.vlgmr.msra.gmra.mxu0 %v2195_v28  ;;  %2403 = vmatmul.mubr.f32.vlgmr.msra.gmra.mxu1 %v2195_v28 }
 0x524   : > { %2510 = vmatpush1.msra.mxu0 %v4461_v40  ;;  %2581 = vmatpush1.msra.mxu1 %v4466_v43  ;;  %v5450_v40 = vld [vmem:[#allocation10_spill] sm:$0xff]  ;;  %v5451_v43 = vld [vmem:[#allocation11_spill] sm:$0xff] }
 0x525   : > { %2511 = vmatprep.subr.mxu0 %v4473_v44  ;;  %2582 = vmatprep.subr.mxu1 %v4478_v45  ;;  %v5452_v44 = vld [vmem:[#allocation12_spill] sm:$0xff]  ;;  %v5453_v45 = vld [vmem:[#allocation13_spill] sm:$0xff] }
 0x526   : > { %2512 = vmatpush1.msra.mxu0 %v4485_v47  ;;  %2583 = vmatpush1.msra.mxu1 %v4490_v48  ;;  %v5454_v47 = vld [vmem:[#allocation14_spill] sm:$0xff]  ;;  %v5455_v48 = vld [vmem:[#allocation15_spill] sm:$0xff] }
 0x527   : > { %2513 = vmatprep.subr.mxu0 %v4497_v49  ;;  %2584 = vmatprep.subr.mxu1 %v4502_v50  ;;  %v5456_v49 = vld [vmem:[#allocation16_spill] sm:$0xff]  ;;  %v5457_v50 = vld [vmem:[#allocation17_spill] sm:$0xff] }
 0x528   : > { %2514 = vmatpush1.msra.mxu0 %v4509_v51  ;;  %2585 = vmatpush1.msra.mxu1 %v4514_v56  ;;  %v5458_v51 = vld [vmem:[#allocation18_spill] sm:$0xff]  ;;  %v5459_v56 = vld [vmem:[#allocation19_spill] sm:$0xff] }
 0x529   : > { %2515 = vmatprep.subr.mxu0 %v4521_v55  ;;  %2586 = vmatprep.subr.mxu1 %v4526_v11  ;;  %v5460_v55 = vld [vmem:[#allocation20_spill] sm:$0xff]  ;;  %v5461_v11 = vld [vmem:[#allocation21_spill] sm:$0xff] }
 0x52a   : > { %2516 = vmatpush1.msra.mxu0 %v4533_v61  ;;  %2587 = vmatpush1.msra.mxu1 %v4538_v59  ;;  %v5462_v61 = vld [vmem:[#allocation22_spill] sm:$0xff]  ;;  %v5463_v59 = vld [vmem:[#allocation23_spill] sm:$0xff] }
 0x52b   : > { %2517 = vmatprep.subr.mxu0 %v4545_v0  ;;  %2588 = vmatprep.subr.mxu1 %v4550_v54 }
 0x52c   : > { %2518 = vmatpush1.msra.mxu0 %v4557_v1  ;;  %2589 = vmatpush1.msra.mxu1 %v4562_v10 }
 0x52d   : > { %2519 = vmatprep.subr.mxu0 %v4569_v8  ;;  %2590 = vmatprep.subr.mxu1 %v4574_v2 }
 0x52e   : > { %2520 = vmatpush1.msra.mxu0 %v4581_v57  ;;  %2591 = vmatpush1.msra.mxu1 %v4586_v3 }
 0x52f   : > { %2521 = vmatprep.subr.mxu0 %v4593_v53  ;;  %2592 = vmatprep.subr.mxu1 %v4598_v6 }
 0x530   : > { %2522 = vmatpush1.msra.mxu0 %v4605_v52  ;;  %2593 = vmatpush1.msra.mxu1 %v4610_v9 }
 0x531   : > { %2523 = vmatprep.subr.mxu0 %v4617_v58  ;;  %2594 = vmatprep.subr.mxu1 %v4622_v4 }
 0x532   : > { %2524 = vmatpush1.msra.mxu0 %v4627_v62  ;;  %2595 = vmatpush1.msra.mxu1 %v4634_v63 }
 0x533   : > { %2525 = vmatprep.subr.mxu0 %v4639_v7  ;;  %2596 = vmatprep.subr.mxu1 %v4644_v12 }
 0x534   : > { %2526 = vmatpush1.msra.mxu0 %v4651_v13  ;;  %2597 = vmatpush1.msra.mxu1 %v4656_v14 }
 0x535   : > { %2527 = vmatprep.subr.mxu0 %v4661_v15  ;;  %2598 = vmatprep.subr.mxu1 %v4668_v16 }
 0x536   : > { %2528 = vmatpush1.msra.mxu0 %v4673_v17  ;;  %2599 = vmatpush1.msra.mxu1 %v4678_v18 }
 0x537   : > { %2529 = vmatprep.subr.mxu0 %v4685_v19  ;;  %2600 = vmatprep.subr.mxu1 %v4690_v20 }
 0x538   : > { %2530 = vmatpush1.msra.mxu0 %v4697_v21  ;;  %2601 = vmatpush1.msra.mxu1 %v4702_v22 }
 0x539   : > { %2531 = vmatprep.subr.mxu0 %v5450_v40  ;;  %2602 = vmatprep.subr.mxu1 %v5451_v43 }
 0x53a   : > { %2532 = vmatpush1.msra.mxu0 %v5452_v44  ;;  %2603 = vmatpush1.msra.mxu1 %v5453_v45 }
 0x53b   : > { %2533 = vmatprep.subr.mxu0 %v5454_v47  ;;  %2604 = vmatprep.subr.mxu1 %v5455_v48 }
 0x53c   : > { %2534 = vmatpush1.msra.mxu0 %v5456_v49  ;;  %2605 = vmatpush1.msra.mxu1 %v5457_v50 }
 0x53d   : > { %2535 = vmatprep.subr.mxu0 %v5458_v51  ;;  %2606 = vmatprep.subr.mxu1 %v5459_v56 }
 0x53e   : > { %2536 = vmatpush1.msra.mxu0 %v5460_v55  ;;  %2607 = vmatpush1.msra.mxu1 %v5461_v11 }
 0x53f   : > { %2537 = vmatprep.subr.mxu0 %v5462_v61  ;;  %2608 = vmatprep.subr.mxu1 %v5463_v59 }
 0x540   : > { %2538 = vmatpush1.msra.mxu0 %v5464_v23  ;;  %2609 = vmatpush1.msra.mxu1 %v5465_v34  ;;  %v5475_v23 = vld [vmem:[#allocation31_spill] sm:$0xff] }
 0x541   : > { %2539 = vmatprep.subr.mxu0 %v5466_v41  ;;  %2610 = vmatprep.subr.mxu1 %v5467_v25  ;;  %v5473_v25 = vld [vmem:[#allocation43_spill] sm:$0xff]  ;;  %v1924_v36 = vadd.f32 %v5475_v23, %v4949_v30 }
 0x542   : > { %2540 = vmatpush1.msra.mxu0 %v5468_v31  ;;  %2573 = vmatprep.mubr.f32.mxu0 %v5469_v60 }
 0x543   : > { %2611 = vmatpush1.msra.mxu1 %v5470_v37  ;;  %2644 = vmatprep.mubr.f32.mxu1 %v5469_v60  ;;  %v5474_v37 = vld [vmem:[#allocation34_spill] sm:$0xff] }
 0x544   : > { %v1926_v41 = vadd.f32 %v5474_v37, %v5473_v25 }
 0x5e3   : > { %v2333_v46 = vpop.f32.mrf.mxu0  ;;  %v2404_v39 = vpop.f32.mrf.mxu1 }
 0x5e4   : > { %v2409_v33 = vadd.f32 %v2333_v46, %v1835_v24  ;;  %v2411_v5 = vadd.f32 %v2404_v39, %v1924_v36  ;;  %v2749_v39 = vld [vmem:[%s5221_s5 + $0x1f0] sm:$0xff]  ;;  %v2743_v36 = vld [vmem:[%s5221_s5 + $0x1c0] sm:$0xff] }
 0x5e5   : > { %v2335_v38 = vpop.f32.mrf.mxu0  ;;  %v2406_v31 = vpop.f32.mrf.mxu1 }
 0x5e6   : > { %v3112_v32 = vmul.f32 -1.442695, %v2409_v33  ;;  %v2410_v26 = vadd.f32 %v2335_v38, %v1837_v35  ;;  %v2412_v34 = vadd.f32 %v2406_v31, %v1926_v41 }
 0x5e8   : > { %3272 = vpow2.f32 %v3112_v32  ;;  %v3113_v28 = vmul.f32 -1.442695, %v2410_v26  ;;  %v3114_v59 = vmul.f32 -1.442695, %v2412_v34  ;;  %v2747_v34 = vld [vmem:[%s5221_s5 + $0x1e0] sm:$0xff] }
 0x5ea   : > { %3274 = vpow2.f32 %v3113_v28  ;;  %v2746_v28 = vld [vmem:[%s5221_s5 + $0x1d8] sm:$0xff] }
 0x5eb   : > { %3276 = vtanh.f32 %v2411_v5 }
 0x5ec   : > { %3278 = vpow2.f32 %v3114_v59  ;;  %v2748_v59 = vld [vmem:[%s5221_s5 + $0x1e8] sm:$0xff] }
 0x5ed   : > { %2751 = vmatprep.subr.mxu0 %v2748_v59 }
 0x5f5   : > { %v3273_v61 = vpop.eup %3272 }
 0x5f6   : > { %v2416_v42 = vadd.f32 1.0, %v3273_v61 }
 0x5f7   : > { %v3275_v24 = vpop.eup %3274 }
 0x5f8   : > { %3280 = vrcp.f32 %v2416_v42  ;;  %v2422_v46 = vadd.f32 1.0, %v3275_v24  ;;  %v3277_v35 = vpop.eup %3276  ;;  %v2745_v42 = vld [vmem:[%s5221_s5 + $0x1d0] sm:$0xff]  ;;  %v2740_v24 = vld [vmem:[%s5221_s5 + $0x1a8] sm:$0xff] }
 0x5f9   : > { %v3279_v33 = vpop.eup %3278 }
 0x5fa   : > { %3282 = vrcp.f32 %v2422_v46  ;;  %v2429_v37 = vadd.f32 1.0, %v3279_v33  ;;  %v2742_v46 = vld [vmem:[%s5221_s5 + $0x1b8] sm:$0xff]  ;;  %v2741_v33 = vld [vmem:[%s5221_s5 + $0x1b0] sm:$0xff] }
 0x5fc   : > { %3284 = vrcp.f32 %v2429_v37  ;;  %v2737_v37 = vld [vmem:[%s5221_s5 + $0x190] sm:$0xff] }
 0x605   : > { %v3281_v38 = vpop.eup %3280 }
 0x606   : > { %v2434_v32 = vmul.f32 %v3281_v38, %v3277_v35  ;;  %v2739_v35 = vld [vmem:[%s5221_s5 + $0x1a0] sm:$0xff]  ;;  %v2736_v38 = vld [vmem:[%s5221_s5 + $0x188] sm:$0xff] }
 0x607   : > { %v3283_v26 = vpop.eup %3282 }
 0x608   : > { %v2433_v41 = vmul.f32 %v3283_v26, %v4952_v29  ;;  %v2750_v29 = vld [vmem:[%s5221_s5 + $0x1f8] sm:$0xff]  ;;  %v2735_v26 = vld [vmem:[%s5221_s5 + $0x180] sm:$0xff] }
 0x609   : > { %v3285_v61 = vpop.eup %3284  ;;  %2822 = vmatprep.subr.mxu1 %v2750_v29 }
 0x60a   : > { %v5028_v31 = vadd.f32 %v2434_v32, %v2433_v41  ;;  %v2738_v32 = vld [vmem:[%s5221_s5 + $0x198] sm:$0xff] }
 0x60c   : > { %3286 = vtanh.f32 %v5028_v31 }
 0x619   : > { %v3287_v5 = vpop.eup %3286 }
 0x61a   : > { %v2437_v23 = vmul.f32 %v3287_v5, %v3285_v61 }
 0x61c   : > { %2574 = vmatmul.mubr.f32.vlgmr.msra.gmra.mxu0 %v2437_v23  ;;  %2645 = vmatmul.mubr.f32.vlgmr.msra.gmra.mxu1 %v2437_v23  ;;  %v5489_v23 = vld [vmem:[#allocation39_spill] sm:$0xff] }
 0x61d   : > { %2815 = vmatprep.mubr.f32.mxu0 %v5469_v60  ;;  %2886 = vmatprep.mubr.f32.mxu1 %v5469_v60  ;;  %v2744_v60 = vld [vmem:[%s5221_s5 + $0x1c8] sm:$0xff] }
 0x61e   : > { %2752 = vmatpush1.msra.mxu0 %v2747_v34  ;;  %2823 = vmatpush1.msra.mxu1 %v2749_v39  ;;  %v5490_v34 = vld [vmem:[#allocation42_spill] sm:$0xff] }
 0x61f   : > { %2753 = vmatprep.subr.mxu0 %v2744_v60  ;;  %2824 = vmatprep.subr.mxu1 %v2746_v28  ;;  %v1849_v39 = vadd.f32 %v5490_v34, %v4932_v27 }
 0x620   : > { %2754 = vmatpush1.msra.mxu0 %v2743_v36  ;;  %2825 = vmatpush1.msra.mxu1 %v2745_v42 }
 0x621   : > { %2755 = vmatprep.subr.mxu0 %v2740_v24  ;;  %2826 = vmatprep.subr.mxu1 %v2742_v46 }
 0x622   : > { %2756 = vmatpush1.msra.mxu0 %v2739_v35  ;;  %2827 = vmatpush1.msra.mxu1 %v2741_v33  ;;  %v5491_v35 = vld [vmem:[#allocation44_spill] sm:$0xff] }
 0x623   : > { %2757 = vmatprep.subr.mxu0 %v2736_v38  ;;  %2828 = vmatprep.subr.mxu1 %v2738_v32  ;;  %v1938_v33 = vadd.f32 %v5491_v35, %v5473_v25  ;;  %v5492_v32 = vld [vmem:[#allocation40_spill] sm:$0xff] }
 0x624   : > { %2758 = vmatpush1.msra.mxu0 %v2735_v26  ;;  %2829 = vmatpush1.msra.mxu1 %v2737_v37  ;;  %v1936_v26 = vadd.f32 %v5492_v32, %v4949_v30 }
 0x625   : > { %2759 = vmatprep.subr.mxu0 %v4545_v0  ;;  %2830 = vmatprep.subr.mxu1 %v4550_v54  ;;  %v5476_v0 = vld [vmem:[#allocation22_spill] sm:$0xff]  ;;  %v5477_v54 = vld [vmem:[#allocation23_spill] sm:$0xff] }
 0x626   : > { %2760 = vmatpush1.msra.mxu0 %v4557_v1  ;;  %2831 = vmatpush1.msra.mxu1 %v4562_v10  ;;  %v5478_v1 = vld [vmem:[#allocation24_spill] sm:$0xff]  ;;  %v5479_v10 = vld [vmem:[#allocation25_spill] sm:$0xff] }
 0x627   : > { %2761 = vmatprep.subr.mxu0 %v4569_v8  ;;  %2832 = vmatprep.subr.mxu1 %v4574_v2  ;;  %v5480_v8 = vld [vmem:[#allocation26_spill] sm:$0xff]  ;;  %v5481_v2 = vld [vmem:[#allocation27_spill] sm:$0xff] }
 0x628   : > { %2762 = vmatpush1.msra.mxu0 %v4581_v57  ;;  %2833 = vmatpush1.msra.mxu1 %v4586_v3  ;;  %v5482_v57 = vld [vmem:[#allocation28_spill] sm:$0xff]  ;;  %v5483_v3 = vld [vmem:[#allocation29_spill] sm:$0xff] }
 0x629   : > { %2763 = vmatprep.subr.mxu0 %v4593_v53  ;;  %2834 = vmatprep.subr.mxu1 %v4598_v6  ;;  %v5484_v53 = vld [vmem:[#allocation38_spill] sm:$0xff]  ;;  %v5485_v6 = vld [vmem:[#allocation37_spill] sm:$0xff] }
 0x62a   : > { %2764 = vmatpush1.msra.mxu0 %v4605_v52  ;;  %2835 = vmatpush1.msra.mxu1 %v4610_v9  ;;  %v1841_v52 = vadd.f32 %v5485_v6, %v5484_v53  ;;  %v1847_v59 = vadd.f32 %v5489_v23, %v5484_v53 }
 0x62b   : > { %2765 = vmatprep.subr.mxu0 %v4617_v58  ;;  %2836 = vmatprep.subr.mxu1 %v4622_v4  ;;  %v5486_v58 = vld [vmem:[#allocation36_spill] sm:$0xff] }
 0x62c   : > { %2766 = vmatpush1.msra.mxu0 %v4627_v62  ;;  %2837 = vmatpush1.msra.mxu1 %v4634_v63  ;;  %v1843_v4 = vadd.f32 %v5486_v58, %v4932_v27 }
 0x62d   : > { %2767 = vmatprep.subr.mxu0 %v4639_v7  ;;  %2838 = vmatprep.subr.mxu1 %v4644_v12 }
 0x62e   : > { %2768 = vmatpush1.msra.mxu0 %v4651_v13  ;;  %2839 = vmatpush1.msra.mxu1 %v4656_v14 }
 0x62f   : > { %2769 = vmatprep.subr.mxu0 %v4661_v15  ;;  %2840 = vmatprep.subr.mxu1 %v4668_v16  ;;  %v5487_v16 = vld [vmem:[#allocation41_spill] sm:$0xff] }
 0x630   : > { %2770 = vmatpush1.msra.mxu0 %v4673_v17  ;;  %2841 = vmatpush1.msra.mxu1 %v4678_v18  ;;  %v1932_v17 = vadd.f32 %v5487_v16, %v5473_v25 }
 0x631   : > { %2771 = vmatprep.subr.mxu0 %v4685_v19  ;;  %2842 = vmatprep.subr.mxu1 %v4690_v20  ;;  %v5488_v19 = vld [vmem:[#allocation35_spill] sm:$0xff] }
 0x632   : > { %2772 = vmatpush1.msra.mxu0 %v4697_v21  ;;  %2843 = vmatpush1.msra.mxu1 %v4702_v22  ;;  %v1930_v20 = vadd.f32 %v5488_v19, %v4949_v30 }
 0x633   : > { %2773 = vmatprep.subr.mxu0 %v5450_v40  ;;  %2844 = vmatprep.subr.mxu1 %v5451_v43 }
 0x634   : > { %2774 = vmatpush1.msra.mxu0 %v5452_v44  ;;  %2845 = vmatpush1.msra.mxu1 %v5453_v45 }
 0x635   : > { %2775 = vmatprep.subr.mxu0 %v5454_v47  ;;  %2846 = vmatprep.subr.mxu1 %v5455_v48 }
 0x636   : > { %2776 = vmatpush1.msra.mxu0 %v5456_v49  ;;  %2847 = vmatpush1.msra.mxu1 %v5457_v50 }
 0x637   : > { %2777 = vmatprep.subr.mxu0 %v5458_v51  ;;  %2848 = vmatprep.subr.mxu1 %v5459_v56 }
 0x638   : > { %2778 = vmatpush1.msra.mxu0 %v5460_v55  ;;  %2849 = vmatpush1.msra.mxu1 %v5461_v11 }
 0x639   : > { %2779 = vmatprep.subr.mxu0 %v5476_v0  ;;  %2850 = vmatprep.subr.mxu1 %v5477_v54 }
 0x63a   : > { %2780 = vmatpush1.msra.mxu0 %v5478_v1  ;;  %2851 = vmatpush1.msra.mxu1 %v5479_v10 }
 0x63b   : > { %2781 = vmatprep.subr.mxu0 %v5480_v8  ;;  %2852 = vmatprep.subr.mxu1 %v5481_v2 }
 0x63c   : > { %2782 = vmatpush1.msra.mxu0 %v5482_v57  ;;  %2853 = vmatpush1.msra.mxu1 %v5483_v3 }
 0x6dc   : > { %v2575_v9 = vpop.f32.mrf.mxu0  ;;  %v2646_v13 = vpop.f32.mrf.mxu1 }
 0x6dd   : > { %v2651_v62 = vadd.f32 %v2575_v9, %v1841_v52  ;;  %v2653_v21 = vadd.f32 %v2646_v13, %v1930_v20 }
 0x6de   : > { %v2577_v63 = vpop.f32.mrf.mxu0  ;;  %v2648_v15 = vpop.f32.mrf.mxu1 }
 0x6df   : > { %v3115_v7 = vmul.f32 -1.442695, %v2651_v62  ;;  %v2652_v12 = vadd.f32 %v2577_v63, %v1843_v4  ;;  %v2654_v18 = vadd.f32 %v2648_v15, %v1932_v17 }
 0x6e1   : > { %3288 = vpow2.f32 %v3115_v7  ;;  %v3116_v14 = vmul.f32 -1.442695, %v2652_v12  ;;  %v3117_v22 = vmul.f32 -1.442695, %v2654_v18 }
 0x6e3   : > { %3290 = vpow2.f32 %v3116_v14 }
 0x6e4   : > { %3292 = vtanh.f32 %v2653_v21 }
 0x6e5   : > { %3294 = vpow2.f32 %v3117_v22 }
 0x6ee   : > { %v3289_v40 = vpop.eup %3288 }
 0x6ef   : > { %v2658_v43 = vadd.f32 1.0, %v3289_v40 }
 0x6f0   : > { %v3291_v44 = vpop.eup %3290 }
 0x6f1   : > { %3296 = vrcp.f32 %v2658_v43  ;;  %v2664_v45 = vadd.f32 1.0, %v3291_v44  ;;  %v3293_v47 = vpop.eup %3292 }
 0x6f2   : > { %v3295_v48 = vpop.eup %3294 }
 0x6f3   : > { %3298 = vrcp.f32 %v2664_v45  ;;  %v2671_v56 = vadd.f32 1.0, %v3295_v48 }
 0x6f5   : > { %3300 = vrcp.f32 %v2671_v56 }
 0x6fe   : > { %v3297_v49 = vpop.eup %3296 }
 0x6ff   : > { %v2676_v50 = vmul.f32 %v3297_v49, %v3293_v47 }
 0x700   : > { %v3299_v51 = vpop.eup %3298 }
 0x701   : > { %v2675_v55 = vmul.f32 %v3299_v51, %v5028_v31 }
 0x702   : > { %v3301_v41 = vpop.eup %3300 }
 0x703   : > { %v2677_v11 = vadd.f32 %v2676_v50, %v2675_v55 }
 0x705   : > { %3302 = vtanh.f32 %v2677_v11 }
 0x712   : > { %v3303_v61 = vpop.eup %3302 }
 0x713   : > { %v2679_v5 = vmul.f32 %v3303_v61, %v3301_v41 }
 0x715   : > { %2816 = vmatmul.mubr.f32.vlgmr.msra.gmra.mxu0 %v2679_v5  ;;  %2887 = vmatmul.mubr.f32.vlgmr.msra.gmra.mxu1 %v2679_v5 }
 0x7d5   : > { %v2817_v29 = vpop.f32.mrf.mxu0  ;;  %v2888_v31 = vpop.f32.mrf.mxu1 }
 0x7d6   : > { %v2893_v60 = vadd.f32 %v2817_v29, %v1847_v59  ;;  %v2895_v37 = vadd.f32 %v2888_v31, %v1936_v26 }
 0x7d7   : > { %v2819_v28 = vpop.f32.mrf.mxu0  ;;  %v2890_v46 = vpop.f32.mrf.mxu1 }
 0x7d8   : > { %v3118_v36 = vmul.f32 -1.442695, %v2893_v60  ;;  %v2894_v42 = vadd.f32 %v2819_v28, %v1849_v39  ;;  %v2896_v38 = vadd.f32 %v2890_v46, %v1938_v33 }
 0x7da   : > { %3304 = vpow2.f32 %v3118_v36  ;;  %v3119_v24 = vmul.f32 -1.442695, %v2894_v42  ;;  %v3120_v0 = vmul.f32 -1.442695, %v2896_v38 }
 0x7dc   : > { %3306 = vpow2.f32 %v3119_v24 }
 0x7dd   : > { %3308 = vtanh.f32 %v2895_v37 }
 0x7de   : > { %3310 = vpow2.f32 %v3120_v0 }
 0x7e7   : > { %v3305_v54 = vpop.eup %3304 }
 0x7e8   : > { %v2900_v27 = vadd.f32 1.0, %v3305_v54 }
 0x7e9   : > { %v3307_v1 = vpop.eup %3306 }
 0x7ea   : > { %3312 = vrcp.f32 %v2900_v27  ;;  %v2906_v10 = vadd.f32 1.0, %v3307_v1  ;;  %v3309_v8 = vpop.eup %3308 }
 0x7eb   : > { %v3311_v2 = vpop.eup %3310 }
 0x7ec   : > { %3314 = vrcp.f32 %v2906_v10  ;;  %v2913_v25 = vadd.f32 1.0, %v3311_v2 }
 0x7ee   : > { %3316 = vrcp.f32 %v2913_v25 }
 0x7f7   : > { %v3313_v57 = vpop.eup %3312 }
 0x7f8   : > { %v2918_v3 = vmul.f32 %v3313_v57, %v3309_v8 }
 0x7f9   : > { %v3315_v53 = vpop.eup %3314 }
 0x7fa   : > { %v2917_v6 = vmul.f32 %v3315_v53, %v2677_v11 }
 0x7fb   : > { %v3317_v30 = vpop.eup %3316 }
 0x7fc   : > { %v2919_v52 = vadd.f32 %v2918_v3, %v2917_v6 }
 0x7fe   : > { %3318 = vtanh.f32 %v2919_v52  ;;  %2922 = vst [vmem:[#allocation5] sm:$0xff] %v2919_v52 }
 0x80a   : > { %2927 = sbr.rel (%p3121_p5) target bundleno = 2292 (0x8f4), region = 72 }
 0x80b   : > { %v3319_v9 = vpop.eup %3318 }
 0x80c   : > { %v2921_v58 = vmul.f32 %v3319_v9, %v3317_v30 }
 0x80e   : > { %2923 = vst [vmem:[#allocation4] sm:$0xff] %v2921_v58 }
 0x80f   : > { %v2928_v4 = vld [vmem:[#allocation2] sm:$0xff]  ;;  %v2933_v63 = vld [vmem:[#allocation3] sm:$0xff]  ;;  %v2935_v7 = vld [vmem:[#allocation5] sm:$0xff]  ;;  %v3329_v12 = vmov 0.0   ;;  %vm3330_vm2 = vmmov 0  }
 0x810   : > { %2929 = vst [vmem:[%s5228_s12] sm:$0xff] %v2928_v4  ;;  %2934 = vst [vmem:[%s5229_s13] sm:$0xff] %v2933_v63  ;;  %3144 = vmatprep.subr.mxu0 %v3329_v12  ;;  %v2954_v13 = vld [vmem:[%s5225_s9 + $0x78] sm:$0xff]  ;;  %v2953_v14 = vld [vmem:[%s5225_s9 + $0x70] sm:$0xff]  ;;  %3176 = vmatprep.mubr.msk.f32.mxu0 %vm3330_vm2, %v3329_v12 }
 0x811   : > { %3123 = vst [vmem:[%s5229_s13 + $0x8] sm:$0xff] %v2935_v7  ;;  %3145 = vmatpush3.msra.mxu0 %v2954_v13  ;;  %v2952_v15 = vld [vmem:[%s5225_s9 + $0x68] sm:$0xff]  ;;  %v2951_v16 = vld [vmem:[%s5225_s9 + $0x60] sm:$0xff]  ;;  %v2950_v17 = vld [vmem:[%s5225_s9 + $0x58] sm:$0xff] }
 0x812   : > { %3146 = vmatprep.subr.mxu0 %v3329_v12  ;;  %v2949_v18 = vld [vmem:[%s5225_s9 + $0x50] sm:$0xff]  ;;  %v2948_v19 = vld [vmem:[%s5225_s9 + $0x48] sm:$0xff]  ;;  %v2947_v20 = vld [vmem:[%s5225_s9 + $0x40] sm:$0xff] }
 0x813   : > { %3147 = vmatpush3.msra.mxu0 %v2953_v14  ;;  %v2946_v21 = vld [vmem:[%s5225_s9 + $0x38] sm:$0xff]  ;;  %v2945_v22 = vld [vmem:[%s5225_s9 + $0x30] sm:$0xff]  ;;  %v2944_v40 = vld [vmem:[%s5225_s9 + $0x28] sm:$0xff] }
 0x814   : > { %3148 = vmatprep.subr.mxu0 %v3329_v12  ;;  %v2943_v43 = vld [vmem:[%s5225_s9 + $0x20] sm:$0xff]  ;;  %v2942_v44 = vld [vmem:[%s5225_s9 + $0x18] sm:$0xff]  ;;  %v2941_v45 = vld [vmem:[%s5225_s9 + $0x10] sm:$0xff] }
 0x815   : > { %v2930_v62 = vld [vmem:[#allocation4] sm:$0xff]  ;;  %3149 = vmatpush3.msra.mxu0 %v2952_v15  ;;  %v2940_v47 = vld [vmem:[%s5225_s9 + $0x8] sm:$0xff]  ;;  %v2939_v48 = vld [vmem:[%s5225_s9] sm:$0xff] }
 0x816   : > { %3122 = vst [vmem:[%s5228_s12 + $0x8] sm:$0xff] %v2930_v62  ;;  %3150 = vmatprep.subr.mxu0 %v3329_v12  ;;  %v3124_v49 = vld [vmem:[%s5226_s10] ss:$0 sm:$0xff] }
 0x817   : > { %3151 = vmatpush3.msra.mxu0 %v2951_v16 }
 0x818   : > { %3152 = vmatprep.subr.mxu0 %v3329_v12 }
 0x819   : > { %3153 = vmatpush3.msra.mxu0 %v2950_v17 }
 0x81a   : > { %3154 = vmatprep.subr.mxu0 %v3329_v12 }
 0x81b   : > { %3155 = vmatpush3.msra.mxu0 %v2949_v18 }
 0x81c   : > { %3156 = vmatprep.subr.mxu0 %v3329_v12 }
 0x81d   : > { %3157 = vmatpush3.msra.mxu0 %v2948_v19 }
 0x81e   : > { %3158 = vmatprep.subr.mxu0 %v3329_v12 }
 0x81f   : > { %3159 = vmatpush3.msra.mxu0 %v2947_v20 }
 0x820   : > { %3160 = vmatprep.subr.mxu0 %v3329_v12 }
 0x821   : > { %3161 = vmatpush3.msra.mxu0 %v2946_v21 }
 0x822   : > { %3162 = vmatprep.subr.mxu0 %v3329_v12 }
 0x823   : > { %3163 = vmatpush3.msra.mxu0 %v2945_v22 }
 0x824   : > { %3164 = vmatprep.subr.mxu0 %v3329_v12 }
 0x825   : > { %3165 = vmatpush3.msra.mxu0 %v2944_v40 }
 0x826   : > { %3166 = vmatprep.subr.mxu0 %v3329_v12 }
 0x827   : > { %3167 = vmatpush3.msra.mxu0 %v2943_v43 }
 0x828   : > { %3168 = vmatprep.subr.mxu0 %v3329_v12 }
 0x829   : > { %3169 = vmatpush3.msra.mxu0 %v2942_v44 }
 0x82a   : > { %3170 = vmatprep.subr.mxu0 %v3329_v12 }
 0x82b   : > { %3171 = vmatpush3.msra.mxu0 %v2941_v45 }
 0x82c   : > { %3172 = vmatprep.subr.mxu0 %v3329_v12 }
 0x82d   : > { %3173 = vmatpush3.msra.mxu0 %v2940_v47 }
 0x82e   : > { %3174 = vmatprep.subr.mxu0 %v3329_v12 }
 0x82f   : > { %3175 = vmatpush3.msra.mxu0 %v2939_v48 }
 0x830   : > { %3177 = vmatmul.mubr.f32.vlgmr.msra.gmra.mxu0 %v2930_v62 }
 0x8f0   : > { %v3028_v50 = vpop.f32.mrf.mxu0 }
 0x8f1   : > { %v3029_v51 = vadd.f32 %v3124_v49, %v3028_v50 }
 0x8f2   : > { %v3178_v56 = vpop.f32.mrf.mxu0 }
 0x8f3   : > { %3032 = vst [vmem:[%s5227_s11] sm:$0xff] %v3029_v51 }
 0x8f4 PF: > { %s24_s25 = sadd.s32 1, %s3326_s25  }
 0x8f5   : > { %p21_p6 = scmp.ge.s32.totalorder %s24_s25, 4  }
 0x8f7   :  { %23 = sbr.rel (!%p21_p6) target bundleno = 1 (0x1), region = 125 }

</bundles_post_ra>
